<compile_context>
chip_gen: v7x
topology: tpu7x:2x2x1
jax: 0.10.0
libtpu: 0.0.40
codegen_flags: <defaults>
</compile_context>

<pallas_src>
import math
import functools
import numpy as np
import jax
import jax.numpy as jnp
from jax import lax
from jax.experimental import pallas as pl
from jax.experimental.pallas import tpu as pltpu


def _round_up(x, m):
    return ((x + m - 1) // m) * m


def _vmem_capacity_bytes():
    """Generation-aware physical VMEM size (v7x: 64 MiB, v5e/v6e: 128 MiB)."""
    try:
        return int(pltpu.get_tpu_info().vmem_capacity_bytes)
    except Exception:
        return 64 * 1024 * 1024   # conservative default that fits every generation


def _step_vmem_bytes(TH, H, Wt, Cin, Cout):
    """Rough per-grid-step VMEM working set (tile-padded, incl. double buffers)."""
    x_b = (H + 2) * _round_up(Wt + 2, 16) * _round_up(Cin, 128) * 2 * 2   # bf16 image
    w_b = _round_up(9 * Cin, 16) * _round_up(Cout, 128) * 2 * 2           # bf16 weights
    o_b = TH * Wt * _round_up(Cout, 128) * 4 * 2                          # f32 output tile
    p_b = _round_up(TH * Wt, 16) * _round_up(9 * Cin, 128) * 2            # bf16 im2col scratch
    return x_b + w_b + o_b + p_b + (16 << 10)


def _pick_row_tile(H, Wt, Cin, Cout, budget):
    """LARGEST row tile TH dividing H whose working set fits the VMEM budget
    (usually TH == H): fewer grid steps, a bigger matmul M dim, and more compute
    to hide the batch-boundary image DMA behind."""
    for TH in sorted((t for t in range(1, H + 1) if H % t == 0), reverse=True):
        if _step_vmem_bytes(TH, H, Wt, Cin, Cout) <= budget:
            return TH
    return 1


def _binconv3x3_kernel(x_ref, w_ref, b_ref, o_ref, p_ref, *, TH, Wt, Cin, Cout):
    """One (batch, row-tile) grid step.

    x_ref : (1, H+2, Wt+2, Cin) bf16, pre-binarized ({-1,0,+1}), zero padded
    w_ref : (9*Cin, Cout)       bf16, pre-binarized, weights-stationary layout
    b_ref : (1, Cout)           f32
    o_ref : (1, TH, Wt, Cout)   f32
    p_ref : (TH*Wt, 9*Cin)      bf16 VMEM scratch (im2col patches)
    """
    row0 = pl.multiple_of(pl.program_id(1) * TH, TH)

    # Build the im2col patch slab once per step from the VMEM-resident padded
    # image.  kh indexes an outer (untiled) dim -> cheap dynamic slice; the kw=1,2
    # sublane shifts and the TH*Wt flatten are the one-time scratch-build cost
    # (the flatten is layout-free because Wt % 16 == 0).  Lane writes at tap*Cin
    # are fully aligned whenever Cin % 128 == 0 (the large ResNet layers).
    for kh in range(3):
        for kw in range(3):
            tap = kh * 3 + kw
            slab = x_ref[0, pl.ds(row0 + kh, TH), pl.ds(kw, Wt), :]   # (TH, Wt, Cin)
            p_ref[:, tap * Cin:(tap + 1) * Cin] = slab.reshape(TH * Wt, Cin)

    # Single fused-K matmul: (TH*Wt, 9*Cin) @ (9*Cin, Cout) -> f32 (TH*Wt, Cout).
    # Tap accumulation happens inside the MXU, so there are no per-tap f32
    # accumulator read-modify-write passes over VMEM.
    acc = jnp.dot(p_ref[...], w_ref[...], preferred_element_type=jnp.float32)
    o_ref[0] = (acc + b_ref[...]).reshape(TH, Wt, Cout)   # one f32 bias add + store


def generate_binary_weights(z, h_w, h_b, out_chs, in_chs, k=3):
    """Hypernetwork (plain XLA -- the op is tiny) + one-time binarize / bf16 cast.

    Returns (k*k*in_chs, out_chs) bf16 weights in the weights-stationary layout
    the kernel consumes: row index = (kh*k + kw)*in_chs + ci, values in {-1,0,+1}.
    """
    kk = k * k
    assert z.shape == (out_chs * in_chs, kk)
    # TODO(synk): exact BinarizedHypernetwork_Parrallel internals (depth>1, per-layer
    # STE / XNOR scaling) are not in the provided source; modeled as one binarized
    # linear layer with an identity residual (identity=True, z_dim == k*k).
    w_flat = jnp.dot(z, jnp.sign(h_w)) + h_b + z          # (O*I, k*k)
    w = w_flat.reshape(out_chs, in_chs, k, k)             # OIHW
    wb = jnp.sign(w).astype(jnp.bfloat16)                 # binarize ONCE, narrow dtype
    wb = jnp.transpose(wb, (2, 3, 1, 0))                  # (kh, kw, Cin, Cout)
    return wb.reshape(kk * in_chs, out_chs)


def binary_conv3x3(x_nchw, w_bin, bias, *, activation_binarize=True):
    """stride=1 / pad=1 binary 3x3 conv. w_bin: (9*Cin, Cout) bf16, pre-binarized."""
    N, Cin, H, W = x_nchw.shape
    KC, Cout = w_bin.shape
    assert KC == 9 * Cin

    # Fuse sign() + bf16 cast into the one NCHW->NHWC(+pad) relayout pass the kernel
    # needs anyway (sign values are exact in bf16; zero padding commutes with sign).
    # TODO(synk): the real BinarizeHyperConv2d skips activation binarization for the
    # in_chs==3 stem; with activation_binarize=False we still cast to bf16 here.
    xb = jnp.sign(x_nchw) if activation_binarize else x_nchw
    xb = xb.astype(jnp.bfloat16)
    xb = jnp.transpose(xb, (0, 2, 3, 1))                  # NHWC (Cin on lanes)

    # Width padded to a multiple of 16 (bf16 sublane pack) so the in-kernel flatten
    # is layout-free; the extra zero columns produce garbage outputs sliced off
    # below.  The +1/+1 rows/cols are the conv zero padding.
    Wt = _round_up(W, 16)
    xb = jnp.pad(xb, ((0, 0), (1, 1), (1, 1 + (Wt - W)), (0, 0)))   # (N, H+2, Wt+2, Cin)

    cap = _vmem_capacity_bytes()
    TH = _pick_row_tile(H, Wt, Cin, Cout, budget=cap // 2)
    n_row_tiles = H // TH
    vmem_limit = max(32 * 1024 * 1024, min(int(cap * 0.8), 100 * 1024 * 1024))

    kernel = functools.partial(_binconv3x3_kernel, TH=TH, Wt=Wt, Cin=Cin, Cout=Cout)

    out = pl.pallas_call(
        kernel,
        out_shape=jax.ShapeDtypeStruct((N, H, Wt, Cout), jnp.float32),
        grid=(N, n_row_tiles),
        in_specs=[
            # Whole padded image per batch element; its block index ignores the
            # row-tile axis, so it stays VMEM-resident across row tiles.
            pl.BlockSpec((1, H + 2, Wt + 2, Cin), lambda n, i: (n, 0, 0, 0)),
            # Constant-index weights & bias stay resident for the whole grid.
            # (pipeline_mode=pl.Buffered(1) would additionally drop their second
            #  pipeline buffer; left at the default for portability.)
            pl.BlockSpec((9 * Cin, Cout), lambda n, i: (0, 0)),
            pl.BlockSpec((1, Cout), lambda n, i: (0, 0)),
        ],
        out_specs=pl.BlockSpec((1, TH, Wt, Cout), lambda n, i: (n, i, 0, 0)),
        scratch_shapes=[pltpu.VMEM((TH * Wt, 9 * Cin), jnp.bfloat16)],
        compiler_params=pltpu.CompilerParams(
            dimension_semantics=("parallel", "parallel"),
            vmem_limit_bytes=vmem_limit,
        ),
    )(xb, w_bin, bias.reshape(1, Cout).astype(jnp.float32))

    out = out[:, :, :W, :]                                # drop padded columns
    return jnp.transpose(out, (0, 3, 1, 2))               # NHWC -> NCHW


def binary_hyper_conv3x3(x, z, h_w, h_b, bias, out_chs, in_chs, k=3,
                         activation_binarize=True):
    w_bin = generate_binary_weights(z, h_w, h_b, out_chs, in_chs, k)
    return binary_conv3x3(x, w_bin, bias, activation_binarize=activation_binarize)


# ---------------------------------- main -------------------------------------

if __name__ == "__main__":
    N, Cin, Cout, H, W = 2, 4, 4, 16, 16
    K, Z_DIM = 3, 9

    key = jax.random.PRNGKey(0)
    k1, k2, k3, k4, k5 = jax.random.split(key, 5)
    z = jax.random.normal(k1, (Cout * Cin, Z_DIM), jnp.float32) * 0.1
    h_w = jax.random.normal(k2, (Z_DIM, K * K), jnp.float32) * (1.0 / math.sqrt(Z_DIM))
    h_b = jax.random.normal(k3, (K * K,), jnp.float32) * 0.01
    bias = jax.random.normal(k4, (Cout,), jnp.float32) * 0.01
    x = jax.random.normal(k5, (N, Cin, H, W), jnp.float32)

    fwd = jax.jit(functools.partial(binary_hyper_conv3x3,
                                    out_chs=Cout, in_chs=Cin, k=K))
    y = fwd(x, z, h_w, h_b, bias)
    y = jax.block_until_ready(y)
    assert y.shape == (N, Cout, H, W)

    # pure-JAX reference
    w_flat_ref = jnp.dot(z, jnp.sign(h_w)) + h_b + z
    w_ref = w_flat_ref.reshape(Cout, Cin, K, K)
    y_ref = lax.conv_general_dilated(
        jnp.sign(x), jnp.sign(w_ref), window_strides=(1, 1),
        padding=((1, 1), (1, 1)),
        dimension_numbers=("NCHW", "OIHW", "NCHW"),
    ) + bias[None, :, None, None]

    np.testing.assert_allclose(np.asarray(y), np.asarray(y_ref), rtol=1e-4, atol=1e-4)
    print("KERNEL_OK")
</pallas_src>

<mosaic_0001>
module attributes {stable_mosaic.version = 11 : i64} {
  func.func @_binconv3x3_kernel(%arg0: i32, %arg1: i32, %arg2: memref<1x18x18x4xbf16, #tpu.memory_space<vmem>>, %arg3: memref<36x4xbf16, #tpu.memory_space<vmem>>, %arg4: memref<1x4xf32, #tpu.memory_space<vmem>>, %arg5: memref<1x16x16x4xf32, #tpu.memory_space<vmem>>, %arg6: memref<256x36xbf16, #tpu.memory_space<vmem>>) attributes {dimension_semantics = [#tpu.dimension_semantics<parallel>, #tpu.dimension_semantics<parallel>], iteration_bounds = array<i64: 2, 1>, scalar_prefetch = 0 : i64, scratch_operands = 1 : i64, tpu.core_type = #tpu.core_type<tc>, window_params = [{transform_indices = @transform_0, window_bounds = array<i64: 1, 18, 18, 4>}, {pipeline_mode = #tpu.pipeline_mode<synchronous>, transform_indices = @transform_1, window_bounds = array<i64: 36, 4>}, {pipeline_mode = #tpu.pipeline_mode<synchronous>, transform_indices = @transform_2, window_bounds = array<i64: 1, 4>}, {transform_indices = @transform_3, window_bounds = array<i64: 1, 16, 16, 4>}]} {
    %c16_i32 = arith.constant 16 : i32
    %0 = arith.muli %arg1, %c16_i32 : i32
    %1 = tpu.assume_multiple %0, 16 : i32
    %c0_i32 = arith.constant 0 : i32
    %2 = arith.addi %1, %c0_i32 : i32
    %c0 = arith.constant 0 : index
    %3 = arith.index_cast %2 : i32 to index
    %c0_0 = arith.constant 0 : index
    %c0_1 = arith.constant 0 : index
    %4 = vector.load %arg2[%c0, %3, %c0_0, %c0_1] : memref<1x18x18x4xbf16, #tpu.memory_space<vmem>>, vector<1x16x16x4xbf16>
    %5 = vector.shape_cast %4 : vector<1x16x16x4xbf16> to vector<16x16x4xbf16>
    %6 = vector.shape_cast %5 : vector<16x16x4xbf16> to vector<256x4xbf16>
    %c0_2 = arith.constant 0 : index
    %c0_3 = arith.constant 0 : index
    %7 = vector.load %arg6[%c0_2, %c0_3] : memref<256x36xbf16, #tpu.memory_space<vmem>>, vector<256x4xbf16>
    tpu.vector_store %arg6[%c0_2, %c0_3], %6 {strides = array<i32>} : memref<256x36xbf16, #tpu.memory_space<vmem>>, vector<256x4xbf16>,
    %c0_i32_4 = arith.constant 0 : i32
    %8 = arith.addi %1, %c0_i32_4 : i32
    %c0_5 = arith.constant 0 : index
    %9 = arith.index_cast %8 : i32 to index
    %c1 = arith.constant 1 : index
    %c0_6 = arith.constant 0 : index
    %10 = vector.load %arg2[%c0_5, %9, %c1, %c0_6] : memref<1x18x18x4xbf16, #tpu.memory_space<vmem>>, vector<1x16x16x4xbf16>
    %11 = vector.shape_cast %10 : vector<1x16x16x4xbf16> to vector<16x16x4xbf16>
    %12 = vector.shape_cast %11 : vector<16x16x4xbf16> to vector<256x4xbf16>
    %c0_7 = arith.constant 0 : index
    %c4 = arith.constant 4 : index
    %13 = vector.load %arg6[%c0_7, %c4] : memref<256x36xbf16, #tpu.memory_space<vmem>>, vector<256x4xbf16>
    tpu.vector_store %arg6[%c0_7, %c4], %12 {strides = array<i32>} : memref<256x36xbf16, #tpu.memory_space<vmem>>, vector<256x4xbf16>,
    %c0_i32_8 = arith.constant 0 : i32
    %14 = arith.addi %1, %c0_i32_8 : i32
    %c0_9 = arith.constant 0 : index
    %15 = arith.index_cast %14 : i32 to index
    %c2 = arith.constant 2 : index
    %c0_10 = arith.constant 0 : index
    %16 = vector.load %arg2[%c0_9, %15, %c2, %c0_10] : memref<1x18x18x4xbf16, #tpu.memory_space<vmem>>, vector<1x16x16x4xbf16>
    %17 = vector.shape_cast %16 : vector<1x16x16x4xbf16> to vector<16x16x4xbf16>
    %18 = vector.shape_cast %17 : vector<16x16x4xbf16> to vector<256x4xbf16>
    %c0_11 = arith.constant 0 : index
    %c8 = arith.constant 8 : index
    %19 = vector.load %arg6[%c0_11, %c8] : memref<256x36xbf16, #tpu.memory_space<vmem>>, vector<256x4xbf16>
    tpu.vector_store %arg6[%c0_11, %c8], %18 {strides = array<i32>} : memref<256x36xbf16, #tpu.memory_space<vmem>>, vector<256x4xbf16>,
    %c1_i32 = arith.constant 1 : i32
    %20 = arith.addi %1, %c1_i32 : i32
    %c0_12 = arith.constant 0 : index
    %21 = arith.index_cast %20 : i32 to index
    %c0_13 = arith.constant 0 : index
    %c0_14 = arith.constant 0 : index
    %22 = vector.load %arg2[%c0_12, %21, %c0_13, %c0_14] : memref<1x18x18x4xbf16, #tpu.memory_space<vmem>>, vector<1x16x16x4xbf16>
    %23 = vector.shape_cast %22 : vector<1x16x16x4xbf16> to vector<16x16x4xbf16>
    %24 = vector.shape_cast %23 : vector<16x16x4xbf16> to vector<256x4xbf16>
    %c0_15 = arith.constant 0 : index
    %c12 = arith.constant 12 : index
    %25 = vector.load %arg6[%c0_15, %c12] : memref<256x36xbf16, #tpu.memory_space<vmem>>, vector<256x4xbf16>
    tpu.vector_store %arg6[%c0_15, %c12], %24 {strides = array<i32>} : memref<256x36xbf16, #tpu.memory_space<vmem>>, vector<256x4xbf16>,
    %c1_i32_16 = arith.constant 1 : i32
    %26 = arith.addi %1, %c1_i32_16 : i32
    %c0_17 = arith.constant 0 : index
    %27 = arith.index_cast %26 : i32 to index
    %c1_18 = arith.constant 1 : index
    %c0_19 = arith.constant 0 : index
    %28 = vector.load %arg2[%c0_17, %27, %c1_18, %c0_19] : memref<1x18x18x4xbf16, #tpu.memory_space<vmem>>, vector<1x16x16x4xbf16>
    %29 = vector.shape_cast %28 : vector<1x16x16x4xbf16> to vector<16x16x4xbf16>
    %30 = vector.shape_cast %29 : vector<16x16x4xbf16> to vector<256x4xbf16>
    %c0_20 = arith.constant 0 : index
    %c16 = arith.constant 16 : index
    %31 = vector.load %arg6[%c0_20, %c16] : memref<256x36xbf16, #tpu.memory_space<vmem>>, vector<256x4xbf16>
    tpu.vector_store %arg6[%c0_20, %c16], %30 {strides = array<i32>} : memref<256x36xbf16, #tpu.memory_space<vmem>>, vector<256x4xbf16>,
    %c1_i32_21 = arith.constant 1 : i32
    %32 = arith.addi %1, %c1_i32_21 : i32
    %c0_22 = arith.constant 0 : index
    %33 = arith.index_cast %32 : i32 to index
    %c2_23 = arith.constant 2 : index
    %c0_24 = arith.constant 0 : index
    %34 = vector.load %arg2[%c0_22, %33, %c2_23, %c0_24] : memref<1x18x18x4xbf16, #tpu.memory_space<vmem>>, vector<1x16x16x4xbf16>
    %35 = vector.shape_cast %34 : vector<1x16x16x4xbf16> to vector<16x16x4xbf16>
    %36 = vector.shape_cast %35 : vector<16x16x4xbf16> to vector<256x4xbf16>
    %c0_25 = arith.constant 0 : index
    %c20 = arith.constant 20 : index
    %37 = vector.load %arg6[%c0_25, %c20] : memref<256x36xbf16, #tpu.memory_space<vmem>>, vector<256x4xbf16>
    tpu.vector_store %arg6[%c0_25, %c20], %36 {strides = array<i32>} : memref<256x36xbf16, #tpu.memory_space<vmem>>, vector<256x4xbf16>,
    %c2_i32 = arith.constant 2 : i32
    %38 = arith.addi %1, %c2_i32 : i32
    %c0_26 = arith.constant 0 : index
    %39 = arith.index_cast %38 : i32 to index
    %c0_27 = arith.constant 0 : index
    %c0_28 = arith.constant 0 : index
    %40 = vector.load %arg2[%c0_26, %39, %c0_27, %c0_28] : memref<1x18x18x4xbf16, #tpu.memory_space<vmem>>, vector<1x16x16x4xbf16>
    %41 = vector.shape_cast %40 : vector<1x16x16x4xbf16> to vector<16x16x4xbf16>
    %42 = vector.shape_cast %41 : vector<16x16x4xbf16> to vector<256x4xbf16>
    %c0_29 = arith.constant 0 : index
    %c24 = arith.constant 24 : index
    %43 = vector.load %arg6[%c0_29, %c24] : memref<256x36xbf16, #tpu.memory_space<vmem>>, vector<256x4xbf16>
    tpu.vector_store %arg6[%c0_29, %c24], %42 {strides = array<i32>} : memref<256x36xbf16, #tpu.memory_space<vmem>>, vector<256x4xbf16>,
    %c2_i32_30 = arith.constant 2 : i32
    %44 = arith.addi %1, %c2_i32_30 : i32
    %c0_31 = arith.constant 0 : index
    %45 = arith.index_cast %44 : i32 to index
    %c1_32 = arith.constant 1 : index
    %c0_33 = arith.constant 0 : index
    %46 = vector.load %arg2[%c0_31, %45, %c1_32, %c0_33] : memref<1x18x18x4xbf16, #tpu.memory_space<vmem>>, vector<1x16x16x4xbf16>
    %47 = vector.shape_cast %46 : vector<1x16x16x4xbf16> to vector<16x16x4xbf16>
    %48 = vector.shape_cast %47 : vector<16x16x4xbf16> to vector<256x4xbf16>
    %c0_34 = arith.constant 0 : index
    %c28 = arith.constant 28 : index
    %49 = vector.load %arg6[%c0_34, %c28] : memref<256x36xbf16, #tpu.memory_space<vmem>>, vector<256x4xbf16>
    tpu.vector_store %arg6[%c0_34, %c28], %48 {strides = array<i32>} : memref<256x36xbf16, #tpu.memory_space<vmem>>, vector<256x4xbf16>,
    %c2_i32_35 = arith.constant 2 : i32
    %50 = arith.addi %1, %c2_i32_35 : i32
    %c0_36 = arith.constant 0 : index
    %51 = arith.index_cast %50 : i32 to index
    %c2_37 = arith.constant 2 : index
    %c0_38 = arith.constant 0 : index
    %52 = vector.load %arg2[%c0_36, %51, %c2_37, %c0_38] : memref<1x18x18x4xbf16, #tpu.memory_space<vmem>>, vector<1x16x16x4xbf16>
    %53 = vector.shape_cast %52 : vector<1x16x16x4xbf16> to vector<16x16x4xbf16>
    %54 = vector.shape_cast %53 : vector<16x16x4xbf16> to vector<256x4xbf16>
    %c0_39 = arith.constant 0 : index
    %c32 = arith.constant 32 : index
    %55 = vector.load %arg6[%c0_39, %c32] : memref<256x36xbf16, #tpu.memory_space<vmem>>, vector<256x4xbf16>
    tpu.vector_store %arg6[%c0_39, %c32], %54 {strides = array<i32>} : memref<256x36xbf16, #tpu.memory_space<vmem>>, vector<256x4xbf16>,
    %c0_40 = arith.constant 0 : index
    %c0_41 = arith.constant 0 : index
    %56 = vector.load %arg6[%c0_40, %c0_41] : memref<256x36xbf16, #tpu.memory_space<vmem>>, vector<256x36xbf16>
    %c0_42 = arith.constant 0 : index
    %c0_43 = arith.constant 0 : index
    %57 = vector.load %arg3[%c0_42, %c0_43] : memref<36x4xbf16, #tpu.memory_space<vmem>>, vector<36x4xbf16>
    %cst = arith.constant dense<0.000000e+00> : vector<256x4xf32>
    %58 = tpu.matmul %56, %57, %cst {dimension_numbers = #tpu.dot_dimension_numbers<[1], [0], [0], [1], [0, 0, 1, 1], [], []>} : vector<256x36xbf16>, vector<36x4xbf16>, vector<256x4xf32> -> vector<256x4xf32>
    %c0_44 = arith.constant 0 : index
    %c0_45 = arith.constant 0 : index
    %59 = vector.load %arg4[%c0_44, %c0_45] : memref<1x4xf32, #tpu.memory_space<vmem>>, vector<1x4xf32>
    %60 = vector.broadcast %59 : vector<1x4xf32> to vector<256x4xf32>
    %61 = arith.addf %58, %60 : vector<256x4xf32>
    %62 = vector.shape_cast %61 : vector<256x4xf32> to vector<16x16x4xf32>
    %c0_46 = arith.constant 0 : index
    %c0_47 = arith.constant 0 : index
    %c0_48 = arith.constant 0 : index
    %c0_49 = arith.constant 0 : index
    %63 = vector.load %arg5[%c0_46, %c0_47, %c0_48, %c0_49] : memref<1x16x16x4xf32, #tpu.memory_space<vmem>>, vector<1x16x16x4xf32>
    %64 = vector.shape_cast %63 : vector<1x16x16x4xf32> to vector<16x16x4xf32>
    %65 = vector.shape_cast %62 : vector<16x16x4xf32> to vector<1x16x16x4xf32>
    tpu.vector_store %arg5[%c0_46, %c0_47, %c0_48, %c0_49], %65 {strides = array<i32>} : memref<1x16x16x4xf32, #tpu.memory_space<vmem>>, vector<1x16x16x4xf32>,
    return
  }
  func.func @transform_0(%arg0: i32, %arg1: i32) -> (i32, i32, i32, i32) {
    %c0_i32 = arith.constant 0 : i32
    %c0_i32_0 = arith.constant 0 : i32
    %c0_i32_1 = arith.constant 0 : i32
    %c0_i32_2 = arith.constant 0 : i32
    return %arg0, %c0_i32, %c0_i32_0, %c0_i32_1 : i32, i32, i32, i32
  }
  func.func @transform_1(%arg0: i32, %arg1: i32) -> (i32, i32) {
    %c0_i32 = arith.constant 0 : i32
    %c0_i32_0 = arith.constant 0 : i32
    %c0_i32_1 = arith.constant 0 : i32
    return %c0_i32, %c0_i32_0 : i32, i32
  }
  func.func @transform_2(%arg0: i32, %arg1: i32) -> (i32, i32) {
    %c0_i32 = arith.constant 0 : i32
    %c0_i32_0 = arith.constant 0 : i32
    %c0_i32_1 = arith.constant 0 : i32
    return %c0_i32, %c0_i32_0 : i32, i32
  }
  func.func @transform_3(%arg0: i32, %arg1: i32) -> (i32, i32, i32, i32) {
    %c0_i32 = arith.constant 0 : i32
    %c0_i32_0 = arith.constant 0 : i32
    %c0_i32_1 = arith.constant 0 : i32
    return %arg0, %arg1, %c0_i32, %c0_i32_0 : i32, i32, i32, i32
  }
}

</mosaic_0001>

<bundles_post_ra>
// kernel: binary_hyper_conv3x3.1
= control target key start
LH: loop header
LB: loop body
LE: loop exit
PB: predicated region body
PF: predicated region fallthrough
CT: control target
= control target key end

     0   :  { %s4378_s12 = smov 0   ;;  %s4380_s13 = smov 0   ;;  %s5617_s0 = inlined_call_operand.vmem [shape: bf16[2,18,18,4], index: 0, kind: input, shape index: {}]   ;;  %s5618_s1 = inlined_call_operand.vmem [shape: bf16[36,4], index: 1, kind: input, shape index: {}]   ;;  %s5619_s2 = inlined_call_operand.vmem [shape: f32[1,4], index: 2, kind: input, shape index: {}]   ;;  %s5620_s3 = inlined_call_operand.vmem [shape: f32[2,16,16,4], index: 3, kind: output, shape index: {}]  }
   0x1   :  { %s4382_s14 = smov 0  }
   0x2 LB: > { %s25_s15 = sadd.s32 1, %s4344_s13  ;;  %p3702_p0 = scmp.ge.s32.totalorder %s4348_s14, 1  ;;  %s4348_s14 = sphi %s4382_s14, %s13_s14   ;;  %s4344_s13 = sphi %s4380_s13, %s5626_s13   ;;  %s4340_s12 = sphi %s4378_s12, %s5625_s12  }
   0x3   : > { %p27_p1 = scmp.ge.s32.totalorder %s25_s15, 2  ;;  %p151_p2 = scmp.lt.s32.totalorder %s4348_s14, 3 }
   0x5   : > { %s5628_s15 = smov (%p27_p1, %s25_s15), 0  ;;  %p152_p3 = pnand %p3702_p0, %p151_p2 }
   0x6   : > { %p180_p4 = scmp.lt.s32.totalorder (!%p152_p3), %s4340_s12, 1  ;;  %vm990_vm0 = vcmask (!%p152_p3), 1042432   ;;  %vm991_vm1 = vcmask (!%p152_p3), 1046532   ;;  %s4350_s20 = smov (!%p152_p3), 12   ;;  %vm394_vm3 = vsmask.f32 (!%p152_p3), 3328 }
   0x7   : > { %155 = sbr.rel (%p152_p3) target bundleno = 659 (0x293), region = 32  ;;  %vm4404_vm2 = vmor (!%p152_p3), %vm990_vm0, %vm991_vm1  ;;  %vm395_vm4 = vsmask.f32 (!%p152_p3), 7440  ;;  %s4351_s21 = smov (!%p152_p3), 8   ;;  %vm329_vm6 = vcmask (!%p152_p3), 31744   ;;  %vm877_vm7 = vcmask (!%p152_p3), 64544  }
   0x8   : > { %vm4454_vm5 = vmor (!%p152_p3), %vm394_vm3, %vm395_vm4  ;;  %s4352_s22 = smov (!%p152_p3), 4   ;;  %s4353_s23 = smov (!%p152_p3), 16   ;;  %vm1201_vm8 = vcmask (!%p152_p3), 97344   ;;  %vm1382_vm9 = vcmask (!%p152_p3), 130144   ;;  %vm1927_vm10 = vcmask (!%p152_p3), 162944   ;;  %vm2248_vm11 = vcmask (!%p152_p3), 195744  }
   0x9   : > { %s4354_s24 = smov (!%p152_p3), 20   ;;  %s4355_s25 = smov (!%p152_p3), 24   ;;  %vm2429_vm12 = vcmask (!%p152_p3), 228544   ;;  %vm2974_vm13 = vcmask (!%p152_p3), 261344   ;;  %vm3295_vm14 = vcmask (!%p152_p3), 294144   ;;  %vm3355_vm15 = vcmask (!%p152_p3), 293888  }
   0xa   : > { %s4356_s26 = smov (!%p152_p3), 28   ;;  %s4357_s27 = smov (!%p152_p3), 32   ;;  %vm3404_vm0 = vcmask (!%p152_p3), 1041408  }
   0xe   : > { %s5630_s12 = smov (!%p180_p4, %s4340_s12), 1 }
   0xf   : > { %s4242_s16 = smul.u32 216, %s5630_s12  ;;  %s4176_s7 = sshll.u32 %s5630_s12, 8 }
  0x11   : > { %s4402_s19 = scalar_lea.vmem %s5617_s0, %s4242_s16  ;;  %s5510_s16 = scalar_lea.vmem %s5620_s3, %s4176_s7 }
  0x12   : > { %v4275_v1 = vld [vmem:[%s4402_s19 + $0x6c] sm:$0xff]   ;;  %v918_v3 = vld [vmem:[%s4402_s19 + $0x60] sm:$0xe]  ;;  %v919_v4 = vld [vmem:[%s4402_s19 + $0x64] sm:$0xf] }
  0x13   : > { %v4276_v2 = vld [vmem:[%s4402_s19 + $0xc] sm:$0xff]   ;;  %1350 = vrot.lane.b32.xlu1 %v4275_v1, %s4350_s20  ;;  %v920_v5 = vld [vmem:[%s4402_s19 + $0x68] sm:$0x1]  ;;  %v3746_v6 = vrot.slane %v918_v3, 9  ;;  %v1051_v7 = vrot.slane %v919_v4, 5 }
  0x14   : > { %1334 = vrot.lane.b32.xlu0 %v4276_v2, %s4350_s20  ;;  %v1054_v8 = vrot.slane %v920_v5, 5  ;;  %v894_v9 = vld [vmem:[%s4402_s19] sm:$0xe]  ;;  %v895_v10 = vld [vmem:[%s4402_s19 + $0x4] sm:$0xf] }
  0x15   : > { %v896_v11 = vld [vmem:[%s4402_s19 + $0x8] sm:$0x1]  ;;  %v3738_v12 = vrot.slane %v894_v9, 9  ;;  %v1052_v13 = vsel %vm4404_vm2, %v3746_v6, %v1051_v7  ;;  %v1053_v14 = vrot.slane %v1051_v7, 4  ;;  %v995_v15 = vrot.slane %v895_v10, 5 }
  0x16   : > { %v998_v16 = vrot.slane %v896_v11, 5  ;;  %v921_v17 = vld [vmem:[%s4402_s19 + $0x6c] sm:$0xe]  ;;  %v922_v18 = vld [vmem:[%s4402_s19 + $0x70] sm:$0xf] }
  0x17   : > { %v923_v19 = vld [vmem:[%s4402_s19 + $0x74] sm:$0x1]  ;;  %v3747_v20 = vrot.slane %v921_v17, 9  ;;  %v1055_v21 = vsel %vm4404_vm2, %v1053_v14, %v1054_v8  ;;  %v996_v22 = vsel %vm4404_vm2, %v3738_v12, %v995_v15  ;;  %v997_v23 = vrot.slane %v995_v15, 4  ;;  %v897_v25 = vld [vmem:[%s4402_s19 + $0xc] sm:$0xe] }
  0x18   : > { %v1058_v24 = vrot.slane %v922_v18, 5  ;;  %v898_v26 = vld [vmem:[%s4402_s19 + $0x10] sm:$0xf]  ;;  %v3762_v27 = vcombine.low %v1052_v13, %v1055_v21  ;;  %v1061_v28 = vrot.slane %v923_v19, 5  ;;  %v899_v29 = vld [vmem:[%s4402_s19 + $0x14] sm:$0x1] }
  0x19   : > { %v3739_v30 = vrot.slane %v897_v25, 9  ;;  %v1002_v31 = vrot.slane %v898_v26, 5  ;;  %v999_v32 = vsel %vm4404_vm2, %v997_v23, %v998_v16  ;;  %v1005_v35 = vrot.slane %v899_v29, 5  ;;  %v349_v36 = vld [vmem:[%s4402_s19 + $0xc] sm:$0xf] }
  0x1a   : > { %v1059_v33 = vsel %vm4404_vm2, %v3747_v20, %v1058_v24  ;;  %v1060_v34 = vrot.slane %v1058_v24, 4  ;;  %v350_v37 = vld [vmem:[%s4402_s19 + $0x10] sm:$0xf]  ;;  %1169 = vrot.lane.b32.xlu1 %v3762_v27, %s4351_s21  ;;  %v3754_v38 = vcombine.low %v996_v22, %v999_v32  ;;  %v351_v41 = vld [vmem:[%s4402_s19 + $0x14] sm:$0x1]  ;;  %v422_v42 = vshrl.u32 %v349_v36, 16 }
  0x1b   : > { %v1003_v39 = vsel %vm4404_vm2, %v3739_v30, %v1002_v31  ;;  %v1004_v40 = vrot.slane %v1002_v31, 4  ;;  %v346_v43 = vld [vmem:[%s4402_s19] sm:$0xf]  ;;  %v425_v45 = vshll.u32 %v349_v36, 16  ;;  %v431_v46 = vshll.u32 %v350_v37, 16 }
  0x1c   : > { %v1062_v44 = vsel %vm4404_vm2, %v1060_v34, %v1061_v28  ;;  %v435_v47 = vshrl.u32 %v350_v37, 16  ;;  %v347_v48 = vld [vmem:[%s4402_s19 + $0x4] sm:$0xf]  ;;  %1153 = vrot.lane.b32.xlu0 %v3754_v38, %s4351_s21  ;;  %v424_v51 = vrot.slane %v422_v42, 4  ;;  %v441_v52 = vshll.u32 %v351_v41, 16 }
  0x1d   : > { %v3763_v49 = vcombine.low %v1059_v33, %v1062_v44  ;;  %v1006_v50 = vsel %vm4404_vm2, %v1004_v40, %v1005_v35  ;;  %v348_v53 = vld [vmem:[%s4402_s19 + $0x8] sm:$0x1]  ;;  %v427_v55 = vrot.slane %v425_v45, 5  ;;  %v433_v56 = vrot.slane %v431_v46, 5  ;;  %v373_v58 = vld [vmem:[%s4402_s19 + $0x6c] sm:$0xf] }
  0x1e   : > { %v3755_v54 = vcombine.low %v1003_v39, %v1006_v50  ;;  %v437_v57 = vrot.slane %v435_v47, 4  ;;  %v443_v59 = vrot.slane %v441_v52, 5  ;;  %v398_v60 = vshrl.u32 %v346_v43, 16  ;;  %v374_v4 = vld [vmem:[%s4402_s19 + $0x70] sm:$0xf] }
  0x1f   : > { %1171 = vrot.lane.b32.xlu1 %v3763_v49, %s4351_s21  ;;  %v401_v61 = vshll.u32 %v346_v43, 16  ;;  %v407_v62 = vshll.u32 %v347_v48, 16  ;;  %v428_v63 = vor.u32 %v427_v55, %v424_v51  ;;  %v411_v2 = vshrl.u32 %v347_v48, 16  ;;  %v375_v9 = vld [vmem:[%s4402_s19 + $0x74] sm:$0x1] }
  0x20   : > { %v438_v1 = vor.u32 %v437_v57, %v433_v56  ;;  %v417_v3 = vshll.u32 %v348_v53, 16  ;;  %1155 = vrot.lane.b32.xlu0 %v3755_v54, %s4351_s21  ;;  %v400_v6 = vrot.slane %v398_v60, 4  ;;  %v614_v10 = vshrl.u32 %v373_v58, 16  ;;  %v370_v11 = vld [vmem:[%s4402_s19 + $0x60] sm:$0xf] }
  0x21   : > { %v403_v7 = vrot.slane %v401_v61, 5  ;;  %v409_v8 = vrot.slane %v407_v62, 5  ;;  %v429_v12 = vrot.slane %v428_v63, 4  ;;  %v413_v14 = vrot.slane %v411_v2, 4  ;;  %v371_v16 = vld [vmem:[%s4402_s19 + $0x64] sm:$0xf] }
  0x22   : > { %v439_v13 = vrot.slane %v438_v1, 4  ;;  %v419_v15 = vrot.slane %v417_v3, 5  ;;  %v616_v18 = vrot.slane %v614_v10, 4  ;;  %v617_v19 = vshll.u32 %v373_v58, 16  ;;  %v372_v35 = vld [vmem:[%s4402_s19 + $0x68] sm:$0x1] }
  0x23   : > { %v404_v17 = vor.u32 %v403_v7, %v400_v6  ;;  %v623_v20 = vshll.u32 %v374_v4, 16  ;;  %v434_v21 = vsel %vm4454_vm5, %v429_v12, %v433_v56  ;;  %v414_v23 = vor.u32 %v413_v14, %v409_v8  ;;  %v3842_v38 = vld [vmem:[%s4402_s19 + $0x6c] sm:$0xf]  ;;  %v3843_v43 = vld [vmem:[%s4402_s19 + $0x70] sm:$0xf]  ;;  %v4277_v6 = vld [vmem:[%s4402_s19 + $0x78] sm:$0xff]  }
  0x24   : > { %v444_v22 = vsel %vm4454_vm5, %v439_v13, %v443_v59  ;;  %v627_v24 = vshrl.u32 %v374_v4, 16  ;;  %v619_v27 = vrot.slane %v617_v19, 5  ;;  %v633_v31 = vshll.u32 %v375_v9, 16  ;;  %v3844_v54 = vld [vmem:[%s4402_s19 + $0x74] sm:$0x1] }
  0x25   : > { %v3723_v25 = vcombine.low %v434_v21, %v444_v22  ;;  %v405_v26 = vrot.slane %v404_v17, 4  ;;  %v625_v28 = vrot.slane %v623_v20, 5  ;;  %v415_v29 = vrot.slane %v414_v23, 4  ;;  %v3818_v57 = vld [vmem:[%s4402_s19 + $0xc] sm:$0xf] }
  0x26   : > { %v629_v30 = vrot.slane %v627_v24, 4  ;;  %v590_v32 = vshrl.u32 %v370_v11, 16  ;;  %v620_v34 = vor.u32 %v619_v27, %v616_v18  ;;  %v593_v36 = vshll.u32 %v370_v11, 16  ;;  %v3819_v62 = vld [vmem:[%s4402_s19 + $0x10] sm:$0xf] }
  0x27   : > { %831 = vrot.lane.b32.xlu1 %v3723_v25, %s4352_s22  ;;  %v410_v33 = vsel %vm4454_vm5, %v405_v26, %v409_v8  ;;  %v599_v37 = vshll.u32 %v371_v16, 16  ;;  %v420_v39 = vsel %vm4454_vm5, %v415_v29, %v419_v15  ;;  %v635_v41 = vrot.slane %v633_v31, 5  ;;  %v3820_v12 = vld [vmem:[%s4402_s19 + $0x14] sm:$0x1]  ;;  %v3845_v15 = vld [vmem:[%s4402_s19 + $0x78] sm:$0xf] }
  0x28   : > { %v630_v40 = vor.u32 %v629_v30, %v625_v28  ;;  %v592_v42 = vrot.slane %v590_v32, 4  ;;  %v3722_v44 = vcombine.low %v410_v33, %v420_v39  ;;  %v621_v45 = vrot.slane %v620_v34, 4  ;;  %v3846_v27 = vld [vmem:[%s4402_s19 + $0x7c] sm:$0xf]  ;;  %v3847_v33 = vld [vmem:[%s4402_s19 + $0x80] sm:$0x1] }
  0x29   : > { %v595_v46 = vrot.slane %v593_v36, 5  ;;  %v601_v47 = vrot.slane %v599_v37, 5  ;;  %v603_v49 = vshrl.u32 %v371_v16, 16  ;;  %v609_v50 = vshll.u32 %v372_v35, 16  ;;  %v3821_v34 = vld [vmem:[%s4402_s19 + $0x18] sm:$0xf] }
  0x2a   : > { %v631_v48 = vrot.slane %v630_v40, 4  ;;  %v1640_v51 = vshrl.u32 %v3842_v38, 16  ;;  %829 = vrot.lane.b32.xlu0 %v3722_v44, %s4352_s22  ;;  %v626_v52 = vsel %vm4454_vm5, %v621_v45, %v625_v28  ;;  %v1643_v55 = vshll.u32 %v3842_v38, 16  ;;  %v3822_v39 = vld [vmem:[%s4402_s19 + $0x1c] sm:$0xf] }
  0x2b   : > { %v596_v53 = vor.u32 %v595_v46, %v592_v42  ;;  %v1649_v56 = vshll.u32 %v3843_v43, 16  ;;  %v605_v59 = vrot.slane %v603_v49, 4  ;;  %v611_v60 = vrot.slane %v609_v50, 5  ;;  %v4278_v40 = vld [vmem:[%s4402_s19 + $0x18] sm:$0xff]   ;;  %v3823_v45 = vld [vmem:[%s4402_s19 + $0x20] sm:$0x1] }
  0x2c   : > { %v636_v58 = vsel %vm4454_vm5, %v631_v48, %v635_v41  ;;  %v1642_v61 = vrot.slane %v1640_v51, 4  ;;  %v1645_v2 = vrot.slane %v1643_v55, 5  ;;  %v1653_v7 = vshrl.u32 %v3843_v43, 16  ;;  %v3906_v50 = vld [vmem:[%s4402_s19 + $0x6c] sm:$0xe] }
  0x2d   : > { %v3731_v63 = vcombine.low %v626_v52, %v636_v58  ;;  %v597_v1 = vrot.slane %v596_v53, 4  ;;  %v1651_v3 = vrot.slane %v1649_v56, 5  ;;  %v606_v4 = vor.u32 %v605_v59, %v601_v47  ;;  %v3907_v55 = vld [vmem:[%s4402_s19 + $0x70] sm:$0xf] }
  0x2e   : > { %v1659_v8 = vshll.u32 %v3844_v54, 16  ;;  %v1448_v9 = vshrl.u32 %v3818_v57, 16  ;;  %v1646_v11 = vor.u32 %v1645_v2, %v1642_v61  ;;  %v1451_v13 = vshll.u32 %v3818_v57, 16  ;;  %v3882_v61 = vld [vmem:[%s4402_s19 + $0xc] sm:$0xe] }
  0x2f   : > { %847 = vrot.lane.b32.xlu1 %v3731_v63, %s4352_s22  ;;  %v602_v10 = vsel %vm4454_vm5, %v597_v1, %v601_v47  ;;  %v1457_v14 = vshll.u32 %v3819_v62, 16  ;;  %v607_v16 = vrot.slane %v606_v4, 4  ;;  %v1655_v17 = vrot.slane %v1653_v7, 4 }
  0x30   : > { %v1661_v18 = vrot.slane %v1659_v8, 5  ;;  %v1450_v19 = vrot.slane %v1448_v9, 4  ;;  %v1647_v20 = vrot.slane %v1646_v11, 4  ;;  %v1453_v21 = vrot.slane %v1451_v13, 5  ;;  %v3884_v9 = vld [vmem:[%s4402_s19 + $0x14] sm:$0x1] }
  0x31   : > { %v1459_v22 = vrot.slane %v1457_v14, 5  ;;  %v1461_v23 = vshrl.u32 %v3819_v62, 16  ;;  %v612_v24 = vsel %vm4454_vm5, %v607_v16, %v611_v60  ;;  %v1656_v25 = vor.u32 %v1655_v17, %v1651_v3  ;;  %v3908_v60 = vld [vmem:[%s4402_s19 + $0x74] sm:$0x1] }
  0x32   : > { %v1467_v26 = vshll.u32 %v3820_v12, 16  ;;  %v1664_v28 = vshrl.u32 %v3845_v15, 16  ;;  %v3730_v29 = vcombine.low %v602_v10, %v612_v24  ;;  %v1652_v30 = vsel %vm4454_vm5, %v1647_v20, %v1651_v3  ;;  %v3883_v3 = vld [vmem:[%s4402_s19 + $0x10] sm:$0xf] }
  0x33   : > { %1352 = vrot.lane.b32.xlu1 %v4277_v6, %s4350_s20  ;;  %v1454_v31 = vor.u32 %v1453_v21, %v1450_v19  ;;  %v1463_v32 = vrot.slane %v1461_v23, 4  ;;  %v1657_v35 = vrot.slane %v1656_v25, 4  ;;  %v1667_v38 = vshll.u32 %v3845_v15, 16 }
  0x34   : > { %v1469_v36 = vrot.slane %v1467_v26, 5  ;;  %v1666_v37 = vrot.slane %v1664_v28, 4  ;;  %845 = vrot.lane.b32.xlu0 %v3730_v29, %s4352_s22  ;;  %v1673_v43 = vshll.u32 %v3846_v27, 16  ;;  %v1677_v44 = vshrl.u32 %v3846_v27, 16  ;;  %v3910_v27 = vld [vmem:[%s4402_s19 + $0x7c] sm:$0xf] }
  0x35   : > { %v1455_v41 = vrot.slane %v1454_v31, 4  ;;  %v1464_v42 = vor.u32 %v1463_v32, %v1459_v22  ;;  %v1662_v46 = vsel %vm4454_vm5, %v1657_v35, %v1661_v18  ;;  %v1669_v47 = vrot.slane %v1667_v38, 5  ;;  %v3911_v28 = vld [vmem:[%s4402_s19 + $0x80] sm:$0x1]  ;;  %v3886_v38 = vld [vmem:[%s4402_s19 + $0x1c] sm:$0xf] }
  0x36   : > { %v1683_v48 = vshll.u32 %v3847_v33, 16  ;;  %v1472_v49 = vshrl.u32 %v3821_v34, 16  ;;  %v3874_v51 = vcombine.low %v1652_v30, %v1662_v46  ;;  %v1675_v54 = vrot.slane %v1673_v43, 5  ;;  %v3885_v33 = vld [vmem:[%s4402_s19 + $0x18] sm:$0xe] }
  0x37   : > { %v1460_v52 = vsel %vm4454_vm5, %v1455_v41, %v1459_v22  ;;  %v1465_v53 = vrot.slane %v1464_v42, 4  ;;  %v1670_v56 = vor.u32 %v1669_v47, %v1666_v37  ;;  %v1679_v57 = vrot.slane %v1677_v44, 4  ;;  %v3909_v22 = vld [vmem:[%s4402_s19 + $0x78] sm:$0xe] }
  0x38   : > { %v1685_v58 = vrot.slane %v1683_v48, 5  ;;  %v1474_v59 = vrot.slane %v1472_v49, 4  ;;  %1336 = vrot.lane.b32.xlu0 %v4278_v40, %s4350_s20  ;;  %1895 = vrot.lane.b32.xlu1 %v3874_v51, %s4353_s23  ;;  %v1475_v63 = vshll.u32 %v3821_v34, 16  ;;  %v1481_v1 = vshll.u32 %v3822_v39, 16  ;;  %v4034_v44 = vld [vmem:[%s4402_s19 + $0x78] sm:$0xf] }
  0x39   : > { %v1470_v62 = vsel %vm4454_vm5, %v1465_v53, %v1469_v36  ;;  %v1485_v2 = vshrl.u32 %v3822_v39, 16  ;;  %v1671_v6 = vrot.slane %v1670_v56, 4  ;;  %v1680_v7 = vor.u32 %v1679_v57, %v1675_v54  ;;  %v3887_v39 = vld [vmem:[%s4402_s19 + $0x20] sm:$0x1] }
  0x3a   : > { %v3866_v4 = vcombine.low %v1460_v52, %v1470_v62  ;;  %v1491_v8 = vshll.u32 %v3823_v45, 16  ;;  %v1477_v10 = vrot.slane %v1475_v63, 5  ;;  %v1483_v11 = vrot.slane %v1481_v1, 5  ;;  %v4035_v45 = vld [vmem:[%s4402_s19 + $0x7c] sm:$0xf] }
  0x3b   : > { %v1487_v12 = vrot.slane %v1485_v2, 4  ;;  %v3938_v13 = vrot.slane %v3906_v50, 9  ;;  %v1676_v14 = vsel %vm4454_vm5, %v1671_v6, %v1675_v54  ;;  %v1681_v15 = vrot.slane %v1680_v7, 4  ;;  %v4036_v54 = vld [vmem:[%s4402_s19 + $0x80] sm:$0x1] }
  0x3c   : > { %v1493_v16 = vrot.slane %v1491_v8, 5  ;;  %v2098_v17 = vrot.slane %v3907_v55, 5  ;;  %1879 = vrot.lane.b32.xlu0 %v3866_v4, %s4353_s23  ;;  %v1478_v18 = vor.u32 %v1477_v10, %v1474_v59  ;;  %v2101_v20 = vrot.slane %v3908_v60, 5  ;;  %v4010_v59 = vld [vmem:[%s4402_s19 + $0x18] sm:$0xf] }
  0x3d   : > { %v1488_v19 = vor.u32 %v1487_v12, %v1483_v11  ;;  %v3930_v21 = vrot.slane %v3882_v61, 9  ;;  %v1686_v23 = vsel %vm4454_vm5, %v1681_v15, %v1685_v58  ;;  %v2042_v26 = vrot.slane %v3883_v3, 5  ;;  %v4011_v1 = vld [vmem:[%s4402_s19 + $0x1c] sm:$0xf]  ;;  %v4012_v10 = vld [vmem:[%s4402_s19 + $0x20] sm:$0x1] }
  0x3e   : > { %v2099_v24 = vsel %vm4404_vm2, %v3938_v13, %v2098_v17  ;;  %v2100_v25 = vrot.slane %v2098_v17, 4  ;;  %v3875_v29 = vcombine.low %v1676_v14, %v1686_v23  ;;  %v1479_v30 = vrot.slane %v1478_v18, 4  ;;  %v4279_v17 = vld [vmem:[%s4402_s19 + $0x78] sm:$0xff]  }
  0x3f   : > { %v1489_v31 = vrot.slane %v1488_v19, 4  ;;  %v2045_v32 = vrot.slane %v3884_v9, 5  ;;  %v2043_v35 = vsel %vm4404_vm2, %v3930_v21, %v2042_v26  ;;  %v2044_v36 = vrot.slane %v2042_v26, 4 }
  0x40   : > { %v2102_v34 = vsel %vm4404_vm2, %v2100_v25, %v2101_v20  ;;  %v3939_v37 = vrot.slane %v3909_v22, 9  ;;  %1897 = vrot.lane.b32.xlu1 %v3875_v29, %s4353_s23  ;;  %v1484_v40 = vsel %vm4454_vm5, %v1479_v30, %v1483_v11  ;;  %v2105_v43 = vrot.slane %v3910_v27, 5  ;;  %v4038_v22 = vld [vmem:[%s4402_s19 + $0x88] sm:$0xf]  ;;  %v4280_v27 = vld [vmem:[%s4402_s19 + $0x18] sm:$0xff]  }
  0x41   : > { %v1494_v41 = vsel %vm4454_vm5, %v1489_v31, %v1493_v16  ;;  %v3954_v42 = vcombine.low %v2099_v24, %v2102_v34  ;;  %v2046_v47 = vsel %vm4404_vm2, %v2044_v36, %v2045_v32  ;;  %v2108_v48 = vrot.slane %v3911_v28, 5  ;;  %v4037_v16 = vld [vmem:[%s4402_s19 + $0x84] sm:$0xf] }
  0x42   : > { %v3867_v46 = vcombine.low %v1484_v40, %v1494_v41  ;;  %v3931_v49 = vrot.slane %v3885_v33, 9  ;;  %v3946_v50 = vcombine.low %v2043_v35, %v2046_v47  ;;  %v2106_v51 = vsel %vm4404_vm2, %v3939_v37, %v2105_v43  ;;  %v4039_v35 = vld [vmem:[%s4402_s19 + $0x8c] sm:$0x1]  ;;  %v4013_v37 = vld [vmem:[%s4402_s19 + $0x24] sm:$0xf] }
  0x43   : > { %v2107_v52 = vrot.slane %v2105_v43, 4  ;;  %v2049_v53 = vrot.slane %v3886_v38, 5  ;;  %v2052_v55 = vrot.slane %v3887_v39, 5  ;;  %v2687_v56 = vshrl.u32 %v4034_v44, 16  ;;  %v4281_v38 = vld [vmem:[%s4402_s19 + $0x84] sm:$0xff]  }
  0x44   : > { %1881 = vrot.lane.b32.xlu0 %v3867_v46, %s4353_s23  ;;  %v2690_v57 = vshll.u32 %v4034_v44, 16  ;;  %v2696_v58 = vshll.u32 %v4035_v45, 16  ;;  %2216 = vrot.lane.b32.xlu1 %v3954_v42, %s4354_s24  ;;  %v2700_v63 = vshrl.u32 %v4035_v45, 16  ;;  %v2706_v9 = vshll.u32 %v4036_v54, 16  ;;  %v4014_v43 = vld [vmem:[%s4402_s19 + $0x28] sm:$0xf] }
  0x45   : > { %v2109_v60 = vsel %vm4404_vm2, %v2107_v52, %v2108_v48  ;;  %v2050_v61 = vsel %vm4404_vm2, %v3931_v49, %v2049_v53  ;;  %v2051_v62 = vrot.slane %v2049_v53, 4  ;;  %v2689_v3 = vrot.slane %v2687_v56, 4  ;;  %v4015_v48 = vld [vmem:[%s4402_s19 + $0x2c] sm:$0x1]  ;;  %v4098_v53 = vld [vmem:[%s4402_s19 + $0x78] sm:$0xe] }
  0x46   : > { %v3955_v2 = vcombine.low %v2106_v51, %v2109_v60  ;;  %v2692_v4 = vrot.slane %v2690_v57, 5  ;;  %v2698_v6 = vrot.slane %v2696_v58, 5  ;;  %v2702_v8 = vrot.slane %v2700_v63, 4  ;;  %v4282_v54 = vld [vmem:[%s4402_s19 + $0x24] sm:$0xff]  }
  0x47   : > { %v2053_v7 = vsel %vm4404_vm2, %v2051_v62, %v2052_v55  ;;  %v2495_v11 = vshrl.u32 %v4010_v59, 16  ;;  %v2498_v14 = vshll.u32 %v4010_v59, 16  ;;  %v2504_v15 = vshll.u32 %v4011_v1, 16  ;;  %v4099_v59 = vld [vmem:[%s4402_s19 + $0x7c] sm:$0xf] }
  0x48   : > { %2200 = vrot.lane.b32.xlu0 %v3946_v50, %s4354_s24  ;;  %v3947_v12 = vcombine.low %v2050_v61, %v2053_v7  ;;  %v2693_v13 = vor.u32 %v2692_v4, %v2689_v3  ;;  %2218 = vrot.lane.b32.xlu1 %v3955_v2, %s4354_s24  ;;  %v2703_v18 = vor.u32 %v2702_v8, %v2698_v6  ;;  %v2708_v19 = vrot.slane %v2706_v9, 5  ;;  %v4074_v7 = vld [vmem:[%s4402_s19 + $0x18] sm:$0xe]  ;;  %v4075_v8 = vld [vmem:[%s4402_s19 + $0x1c] sm:$0xf] }
  0x49   : > { %v2497_v20 = vrot.slane %v2495_v11, 4  ;;  %v2508_v21 = vshrl.u32 %v4011_v1, 16  ;;  %v2500_v24 = vrot.slane %v2498_v14, 5  ;;  %v2506_v25 = vrot.slane %v2504_v15, 5  ;;  %v4100_v1 = vld [vmem:[%s4402_s19 + $0x80] sm:$0x1] }
  0x4a   : > { %v2694_v23 = vrot.slane %v2693_v13, 4  ;;  %v2514_v26 = vshll.u32 %v4012_v10, 16  ;;  %v2704_v28 = vrot.slane %v2703_v18, 4  ;;  %v2711_v30 = vshrl.u32 %v4037_v16, 16 }
  0x4b   : > { %v2510_v29 = vrot.slane %v2508_v21, 4  ;;  %v2714_v31 = vshll.u32 %v4037_v16, 16  ;;  %v2501_v33 = vor.u32 %v2500_v24, %v2497_v20  ;;  %v2720_v36 = vshll.u32 %v4038_v22, 16 }
  0x4c   : > { %2202 = vrot.lane.b32.xlu0 %v3947_v12, %s4354_s24  ;;  %v2699_v32 = vsel %vm4454_vm5, %v2694_v23, %v2698_v6  ;;  %v2516_v34 = vrot.slane %v2514_v26, 5  ;;  %2397 = vrot.lane.b32.xlu1 %v4279_v17, %s4355_s25  ;;  %v2709_v39 = vsel %vm4454_vm5, %v2704_v28, %v2708_v19  ;;  %v2713_v41 = vrot.slane %v2711_v30, 4  ;;  %v4076_v17 = vld [vmem:[%s4402_s19 + $0x20] sm:$0x1] }
  0x4d   : > { %v2511_v40 = vor.u32 %v2510_v29, %v2506_v25  ;;  %v2716_v42 = vrot.slane %v2714_v31, 5  ;;  %v4066_v44 = vcombine.low %v2699_v32, %v2709_v39  ;;  %v2502_v45 = vrot.slane %v2501_v33, 4  ;;  %v378_v32 = vld [vmem:[%s4402_s19 + $0x80] sm:$0x1] }
  0x4e   : > { %v2722_v46 = vrot.slane %v2720_v36, 5  ;;  %v2724_v47 = vshrl.u32 %v4038_v22, 16  ;;  %v2730_v51 = vshll.u32 %v4039_v35, 16  ;;  %v2519_v52 = vshrl.u32 %v4013_v37, 16  ;;  %v376_v22 = vld [vmem:[%s4402_s19 + $0x78] sm:$0xf] }
  0x4f   : > { %v2512_v49 = vrot.slane %v2511_v40, 4  ;;  %v2717_v50 = vor.u32 %v2716_v42, %v2713_v41  ;;  %v2507_v55 = vsel %vm4454_vm5, %v2502_v45, %v2506_v25  ;;  %v2522_v57 = vshll.u32 %v4013_v37, 16  ;;  %v352_v37 = vld [vmem:[%s4402_s19 + $0x18] sm:$0xf] }
  0x50   : > { %2381 = vrot.lane.b32.xlu0 %v4280_v27, %s4355_s25  ;;  %v2726_v56 = vrot.slane %v2724_v47, 4  ;;  %v2528_v58 = vshll.u32 %v4014_v43, 16  ;;  %2399 = vrot.lane.b32.xlu1 %v4281_v38, %s4355_s25  ;;  %v2732_v62 = vrot.slane %v2730_v51, 5  ;;  %v2521_v63 = vrot.slane %v2519_v52, 4  ;;  %v377_v27 = vld [vmem:[%s4402_s19 + $0x7c] sm:$0xf] }
  0x51   : > { %v2517_v60 = vsel %vm4454_vm5, %v2512_v49, %v2516_v34  ;;  %v2718_v61 = vrot.slane %v2717_v50, 4  ;;  %v2524_v4 = vrot.slane %v2522_v57, 5  ;;  %v2532_v10 = vshrl.u32 %v4014_v43, 16  ;;  %v353_v38 = vld [vmem:[%s4402_s19 + $0x1c] sm:$0xf] }
  0x52   : > { %v4058_v2 = vcombine.low %v2507_v55, %v2517_v60  ;;  %v2727_v3 = vor.u32 %v2726_v56, %v2722_v46  ;;  %v2530_v6 = vrot.slane %v2528_v58, 5  ;;  %v2538_v11 = vshll.u32 %v4015_v48, 16  ;;  %v354_v43 = vld [vmem:[%s4402_s19 + $0x20] sm:$0x1]  ;;  %v4101_v48 = vld [vmem:[%s4402_s19 + $0x84] sm:$0xe] }
  0x53   : > { %v2723_v9 = vsel %vm4454_vm5, %v2718_v61, %v2722_v46  ;;  %v4130_v12 = vrot.slane %v4098_v53, 9  ;;  %v2525_v14 = vor.u32 %v2524_v4, %v2521_v63  ;;  %v3145_v15 = vrot.slane %v4099_v59, 5  ;;  %v4102_v53 = vld [vmem:[%s4402_s19 + $0x88] sm:$0xf]  ;;  %v4077_v59 = vld [vmem:[%s4402_s19 + $0x24] sm:$0xe] }
  0x54   : > { %2383 = vrot.lane.b32.xlu0 %v4282_v54, %s4355_s25  ;;  %v2728_v13 = vrot.slane %v2727_v3, 4  ;;  %v3148_v16 = vrot.slane %v4100_v1, 5  ;;  %2942 = vrot.lane.b32.xlu1 %v4066_v44, %s4356_s26  ;;  %v2534_v18 = vrot.slane %v2532_v10, 4  ;;  %v2540_v19 = vrot.slane %v2538_v11, 5  ;;  %v4103_v54 = vld [vmem:[%s4402_s19 + $0x8c] sm:$0x1] }
  0x55   : > { %v4122_v20 = vrot.slane %v4074_v7, 9  ;;  %v3089_v21 = vrot.slane %v4075_v8, 5  ;;  %v2526_v24 = vrot.slane %v2525_v14, 4  ;;  %v3146_v25 = vsel %vm4404_vm2, %v4130_v12, %v3145_v15  ;;  %v4078_v1 = vld [vmem:[%s4402_s19 + $0x28] sm:$0xf] }
  0x56   : > { %v2733_v23 = vsel %vm4454_vm5, %v2728_v13, %v2732_v62  ;;  %v3147_v26 = vrot.slane %v3145_v15, 4  ;;  %v2535_v29 = vor.u32 %v2534_v18, %v2530_v6  ;;  %v3092_v35 = vrot.slane %v4076_v17, 5  ;;  %v4079_v7 = vld [vmem:[%s4402_s19 + $0x2c] sm:$0x1]  ;;  %v379_v12 = vld [vmem:[%s4402_s19 + $0x84] sm:$0xf] }
  0x57   : > { %v4067_v28 = vcombine.low %v2723_v9, %v2733_v23  ;;  %v3090_v30 = vsel %vm4404_vm2, %v4122_v20, %v3089_v21  ;;  %v3091_v31 = vrot.slane %v3089_v21, 4  ;;  %v2531_v33 = vsel %vm4454_vm5, %v2526_v24, %v2530_v6  ;;  %v380_v21 = vld [vmem:[%s4402_s19 + $0x88] sm:$0xf] }
  0x58   : > { %2926 = vrot.lane.b32.xlu0 %v4058_v2, %s4356_s26  ;;  %v3149_v34 = vsel %vm4404_vm2, %v3147_v26, %v3148_v16  ;;  %v638_v36 = vshrl.u32 %v376_v22, 16  ;;  %v2536_v39 = vrot.slane %v2535_v29, 4  ;;  %v641_v41 = vshll.u32 %v376_v22, 16 }
  0x59   : > { %2944 = vrot.lane.b32.xlu1 %v4067_v28, %s4356_s26  ;;  %v4146_v40 = vcombine.low %v3146_v25, %v3149_v34  ;;  %v647_v42 = vshll.u32 %v377_v27, 16  ;;  %v3093_v44 = vsel %vm4404_vm2, %v3091_v31, %v3092_v35  ;;  %v651_v46 = vshrl.u32 %v377_v27, 16 }
  0x5a   : > { %v640_v45 = vrot.slane %v638_v36, 4  ;;  %v657_v47 = vshll.u32 %v378_v32, 16  ;;  %v2541_v49 = vsel %vm4454_vm5, %v2536_v39, %v2540_v19  ;;  %v4138_v50 = vcombine.low %v3090_v30, %v3093_v44  ;;  %v355_v39 = vld [vmem:[%s4402_s19 + $0x24] sm:$0xf] }
  0x5b   : > { %v643_v51 = vrot.slane %v641_v41, 5  ;;  %v649_v52 = vrot.slane %v647_v42, 5  ;;  %v4059_v55 = vcombine.low %v2531_v33, %v2541_v49  ;;  %v653_v56 = vrot.slane %v651_v46, 4  ;;  %v381_v33 = vld [vmem:[%s4402_s19 + $0x8c] sm:$0x1] }
  0x5c   : > { %v659_v57 = vrot.slane %v657_v47, 5  ;;  %v446_v58 = vshrl.u32 %v352_v37, 16  ;;  %v449_v61 = vshll.u32 %v352_v37, 16  ;;  %v455_v62 = vshll.u32 %v353_v38, 16  ;;  %v924_v46 = vld [vmem:[%s4402_s19 + $0x78] sm:$0xe] }
  0x5d   : > { %3263 = vrot.lane.b32.xlu1 %v4146_v40, %s4357_s27  ;;  %v644_v60 = vor.u32 %v643_v51, %v640_v45  ;;  %v459_v63 = vshrl.u32 %v353_v38, 16  ;;  %2928 = vrot.lane.b32.xlu0 %v4059_v55, %s4356_s26  ;;  %v654_v2 = vor.u32 %v653_v56, %v649_v52  ;;  %v465_v4 = vshll.u32 %v354_v43, 16  ;;  %v356_v40 = vld [vmem:[%s4402_s19 + $0x28] sm:$0xf]  ;;  %v357_v45 = vld [vmem:[%s4402_s19 + $0x2c] sm:$0x1] }
  0x5e   : > { %v448_v3 = vrot.slane %v446_v58, 4  ;;  %v4131_v6 = vrot.slane %v4101_v48, 9  ;;  %v451_v9 = vrot.slane %v449_v61, 5  ;;  %v457_v10 = vrot.slane %v455_v62, 5  ;;  %v925_v51 = vld [vmem:[%s4402_s19 + $0x7c] sm:$0xf] }
  0x5f   : > { %v645_v8 = vrot.slane %v644_v60, 4  ;;  %v461_v11 = vrot.slane %v459_v63, 4  ;;  %v655_v13 = vrot.slane %v654_v2, 4  ;;  %v467_v14 = vrot.slane %v465_v4, 5  ;;  %v926_v56 = vld [vmem:[%s4402_s19 + $0x80] sm:$0x1] }
  0x60   : > { %v3152_v15 = vrot.slane %v4102_v53, 5  ;;  %v3155_v16 = vrot.slane %v4103_v54, 5  ;;  %v452_v18 = vor.u32 %v451_v9, %v448_v3  ;;  %v4123_v20 = vrot.slane %v4077_v59, 9  ;;  %v900_v61 = vld [vmem:[%s4402_s19 + $0x18] sm:$0xe] }
  0x61   : > { %v650_v17 = vsel %vm4454_vm5, %v645_v8, %v649_v52  ;;  %v462_v19 = vor.u32 %v461_v11, %v457_v10  ;;  %3247 = vrot.lane.b32.xlu0 %v4138_v50, %s4357_s27  ;;  %v660_v22 = vsel %vm4454_vm5, %v655_v13, %v659_v57  ;;  %v3096_v25 = vrot.slane %v4078_v1, 5  ;;  %v901_v3 = vld [vmem:[%s4402_s19 + $0x1c] sm:$0xf]  ;;  %v902_v9 = vld [vmem:[%s4402_s19 + $0x20] sm:$0x1] }
  0x62   : > { %v3153_v23 = vsel %vm4404_vm2, %v4131_v6, %v3152_v15  ;;  %v3154_v24 = vrot.slane %v3152_v15, 4  ;;  %v3732_v26 = vcombine.low %v650_v17, %v660_v22  ;;  %v453_v27 = vrot.slane %v452_v18, 4  ;;  %v4305_v15 = vld [vmem:[%s5618_s1] sm:$0xff]  }
  0x63   : > { %v463_v28 = vrot.slane %v462_v19, 4  ;;  %v3099_v29 = vrot.slane %v4079_v7, 5  ;;  %v3097_v31 = vsel %vm4404_vm2, %v4123_v20, %v3096_v25  ;;  %v3098_v32 = vrot.slane %v3096_v25, 4  ;;  %v928_v20 = vld [vmem:[%s4402_s19 + $0x88] sm:$0xf]  ;;  %4196 = vmatprep.subr.bf16.mxu0 %v4305_v15  ;;  %4234 = vmatprep.subr.bf16.mxu1 %v4305_v15 }
  0x64   : > { %v3156_v30 = vsel %vm4404_vm2, %v3154_v24, %v3155_v16  ;;  %v662_v34 = vshrl.u32 %v379_v12, 16  ;;  %849 = vrot.lane.b32.xlu1 %v3732_v26, %s4352_s22  ;;  %v458_v35 = vsel %vm4454_vm5, %v453_v27, %v457_v10  ;;  %v665_v38 = vshll.u32 %v379_v12, 16  ;;  %v903_v26 = vld [vmem:[%s4402_s19 + $0x24] sm:$0xe]  ;;  %v4306_v27 = vld [vmem:[%s5618_s1 + $0x8] sm:$0xff]   ;;  %4197 = vmatpush3.bf16.msra.mxu0 %v4305_v15 }
  0x65   : > { %v468_v36 = vsel %vm4454_vm5, %v463_v28, %v467_v14  ;;  %v4147_v37 = vcombine.low %v3153_v23, %v3156_v30  ;;  %v3100_v42 = vsel %vm4404_vm2, %v3098_v32, %v3099_v29  ;;  %v671_v44 = vshll.u32 %v380_v21, 16  ;;  %v927_v14 = vld [vmem:[%s4402_s19 + $0x84] sm:$0xe]  ;;  %v904_v32 = vld [vmem:[%s4402_s19 + $0x28] sm:$0xf]  ;;  %4237 = vmatpush3.bf16.msra.mxu1 %v4305_v15  ;;  %4198 = vmatprep.subr.bf16.mxu0 %v4306_v27 }
  0x66   : > { %v3724_v41 = vcombine.low %v458_v35, %v468_v36  ;;  %v664_v43 = vrot.slane %v662_v34, 4  ;;  %v4139_v47 = vcombine.low %v3097_v31, %v3100_v42  ;;  %v667_v48 = vrot.slane %v665_v38, 5  ;;  %v3848_v42 = vld [vmem:[%s4402_s19 + $0x84] sm:$0xf]  ;;  %4235 = vmatprep.subr.bf16.mxu1 %v4306_v27 }
  0x67   : > { %v675_v49 = vshrl.u32 %v380_v21, 16  ;;  %v681_v50 = vshll.u32 %v381_v33, 16  ;;  %v673_v52 = vrot.slane %v671_v44, 5  ;;  %v470_v53 = vshrl.u32 %v355_v39, 16  ;;  %v929_v21 = vld [vmem:[%s4402_s19 + $0x8c] sm:$0x1] }
  0x68   : > { %833 = vrot.lane.b32.xlu0 %v3724_v41, %s4352_s22  ;;  %v473_v54 = vshll.u32 %v355_v39, 16  ;;  %v479_v55 = vshll.u32 %v356_v40, 16  ;;  %3265 = vrot.lane.b32.xlu1 %v4147_v37, %s4357_s27  ;;  %v668_v57 = vor.u32 %v667_v48, %v664_v43  ;;  %v483_v60 = vshrl.u32 %v356_v40, 16  ;;  %v905_v37 = vld [vmem:[%s4402_s19 + $0x2c] sm:$0x1] }
  0x69   : > { %v677_v58 = vrot.slane %v675_v49, 4  ;;  %v683_v59 = vrot.slane %v681_v50, 5  ;;  %v472_v62 = vrot.slane %v470_v53, 4  ;;  %v489_v2 = vshll.u32 %v357_v45, 16  ;;  %v3849_v43 = vld [vmem:[%s4402_s19 + $0x88] sm:$0xf]  ;;  %4199 = vmatpush3.bf16.msra.mxu0 %v4306_v27  ;;  %4238 = vmatpush3.bf16.msra.mxu1 %v4306_v27 }
  0x6a   : > { %v475_v63 = vrot.slane %v473_v54, 5  ;;  %v481_v1 = vrot.slane %v479_v55, 5  ;;  %v669_v4 = vrot.slane %v668_v57, 4  ;;  %v485_v7 = vrot.slane %v483_v60, 4  ;;  %v3850_v48 = vld [vmem:[%s4402_s19 + $0x8c] sm:$0x1] }
  0x6b   : > { %v678_v6 = vor.u32 %v677_v58, %v673_v52  ;;  %v3748_v8 = vrot.slane %v924_v46, 9  ;;  %v491_v11 = vrot.slane %v489_v2, 5  ;;  %v1065_v12 = vrot.slane %v925_v51, 5  ;;  %v3824_v53 = vld [vmem:[%s4402_s19 + $0x24] sm:$0xf] }
  0x6c   : > { %3249 = vrot.lane.b32.xlu0 %v4139_v47, %s4357_s27  ;;  %v476_v10 = vor.u32 %v475_v63, %v472_v62  ;;  %v1068_v13 = vrot.slane %v926_v56, 5  ;;  %v674_v16 = vsel %vm4454_vm5, %v669_v4, %v673_v52  ;;  %v486_v18 = vor.u32 %v485_v7, %v481_v1  ;;  %v3825_v54 = vld [vmem:[%s4402_s19 + $0x28] sm:$0xf] }
  0x6d   : > { %v679_v17 = vrot.slane %v678_v6, 4  ;;  %v3740_v19 = vrot.slane %v900_v61, 9  ;;  %v1066_v23 = vsel %vm4404_vm2, %v3748_v8, %v1065_v12  ;;  %v1067_v24 = vrot.slane %v1065_v12, 4 }
  0x6e   : > { %v477_v22 = vrot.slane %v476_v10, 4  ;;  %v1009_v25 = vrot.slane %v901_v3, 5  ;;  %v487_v29 = vrot.slane %v486_v18, 4  ;;  %v1012_v30 = vrot.slane %v902_v9, 5 }
  0x6f   : > { %v684_v28 = vsel %vm4454_vm5, %v679_v17, %v683_v59  ;;  %v3749_v31 = vrot.slane %v927_v14, 9  ;;  %v1069_v35 = vsel %vm4404_vm2, %v1067_v24, %v1068_v13  ;;  %v1072_v41 = vrot.slane %v928_v20, 5  ;;  %v3826_v59 = vld [vmem:[%s4402_s19 + $0x2c] sm:$0x1]  ;;  %v4283_v20 = vld [vmem:[%s4402_s19 + $0x84] sm:$0xff]  }
  0x70   : > { %v3733_v33 = vcombine.low %v674_v16, %v684_v28  ;;  %v482_v34 = vsel %vm4454_vm5, %v477_v22, %v481_v1  ;;  %v1010_v36 = vsel %vm4404_vm2, %v3740_v19, %v1009_v25  ;;  %v492_v38 = vsel %vm4454_vm5, %v487_v29, %v491_v11  ;;  %v3851_v1 = vld [vmem:[%s4402_s19 + $0x90] sm:$0xf]  ;;  %v3852_v19 = vld [vmem:[%s4402_s19 + $0x94] sm:$0xf]  ;;  %v3853_v29 = vld [vmem:[%s4402_s19 + $0x98] sm:$0x1] }
  0x71   : > { %v3764_v39 = vcombine.low %v1066_v23, %v1069_v35  ;;  %v1011_v40 = vrot.slane %v1009_v25, 4  ;;  %v3725_v44 = vcombine.low %v482_v34, %v492_v38  ;;  %v1075_v45 = vrot.slane %v929_v21, 5  ;;  %v3827_v35 = vld [vmem:[%s4402_s19 + $0x30] sm:$0xf] }
  0x72   : > { %851 = vrot.lane.b32.xlu1 %v3733_v33, %s4352_s22  ;;  %v3741_v46 = vrot.slane %v903_v26, 9  ;;  %v1016_v47 = vrot.slane %v904_v32, 5  ;;  %v1073_v50 = vsel %vm4404_vm2, %v3749_v31, %v1072_v41  ;;  %v1074_v51 = vrot.slane %v1072_v41, 4  ;;  %v4285_v41 = vld [vmem:[%s4402_s19 + $0x90] sm:$0xff]  }
  0x73   : > { %v1013_v49 = vsel %vm4404_vm2, %v1011_v40, %v1012_v30  ;;  %v1019_v52 = vrot.slane %v905_v37, 5  ;;  %835 = vrot.lane.b32.xlu0 %v3725_v44, %s4352_s22  ;;  %v1688_v58 = vshrl.u32 %v3848_v42, 16  ;;  %v1691_v61 = vshll.u32 %v3848_v42, 16  ;;  %v4284_v30 = vld [vmem:[%s4402_s19 + $0x24] sm:$0xff]   ;;  %v3828_v40 = vld [vmem:[%s4402_s19 + $0x34] sm:$0xf] }
  0x74   : > { %v3756_v55 = vcombine.low %v1010_v36, %v1013_v49  ;;  %v1017_v56 = vsel %vm4404_vm2, %v3741_v46, %v1016_v47  ;;  %v1018_v57 = vrot.slane %v1016_v47, 4  ;;  %v1076_v60 = vsel %vm4404_vm2, %v1074_v51, %v1075_v45  ;;  %v4286_v42 = vld [vmem:[%s4402_s19 + $0x30] sm:$0xff]  }
  0x75   : > { %v1697_v62 = vshll.u32 %v3849_v43, 16  ;;  %v1701_v63 = vshrl.u32 %v3849_v43, 16  ;;  %v3765_v2 = vcombine.low %v1073_v50, %v1076_v60  ;;  %v1690_v4 = vrot.slane %v1688_v58, 4  ;;  %v3829_v50 = vld [vmem:[%s4402_s19 + $0x38] sm:$0x1] }
  0x76   : > { %1173 = vrot.lane.b32.xlu1 %v3764_v39, %s4351_s21  ;;  %v1020_v3 = vsel %vm4404_vm2, %v1018_v57, %v1019_v52  ;;  %v1707_v6 = vshll.u32 %v3850_v48, 16  ;;  %v1693_v8 = vrot.slane %v1691_v61, 5  ;;  %v1496_v12 = vshrl.u32 %v3824_v53, 16  ;;  %v3913_v57 = vld [vmem:[%s4402_s19 + $0x88] sm:$0xf] }
  0x77   : > { %v3757_v7 = vcombine.low %v1017_v56, %v1020_v3  ;;  %v1699_v9 = vrot.slane %v1697_v62, 5  ;;  %v1703_v10 = vrot.slane %v1701_v63, 4  ;;  %1157 = vrot.lane.b32.xlu0 %v3756_v55, %s4351_s21  ;;  %v1499_v13 = vshll.u32 %v3824_v53, 16  ;;  %v3912_v56 = vld [vmem:[%s4402_s19 + $0x84] sm:$0xe] }
  0x78   : > { %v1709_v11 = vrot.slane %v1707_v6, 5  ;;  %v1505_v14 = vshll.u32 %v3825_v54, 16  ;;  %v1694_v15 = vor.u32 %v1693_v8, %v1690_v4  ;;  %v1509_v17 = vshrl.u32 %v3825_v54, 16  ;;  %v3914_v62 = vld [vmem:[%s4402_s19 + $0x8c] sm:$0x1] }
  0x79   : > { %v1704_v16 = vor.u32 %v1703_v10, %v1699_v9  ;;  %v1515_v18 = vshll.u32 %v3826_v59, 16  ;;  %v1498_v21 = vrot.slane %v1496_v12, 4  ;;  %v1501_v22 = vrot.slane %v1499_v13, 5  ;;  %v3888_v63 = vld [vmem:[%s4402_s19 + $0x24] sm:$0xe] }
  0x7a   : > { %1175 = vrot.lane.b32.xlu1 %v3765_v2, %s4351_s21  ;;  %v1507_v23 = vrot.slane %v1505_v14, 5  ;;  %v1712_v24 = vshrl.u32 %v3851_v1, 16  ;;  %v1695_v25 = vrot.slane %v1694_v15, 4  ;;  %v1511_v27 = vrot.slane %v1509_v17, 4  ;;  %v3889_v6 = vld [vmem:[%s4402_s19 + $0x28] sm:$0xf] }
  0x7b   : > { %v1705_v26 = vrot.slane %v1704_v16, 4  ;;  %v1517_v28 = vrot.slane %v1515_v18, 5  ;;  %1159 = vrot.lane.b32.xlu0 %v3757_v7, %s4351_s21  ;;  %v1502_v31 = vor.u32 %v1501_v22, %v1498_v21  ;;  %v1715_v33 = vshll.u32 %v3851_v1, 16  ;;  %v3915_v16 = vld [vmem:[%s4402_s19 + $0x90] sm:$0xe] }
  0x7c   : > { %v1714_v32 = vrot.slane %v1712_v24, 4  ;;  %v1721_v34 = vshll.u32 %v3852_v19, 16  ;;  %v1700_v36 = vsel %vm4454_vm5, %v1695_v25, %v1699_v9  ;;  %v1512_v38 = vor.u32 %v1511_v27, %v1507_v23  ;;  %v3916_v17 = vld [vmem:[%s4402_s19 + $0x94] sm:$0xf]  ;;  %v3917_v22 = vld [vmem:[%s4402_s19 + $0x98] sm:$0x1] }
  0x7d   : > { %v1710_v37 = vsel %vm4454_vm5, %v1705_v26, %v1709_v11  ;;  %v1725_v39 = vshrl.u32 %v3852_v19, 16  ;;  %v1503_v44 = vrot.slane %v1502_v31, 4  ;;  %v1717_v45 = vrot.slane %v1715_v33, 5  ;;  %v3890_v11 = vld [vmem:[%s4402_s19 + $0x2c] sm:$0x1] }
  0x7e   : > { %1354 = vrot.lane.b32.xlu1 %v4283_v20, %s4350_s20  ;;  %v3876_v43 = vcombine.low %v1700_v36, %v1710_v37  ;;  %v1723_v46 = vrot.slane %v1721_v34, 5  ;;  %v1513_v47 = vrot.slane %v1512_v38, 4  ;;  %v1731_v49 = vshll.u32 %v3853_v29, 16  ;;  %v3891_v27 = vld [vmem:[%s4402_s19 + $0x30] sm:$0xe] }
  0x7f   : > { %v1727_v48 = vrot.slane %v1725_v39, 4  ;;  %v1520_v51 = vshrl.u32 %v3827_v35, 16  ;;  %1338 = vrot.lane.b32.xlu0 %v4284_v30, %s4350_s20  ;;  %v1508_v52 = vsel %vm4454_vm5, %v1503_v44, %v1507_v23  ;;  %v1718_v53 = vor.u32 %v1717_v45, %v1714_v32  ;;  %v3892_v32 = vld [vmem:[%s4402_s19 + $0x34] sm:$0xf]  ;;  %v3893_v37 = vld [vmem:[%s4402_s19 + $0x38] sm:$0x1] }
  0x80   : > { %v1523_v54 = vshll.u32 %v3827_v35, 16  ;;  %v1529_v55 = vshll.u32 %v3828_v40, 16  ;;  %v1518_v58 = vsel %vm4454_vm5, %v1513_v47, %v1517_v28  ;;  %v1733_v60 = vrot.slane %v1731_v49, 5  ;;  %v4040_v38 = vld [vmem:[%s4402_s19 + $0x90] sm:$0xf] }
  0x81   : > { %v1728_v59 = vor.u32 %v1727_v48, %v1723_v46  ;;  %v1522_v61 = vrot.slane %v1520_v51, 4  ;;  %v3868_v1 = vcombine.low %v1508_v52, %v1518_v58  ;;  %v1719_v2 = vrot.slane %v1718_v53, 4  ;;  %v4042_v44 = vld [vmem:[%s4402_s19 + $0x98] sm:$0x1]  ;;  %v4016_v45 = vld [vmem:[%s4402_s19 + $0x30] sm:$0xf] }
  0x82   : > { %1356 = vrot.lane.b32.xlu1 %v4285_v41, %s4350_s20  ;;  %v1525_v3 = vrot.slane %v1523_v54, 5  ;;  %v1531_v4 = vrot.slane %v1529_v55, 5  ;;  %v1533_v8 = vshrl.u32 %v3828_v40, 16  ;;  %v1539_v9 = vshll.u32 %v3829_v50, 16 }
  0x83   : > { %v1729_v7 = vrot.slane %v1728_v59, 4  ;;  %v3940_v10 = vrot.slane %v3912_v56, 9  ;;  %1340 = vrot.lane.b32.xlu0 %v4286_v42, %s4350_s20  ;;  %v1724_v12 = vsel %vm4454_vm5, %v1719_v2, %v1723_v46  ;;  %v2112_v14 = vrot.slane %v3913_v57, 5  ;;  %v4017_v59 = vld [vmem:[%s4402_s19 + $0x34] sm:$0xf] }
  0x84   : > { %v1526_v13 = vor.u32 %v1525_v3, %v1522_v61  ;;  %v2115_v15 = vrot.slane %v3914_v62, 5  ;;  %v1535_v19 = vrot.slane %v1533_v8, 4  ;;  %v1541_v20 = vrot.slane %v1539_v9, 5 }
  0x85   : > { %v1734_v18 = vsel %vm4454_vm5, %v1729_v7, %v1733_v60  ;;  %v3932_v21 = vrot.slane %v3888_v63, 9  ;;  %v2113_v25 = vsel %vm4404_vm2, %v3940_v10, %v2112_v14  ;;  %v2114_v26 = vrot.slane %v2112_v14, 4  ;;  %v4750_v46 = vpop.permute.xlu1 %1350 }
  0x86   : > { %1899 = vrot.lane.b32.xlu1 %v3876_v43, %s4353_s23  ;;  %v3877_v23 = vcombine.low %v1724_v12, %v1734_v18  ;;  %v1527_v24 = vrot.slane %v1526_v13, 4  ;;  %v1536_v28 = vor.u32 %v1535_v19, %v1531_v4  ;;  %v2056_v29 = vrot.slane %v3889_v6, 5  ;;  %v4041_v43 = vld [vmem:[%s4402_s19 + $0x94] sm:$0xf]  ;;  %v4043_v12 = vld [vmem:[%s4402_s19 + $0x9c] sm:$0xf] }
  0x87   : > { %v2059_v30 = vrot.slane %v3890_v11, 5  ;;  %v3941_v31 = vrot.slane %v3915_v16, 9  ;;  %1883 = vrot.lane.b32.xlu0 %v3868_v1, %s4353_s23  ;;  %v2116_v34 = vsel %vm4404_vm2, %v2114_v26, %v2115_v15  ;;  %v2119_v35 = vrot.slane %v3916_v17, 5  ;;  %v4769_v11 = vpop.permute.xlu0 %1334  ;;  %v4044_v18 = vld [vmem:[%s4402_s19 + $0xa0] sm:$0xf] }
  0x88   : > { %v1532_v33 = vsel %vm4454_vm5, %v1527_v24, %v1531_v4  ;;  %v2122_v36 = vrot.slane %v3917_v22, 5  ;;  %v1537_v39 = vrot.slane %v1536_v28, 4  ;;  %v3956_v40 = vcombine.low %v2113_v25, %v2116_v34  ;;  %v4018_v4 = vld [vmem:[%s4402_s19 + $0x38] sm:$0x1]  ;;  %v4287_v24 = vld [vmem:[%s4402_s19 + $0x90] sm:$0xff]  }
  0x89   : > { %v2057_v41 = vsel %vm4404_vm2, %v3932_v21, %v2056_v29  ;;  %v2058_v42 = vrot.slane %v2056_v29, 4  ;;  %v2120_v47 = vsel %vm4404_vm2, %v3941_v31, %v2119_v35  ;;  %v2121_v48 = vrot.slane %v2119_v35, 4  ;;  %v4019_v29 = vld [vmem:[%s4402_s19 + $0x3c] sm:$0xf] }
  0x8a   : > { %1901 = vrot.lane.b32.xlu1 %v3877_v23, %s4353_s23  ;;  %v3933_v49 = vrot.slane %v3891_v27, 9  ;;  %v2063_v50 = vrot.slane %v3892_v32, 5  ;;  %v1542_v51 = vsel %vm4454_vm5, %v1537_v39, %v1541_v20  ;;  %v2066_v53 = vrot.slane %v3893_v37, 5  ;;  %v4045_v23 = vld [vmem:[%s4402_s19 + $0xa4] sm:$0x1] }
  0x8b   : > { %v2060_v52 = vsel %vm4404_vm2, %v2058_v42, %v2059_v30  ;;  %v2735_v54 = vshrl.u32 %v4040_v38, 16  ;;  %v3869_v55 = vcombine.low %v1532_v33, %v1542_v51  ;;  %v2123_v57 = vsel %vm4404_vm2, %v2121_v48, %v2122_v36  ;;  %v4020_v51 = vld [vmem:[%s4402_s19 + $0x40] sm:$0xf] }
  0x8c   : > { %v3948_v56 = vcombine.low %v2057_v41, %v2060_v52  ;;  %v2064_v58 = vsel %vm4404_vm2, %v3933_v49, %v2063_v50  ;;  %v3957_v60 = vcombine.low %v2120_v47, %v2123_v57  ;;  %v2065_v61 = vrot.slane %v2063_v50, 4  ;;  %v4772_v13 = vpop.permute.xlu1 %1169  ;;  %v4290_v57 = vld [vmem:[%s4402_s19 + $0x3c] sm:$0xff]  }
  0x8d   : > { %v2737_v62 = vrot.slane %v2735_v54, 4  ;;  %v2738_v63 = vshll.u32 %v4040_v38, 16  ;;  %1885 = vrot.lane.b32.xlu0 %v3869_v55, %s4353_s23  ;;  %v2744_v1 = vshll.u32 %v4041_v43, 16  ;;  %v2748_v2 = vshrl.u32 %v4041_v43, 16  ;;  %v4288_v38 = vld [vmem:[%s4402_s19 + $0x30] sm:$0xff]  }
  0x8e   : > { %2220 = vrot.lane.b32.xlu1 %v3956_v40, %s4354_s24  ;;  %v2754_v3 = vshll.u32 %v4042_v44, 16  ;;  %v2543_v6 = vshrl.u32 %v4016_v45, 16  ;;  %v2067_v7 = vsel %vm4404_vm2, %v2065_v61, %v2066_v53  ;;  %v2546_v9 = vshll.u32 %v4016_v45, 16  ;;  %v4783_v43 = vpop.permute.xlu0 %1153  ;;  %v4289_v45 = vld [vmem:[%s4402_s19 + $0x9c] sm:$0xff]   ;;  %v4021_v55 = vld [vmem:[%s4402_s19 + $0x44] sm:$0x1] }
  0x8f   : > { %v2740_v8 = vrot.slane %v2738_v63, 5  ;;  %v2552_v10 = vshll.u32 %v4017_v59, 16  ;;  %v3949_v14 = vcombine.low %v2064_v58, %v2067_v7  ;;  %v2746_v15 = vrot.slane %v2744_v1, 5 }
  0x90   : > { %v2750_v16 = vrot.slane %v2748_v2, 4  ;;  %v2756_v17 = vrot.slane %v2754_v3, 5  ;;  %v2545_v20 = vrot.slane %v2543_v6, 4  ;;  %v2548_v21 = vrot.slane %v2546_v9, 5 }
  0x91   : > { %v2741_v19 = vor.u32 %v2740_v8, %v2737_v62  ;;  %v2554_v22 = vrot.slane %v2552_v10, 5  ;;  %2204 = vrot.lane.b32.xlu0 %v3948_v56, %s4354_s24  ;;  %v2556_v26 = vshrl.u32 %v4017_v59, 16  ;;  %v2562_v27 = vshll.u32 %v4018_v4, 16  ;;  %v4785_v44 = vpop.permute.xlu1 %1171  ;;  %v4104_v62 = vld [vmem:[%s4402_s19 + $0x90] sm:$0xe] }
  0x92   : > { %2222 = vrot.lane.b32.xlu1 %v3957_v60, %s4354_s24  ;;  %v2751_v25 = vor.u32 %v2750_v16, %v2746_v15  ;;  %v2759_v28 = vshrl.u32 %v4043_v12, 16  ;;  %v2549_v31 = vor.u32 %v2548_v21, %v2545_v20  ;;  %v2762_v32 = vshll.u32 %v4043_v12, 16  ;;  %v4105_v4 = vld [vmem:[%s4402_s19 + $0x94] sm:$0xf]  ;;  %v4106_v10 = vld [vmem:[%s4402_s19 + $0x98] sm:$0x1]  ;;  %v4809_v20 = vpop.permute.xlu0 %1155 }
  0x93   : > { %v2742_v30 = vrot.slane %v2741_v19, 4  ;;  %v2768_v33 = vshll.u32 %v4044_v18, 16  ;;  %v2558_v35 = vrot.slane %v2556_v26, 4  ;;  %v2564_v36 = vrot.slane %v2562_v27, 5  ;;  %v4080_v12 = vld [vmem:[%s4402_s19 + $0x30] sm:$0xe] }
  0x94   : > { %v2752_v34 = vrot.slane %v2751_v25, 4  ;;  %v2761_v37 = vrot.slane %v2759_v28, 4  ;;  %v2550_v40 = vrot.slane %v2549_v31, 4  ;;  %v2764_v41 = vrot.slane %v2762_v32, 5  ;;  %v4082_v19 = vld [vmem:[%s4402_s19 + $0x38] sm:$0x1] }
  0x95   : > { %v2747_v39 = vsel %vm4454_vm5, %v2742_v30, %v2746_v15  ;;  %v2770_v42 = vrot.slane %v2768_v33, 5  ;;  %2206 = vrot.lane.b32.xlu0 %v3949_v14, %s4354_s24  ;;  %v2559_v48 = vor.u32 %v2558_v35, %v2554_v22  ;;  %v2772_v49 = vshrl.u32 %v4044_v18, 16  ;;  %v4081_v18 = vld [vmem:[%s4402_s19 + $0x34] sm:$0xf]  ;;  %v382_v30 = vld [vmem:[%s4402_s19 + $0x90] sm:$0xf] }
  0x96   : > { %2401 = vrot.lane.b32.xlu1 %v4287_v24, %s4355_s25  ;;  %v2757_v47 = vsel %vm4454_vm5, %v2752_v34, %v2756_v17  ;;  %v2778_v50 = vshll.u32 %v4045_v23, 16  ;;  %v2555_v53 = vsel %vm4454_vm5, %v2550_v40, %v2554_v22  ;;  %v2765_v54 = vor.u32 %v2764_v41, %v2761_v37  ;;  %v383_v35 = vld [vmem:[%s4402_s19 + $0x94] sm:$0xf]  ;;  %v384_v40 = vld [vmem:[%s4402_s19 + $0x98] sm:$0x1] }
  0x97   : > { %v4068_v52 = vcombine.low %v2747_v39, %v2757_v47  ;;  %v2567_v56 = vshrl.u32 %v4019_v29, 16  ;;  %v2560_v58 = vrot.slane %v2559_v48, 4  ;;  %v2774_v59 = vrot.slane %v2772_v49, 4  ;;  %v358_v41 = vld [vmem:[%s4402_s19 + $0x30] sm:$0xf] }
  0x98   : > { %v2780_v60 = vrot.slane %v2778_v50, 5  ;;  %v2570_v61 = vshll.u32 %v4019_v29, 16  ;;  %v2766_v63 = vrot.slane %v2765_v54, 4  ;;  %v2576_v2 = vshll.u32 %v4020_v51, 16  ;;  %v359_v49 = vld [vmem:[%s4402_s19 + $0x34] sm:$0xf] }
  0x99   : > { %v2569_v1 = vrot.slane %v2567_v56, 4  ;;  %v2580_v3 = vshrl.u32 %v4020_v51, 16  ;;  %2385 = vrot.lane.b32.xlu0 %v4288_v38, %s4355_s25  ;;  %v2565_v6 = vsel %vm4454_vm5, %v2560_v58, %v2564_v36  ;;  %v2775_v7 = vor.u32 %v2774_v59, %v2770_v42  ;;  %v4811_v21 = vpop.permute.xlu1 %831  ;;  %v360_v50 = vld [vmem:[%s4402_s19 + $0x38] sm:$0x1] }
  0x9a   : > { %2403 = vrot.lane.b32.xlu1 %v4289_v45, %s4355_s25  ;;  %v2572_v8 = vrot.slane %v2570_v61, 5  ;;  %v2586_v9 = vshll.u32 %v4021_v55, 16  ;;  %v4060_v14 = vcombine.low %v2555_v53, %v2565_v6  ;;  %v2771_v15 = vsel %vm4454_vm5, %v2766_v63, %v2770_v42  ;;  %v4294_v6 = vld [vmem:[%s4402_s19 + $0x60] sm:$0xff]  }
  0x9b   : > { %v2578_v16 = vrot.slane %v2576_v2, 5  ;;  %v2582_v17 = vrot.slane %v2580_v3, 4  ;;  %v2776_v22 = vrot.slane %v2775_v7, 4  ;;  %v4132_v25 = vrot.slane %v4104_v62, 9  ;;  %v4291_v2 = vld [vmem:[%s4402_s19 + $0xc] sm:$0xff]   ;;  %v4292_v3 = vld [vmem:[%s4402_s19] sm:$0xff]  }
  0x9c   : > { %v2573_v23 = vor.u32 %v2572_v8, %v2569_v1  ;;  %v2588_v24 = vrot.slane %v2586_v9, 5  ;;  %v3159_v27 = vrot.slane %v4105_v4, 5  ;;  %v3162_v28 = vrot.slane %v4106_v10, 5  ;;  %v4835_v55 = vpop.permute.xlu0 %829  ;;  %v4293_v4 = vld [vmem:[%s4402_s19 + $0x6c] sm:$0xff]   ;;  %v4303_v7 = vld [vmem:[%s4402_s19 + $0x78] sm:$0xff]   ;;  %v4307_v9 = vld [vmem:[%s4402_s19 + $0x84] sm:$0xff]  }
  0x9d   : > { %v2583_v26 = vor.u32 %v2582_v17, %v2578_v16  ;;  %v4124_v29 = vrot.slane %v4080_v12, 9  ;;  %2387 = vrot.lane.b32.xlu0 %v4290_v57, %s4355_s25  ;;  %v2781_v31 = vsel %vm4454_vm5, %v2776_v22, %v2780_v60  ;;  %v3103_v33 = vrot.slane %v4081_v18, 5  ;;  %v4304_v8 = vld [vmem:[%s4402_s19 + $0x18] sm:$0xff]   ;;  %331 = vst.msk [vmem:[#allocation2 + $0x8] sm:$0xff] %vm329_vm6, %v4291_v2  ;;  %330 = vst.msk [vmem:[#allocation2] sm:$0xff] %vm329_vm6, %v4292_v3 }
  0x9e   : > { %2946 = vrot.lane.b32.xlu1 %v4068_v52, %s4356_s26  ;;  %v2574_v32 = vrot.slane %v2573_v23, 4  ;;  %v3106_v34 = vrot.slane %v4082_v19, 5  ;;  %v4069_v36 = vcombine.low %v2771_v15, %v2781_v31  ;;  %v3160_v38 = vsel %vm4404_vm2, %v4132_v25, %v3159_v27  ;;  %v4108_v23 = vld [vmem:[%s4402_s19 + $0xa0] sm:$0xf]  ;;  %v4083_v25 = vld [vmem:[%s4402_s19 + $0x3c] sm:$0xe] }
  0x9f   : > { %v2584_v37 = vrot.slane %v2583_v26, 4  ;;  %v3161_v39 = vrot.slane %v3159_v27, 4  ;;  %v4827_v45 = vsel %vm4404_vm2, %v4124_v29, %v3103_v33  ;;  %v3105_v47 = vrot.slane %v3103_v33, 4  ;;  %v4308_v26 = vld [vmem:[%s4402_s19 + $0x24] sm:$0xff]   ;;  %339 = vst.msk [vmem:[#allocation2 + $0x48] sm:$0xff] %vm329_vm6, %v4293_v4  ;;  %338 = vst.msk [vmem:[#allocation2 + $0x40] sm:$0xff] %vm329_vm6, %v4294_v6 }
  0xa0   : > { %v2579_v42 = vsel %vm4454_vm5, %v2574_v32, %v2578_v16  ;;  %v686_v48 = vshrl.u32 %v382_v30, 16  ;;  %v689_v53 = vshll.u32 %v382_v30, 16  ;;  %v695_v54 = vshll.u32 %v383_v35, 16  ;;  %v4854_v16 = vld [vmem:[%s4402_s19 + $0x9c] sm:$0xe]  ;;  %340 = vst.msk [vmem:[#allocation2 + $0x50] sm:$0xff] %vm329_vm6, %v4303_v7 }
  0xa1   : > { %v2589_v51 = vsel %vm4454_vm5, %v2584_v37, %v2588_v24  ;;  %v3163_v52 = vsel %vm4404_vm2, %v3161_v39, %v3162_v28  ;;  %v4837_v56 = vpop.permute.xlu1 %847  ;;  %2930 = vrot.lane.b32.xlu0 %v4060_v14, %s4356_s26  ;;  %v3107_v59 = vsel %vm4404_vm2, %v3105_v47, %v3106_v34  ;;  %v699_v1 = vshrl.u32 %v383_v35, 16  ;;  %v4858_v24 = vld [vmem:[%s4402_s19 + $0xa4] sm:$0x1]  ;;  %v4084_v35 = vld [vmem:[%s4402_s19 + $0x40] sm:$0xf]  ;;  %332 = vst.msk [vmem:[#allocation2 + $0x10] sm:$0xff] %vm329_vm6, %v4304_v8 }
  0xa2   : > { %2948 = vrot.lane.b32.xlu1 %v4069_v36, %s4356_s26  ;;  %v4061_v57 = vcombine.low %v2579_v42, %v2589_v51  ;;  %v4148_v58 = vcombine.low %v3160_v38, %v3163_v52  ;;  %v688_v60 = vrot.slane %v686_v48, 4  ;;  %v4140_v61 = vcombine.low %v4827_v45, %v3107_v59  ;;  %v4085_v39 = vld [vmem:[%s4402_s19 + $0x44] sm:$0x1]  ;;  %341 = vst.msk [vmem:[#allocation2 + $0x58] sm:$0xff] %vm329_vm6, %v4307_v9  ;;  %v385_v51 = vld [vmem:[%s4402_s19 + $0x9c] sm:$0xf] }
  0xa3   : > { %v691_v62 = vrot.slane %v689_v53, 5  ;;  %v4844_v63 = vrot.slane %v695_v54, 5  ;;  %v705_v10 = vshll.u32 %v384_v40, 16  ;;  %v494_v12 = vshrl.u32 %v358_v41, 16  ;;  %333 = vst.msk [vmem:[#allocation2 + $0x18] sm:$0xff] %vm329_vm6, %v4308_v26 }
  0xa4   : > { %v497_v14 = vshll.u32 %v358_v41, 16  ;;  %v503_v15 = vshll.u32 %v359_v49, 16  ;;  %v701_v18 = vrot.slane %v699_v1, 4  ;;  %v507_v19 = vshrl.u32 %v359_v49, 16  ;;  %879 = vst.msk [vmem:[#allocation2 + $0x8] sm:$0xff] %vm877_vm7, %v4811_v21  ;;  %878 = vst.msk [vmem:[#allocation2] sm:$0xff] %vm877_vm7, %v4835_v55 }
  0xa5   : > { %v692_v17 = vor.u32 %v691_v62, %v688_v60  ;;  %v513_v22 = vshll.u32 %v360_v50, 16  ;;  %2932 = vrot.lane.b32.xlu0 %v4061_v57, %s4356_s26  ;;  %v707_v27 = vrot.slane %v705_v10, 5  ;;  %v496_v28 = vrot.slane %v494_v12, 4  ;;  %v4866_v37 = vpop.permute.xlu1 %1352  ;;  %887 = vst.msk [vmem:[#allocation2 + $0x48] sm:$0xff] %vm877_vm7, %v4837_v56  ;;  %v386_v55 = vld [vmem:[%s4402_s19 + $0xa0] sm:$0xf] }
  0xa6   : > { %3267 = vrot.lane.b32.xlu1 %v4148_v58, %s4357_s27  ;;  %v499_v29 = vrot.slane %v497_v14, 5  ;;  %v505_v30 = vrot.slane %v503_v15, 5  ;;  %v702_v32 = vor.u32 %v701_v18, %v4844_v63  ;;  %v509_v33 = vrot.slane %v507_v19, 4  ;;  %v846_v36 = vpop.permute.xlu0 %845  ;;  %1202 = vst.msk [vmem:[#allocation2] sm:$0xff] %vm1201_vm8, %v4783_v43  ;;  %1203 = vst.msk [vmem:[#allocation2 + $0x8] sm:$0xff] %vm1201_vm8, %v4809_v20 }
  0xa7   : > { %v693_v31 = vrot.slane %v692_v17, 4  ;;  %v515_v34 = vrot.slane %v513_v22, 5  ;;  %v4133_v45 = vrot.slane %v4854_v16, 9  ;;  %v3166_v48 = vrot.slane %v4108_v23, 5  ;;  %886 = vst.msk [vmem:[#allocation2 + $0x40] sm:$0xff] %vm877_vm7, %v846_v36 }
  0xa8   : > { %v500_v38 = vor.u32 %v499_v29, %v496_v28  ;;  %v703_v41 = vrot.slane %v702_v32, 4  ;;  %v510_v42 = vor.u32 %v509_v33, %v505_v30  ;;  %v3169_v49 = vrot.slane %v4858_v24, 5  ;;  %1211 = vst.msk [vmem:[#allocation2 + $0x48] sm:$0xff] %vm1201_vm8, %v4785_v44  ;;  %1210 = vst.msk [vmem:[#allocation2 + $0x40] sm:$0xff] %vm1201_vm8, %v4772_v13  ;;  %v387_v60 = vld [vmem:[%s4402_s19 + $0xa4] sm:$0x1] }
  0xa9   : > { %v698_v40 = vsel %vm4454_vm5, %v693_v31, %v4844_v63  ;;  %3251 = vrot.lane.b32.xlu0 %v4140_v61, %s4357_s27  ;;  %v4125_v50 = vrot.slane %v4083_v25, 9  ;;  %v3110_v21 = vrot.slane %v4084_v35, 5  ;;  %v3113_v54 = vrot.slane %v4085_v39, 5  ;;  %v361_v4 = vld [vmem:[%s4402_s19 + $0x3c] sm:$0xf]  ;;  %1392 = vst.msk [vmem:[#allocation2 + $0x48] sm:$0xff] %vm1382_vm9, %v4866_v37 }
  0xaa   : > { %v501_v47 = vrot.slane %v500_v38, 4  ;;  %v708_v52 = vsel %vm4454_vm5, %v703_v41, %v707_v27  ;;  %v511_v53 = vrot.slane %v510_v42, 4  ;;  %v1337_v56 = vpop.permute.xlu0 %1336  ;;  %v3167_v43 = vsel %vm4404_vm2, %v4133_v45, %v3166_v48  ;;  %v4911_v62 = vpop.permute.xlu1 %1895  ;;  %v362_v6 = vld [vmem:[%s4402_s19 + $0x40] sm:$0xf]  ;;  %v363_v12 = vld [vmem:[%s4402_s19 + $0x44] sm:$0x1] }
  0xab   : > { %v3734_v57 = vcombine.low %v698_v40, %v708_v52  ;;  %v3168_v20 = vrot.slane %v3166_v48, 4  ;;  %v3111_v44 = vsel %vm4404_vm2, %v4125_v50, %v3110_v21  ;;  %v3112_v13 = vrot.slane %v3110_v21, 4  ;;  %v930_v18 = vld [vmem:[%s4402_s19 + $0x90] sm:$0xe]  ;;  %v931_v19 = vld [vmem:[%s4402_s19 + $0x94] sm:$0xf] }
  0xac   : > { %v506_v58 = vsel %vm4454_vm5, %v501_v47, %v505_v30  ;;  %v516_v59 = vsel %vm4454_vm5, %v511_v53, %v515_v34  ;;  %v710_v61 = vshrl.u32 %v385_v51, 16  ;;  %v713_v2 = vshll.u32 %v385_v51, 16  ;;  %v932_v27 = vld [vmem:[%s4402_s19 + $0x98] sm:$0x1]  ;;  %v906_v32 = vld [vmem:[%s4402_s19 + $0x30] sm:$0xe] }
  0xad   : > { %853 = vrot.lane.b32.xlu1 %v3734_v57, %s4352_s22  ;;  %v3726_v63 = vcombine.low %v506_v58, %v516_v59  ;;  %v3170_v1 = vsel %vm4404_vm2, %v3168_v20, %v3169_v49  ;;  %v719_v3 = vshll.u32 %v386_v55, 16  ;;  %v3114_v8 = vsel %vm4404_vm2, %v3112_v13, %v3113_v54  ;;  %v907_v38 = vld [vmem:[%s4402_s19 + $0x34] sm:$0xf]  ;;  %v908_v47 = vld [vmem:[%s4402_s19 + $0x38] sm:$0x1]  ;;  %1383 = vst.msk [vmem:[#allocation2] sm:$0xff] %vm1382_vm9, %v4769_v11 }
  0xae   : > { %v4149_v7 = vcombine.low %v3167_v43, %v3170_v1  ;;  %v712_v9 = vrot.slane %v710_v61, 4  ;;  %v723_v10 = vshrl.u32 %v386_v55, 16  ;;  %v4141_v14 = vcombine.low %v3111_v44, %v3114_v8  ;;  %v4924_v22 = vpop.permute.xlu0 %1879  ;;  %v4318_v40 = vld [vmem:[%s4402_s19 + $0x90] sm:$0xff]   ;;  %1391 = vst.msk [vmem:[#allocation2 + $0x40] sm:$0xff] %vm1382_vm9, %v4750_v46  ;;  %1384 = vst.msk [vmem:[#allocation2 + $0x8] sm:$0xff] %vm1382_vm9, %v1337_v56 }
  0xaf   : > { %837 = vrot.lane.b32.xlu0 %v3726_v63, %s4352_s22  ;;  %v715_v15 = vrot.slane %v713_v2, 5  ;;  %v721_v16 = vrot.slane %v719_v3, 5  ;;  %v729_v17 = vshll.u32 %v387_v60, 16  ;;  %v518_v24 = vshrl.u32 %v361_v4, 16  ;;  %v933_v52 = vld [vmem:[%s4402_s19 + $0x9c] sm:$0xe] }
  0xb0   : > { %v725_v23 = vrot.slane %v723_v10, 4  ;;  %v521_v25 = vshll.u32 %v361_v4, 16  ;;  %v527_v26 = vshll.u32 %v362_v6, 16  ;;  %v531_v30 = vshrl.u32 %v362_v6, 16  ;;  %342 = vst.msk [vmem:[#allocation2 + $0x60] sm:$0xff] %vm329_vm6, %v4318_v40  ;;  %v4319_v53 = vld [vmem:[%s4402_s19 + $0x30] sm:$0xff]  }
  0xb1   : > { %3269 = vrot.lane.b32.xlu1 %v4149_v7, %s4357_s27  ;;  %v716_v28 = vor.u32 %v715_v15, %v712_v9  ;;  %v731_v29 = vrot.slane %v729_v17, 5  ;;  %v537_v31 = vshll.u32 %v363_v12, 16  ;;  %v520_v34 = vrot.slane %v518_v24, 4  ;;  %v934_v11 = vld [vmem:[%s4402_s19 + $0xa0] sm:$0xf]  ;;  %334 = vst.msk [vmem:[#allocation2 + $0x20] sm:$0xff] %vm329_vm6, %v4319_v53 }
  0xb2   : > { %v726_v33 = vor.u32 %v725_v23, %v721_v16  ;;  %v523_v35 = vrot.slane %v521_v25, 5  ;;  %v529_v36 = vrot.slane %v527_v26, 5  ;;  %v1898_v39 = vpop.permute.xlu1 %1897  ;;  %v533_v42 = vrot.slane %v531_v30, 4  ;;  %v4947_v57 = vld [vmem:[%s4402_s19 + $0xa4] sm:$0x1]  ;;  %1936 = vst.msk [vmem:[#allocation2 + $0x40] sm:$0xff] %vm1927_vm10, %v4911_v62 }
  0xb3   : > { %3253 = vrot.lane.b32.xlu0 %v4141_v14, %s4357_s27  ;;  %v717_v41 = vrot.slane %v716_v28, 4  ;;  %v539_v45 = vrot.slane %v537_v31, 5  ;;  %v3750_v50 = vrot.slane %v930_v18, 9  ;;  %v1079_v51 = vrot.slane %v931_v19, 5  ;;  %v909_v46 = vld [vmem:[%s4402_s19 + $0x3c] sm:$0xe] }
  0xb4   : > { %v727_v48 = vrot.slane %v726_v33, 4  ;;  %v524_v49 = vor.u32 %v523_v35, %v520_v34  ;;  %v534_v37 = vor.u32 %v533_v42, %v529_v36  ;;  %v1082_v54 = vrot.slane %v932_v27, 5  ;;  %v910_v44 = vld [vmem:[%s4402_s19 + $0x40] sm:$0xf]  ;;  %v911_v13 = vld [vmem:[%s4402_s19 + $0x44] sm:$0x1] }
  0xb5   : > { %v722_v21 = vsel %vm4454_vm5, %v717_v41, %v721_v16  ;;  %v3742_v55 = vrot.slane %v906_v32, 9  ;;  %v1080_v20 = vsel %vm4404_vm2, %v3750_v50, %v1079_v51  ;;  %v1081_v59 = vrot.slane %v1079_v51, 4  ;;  %v3854_v3 = vld [vmem:[%s4402_s19 + $0x9c] sm:$0xf]  ;;  %v3855_v8 = vld [vmem:[%s4402_s19 + $0xa0] sm:$0xf] }
  0xb6   : > { %v1882_v56 = vpop.permute.xlu0 %1881  ;;  %v732_v58 = vsel %vm4454_vm5, %v727_v48, %v731_v29  ;;  %v525_v43 = vrot.slane %v524_v49, 4  ;;  %v2217_v60 = vpop.permute.xlu1 %2216  ;;  %v535_v63 = vrot.slane %v534_v37, 4  ;;  %v1023_v1 = vrot.slane %v907_v38, 5  ;;  %1928 = vst.msk [vmem:[#allocation2] sm:$0xff] %vm1927_vm10, %v4924_v22  ;;  %1937 = vst.msk [vmem:[#allocation2 + $0x48] sm:$0xff] %vm1927_vm10, %v1898_v39  ;;  %v4320_v17 = vld [vmem:[%s4402_s19 + $0x9c] sm:$0xff]  }
  0xb7   : > { %v3735_v61 = vcombine.low %v722_v21, %v732_v58  ;;  %v1026_v2 = vrot.slane %v908_v47, 5  ;;  %v1083_v6 = vsel %vm4404_vm2, %v1081_v59, %v1082_v54  ;;  %v3751_v7 = vrot.slane %v933_v52, 9  ;;  %1929 = vst.msk [vmem:[#allocation2 + $0x8] sm:$0xff] %vm1927_vm10, %v1882_v56  ;;  %v3856_v16 = vld [vmem:[%s4402_s19 + $0xa4] sm:$0x1]  ;;  %v4321_v26 = vld [vmem:[%s4402_s19 + $0x3c] sm:$0xff]  }
  0xb8   : > { %v530_v4 = vsel %vm4454_vm5, %v525_v43, %v529_v36  ;;  %v540_v9 = vsel %vm4454_vm5, %v535_v63, %v539_v45  ;;  %v3766_v10 = vcombine.low %v1080_v20, %v1083_v6  ;;  %v1024_v12 = vsel %vm4404_vm2, %v3742_v55, %v1023_v1  ;;  %v3830_v28 = vld [vmem:[%s4402_s19 + $0x3c] sm:$0xf]  ;;  %343 = vst.msk [vmem:[#allocation2 + $0x68] sm:$0xff] %vm329_vm6, %v4320_v17  ;;  %v3831_v33 = vld [vmem:[%s4402_s19 + $0x40] sm:$0xf] }
  0xb9   : > { %855 = vrot.lane.b32.xlu1 %v3735_v61, %s4352_s22  ;;  %v1025_v14 = vrot.slane %v1023_v1, 4  ;;  %v3727_v18 = vcombine.low %v530_v4, %v540_v9  ;;  %v1086_v19 = vrot.slane %v934_v11, 5  ;;  %v1089_v23 = vrot.slane %v4947_v57, 5  ;;  %2257 = vst.msk [vmem:[#allocation2 + $0x40] sm:$0xff] %vm2248_vm11, %v2217_v60  ;;  %v3832_v52 = vld [vmem:[%s4402_s19 + $0x44] sm:$0x1] }
  0xba   : > { %v2201_v15 = vpop.permute.xlu0 %2200  ;;  %v3743_v24 = vrot.slane %v909_v46, 9  ;;  %v2219_v25 = vpop.permute.xlu1 %2218  ;;  %v1030_v22 = vrot.slane %v910_v44, 5  ;;  %v1033_v27 = vrot.slane %v911_v13, 5  ;;  %v1736_v32 = vshrl.u32 %v3854_v3, 16  ;;  %335 = vst.msk [vmem:[#allocation2 + $0x28] sm:$0xff] %vm329_vm6, %v4321_v26  ;;  %v4295_v55 = vld [vmem:[%s4402_s19 + $0x9c] sm:$0xff]  }
  0xbb   : > { %v1027_v62 = vsel %vm4404_vm2, %v1025_v14, %v1026_v2  ;;  %839 = vrot.lane.b32.xlu0 %v3727_v18, %s4352_s22  ;;  %v1087_v30 = vsel %vm4404_vm2, %v3751_v7, %v1086_v19  ;;  %v1088_v31 = vrot.slane %v1086_v19, 4  ;;  %2249 = vst.msk [vmem:[#allocation2] sm:$0xff] %vm2248_vm11, %v2201_v15  ;;  %2258 = vst.msk [vmem:[#allocation2 + $0x48] sm:$0xff] %vm2248_vm11, %v2219_v25  ;;  %v1739_v38 = vshll.u32 %v3854_v3, 16  ;;  %v3857_v43 = vld [vmem:[%s4402_s19 + $0xa8] sm:$0xf] }
  0xbc   : > { %v3758_v29 = vcombine.low %v1024_v12, %v1027_v62  ;;  %v1031_v34 = vsel %vm4404_vm2, %v3743_v24, %v1030_v22  ;;  %v1032_v35 = vrot.slane %v1030_v22, 4  ;;  %v1745_v39 = vshll.u32 %v3855_v8, 16  ;;  %v3858_v13 = vld [vmem:[%s4402_s19 + $0xac] sm:$0xf]  ;;  %v4296_v3 = vld [vmem:[%s4402_s19 + $0x3c] sm:$0xff]  }
  0xbd   : > { %1177 = vrot.lane.b32.xlu1 %v3766_v10, %s4351_s21  ;;  %v1090_v40 = vsel %vm4404_vm2, %v1088_v31, %v1089_v23  ;;  %v1738_v41 = vrot.slane %v1736_v32, 4  ;;  %v1749_v42 = vshrl.u32 %v3855_v8, 16  ;;  %v1755_v45 = vshll.u32 %v3856_v16, 16  ;;  %v4297_v9 = vld [vmem:[%s4402_s19 + $0xa8] sm:$0xff]   ;;  %v3859_v15 = vld [vmem:[%s4402_s19 + $0xb0] sm:$0x1] }
  0xbe   : > { %v2203_v36 = vpop.permute.xlu0 %2202  ;;  %v2398_v47 = vpop.permute.xlu1 %2397  ;;  %v3767_v48 = vcombine.low %v1087_v30, %v1090_v40  ;;  %v1034_v49 = vsel %vm4404_vm2, %v1032_v35, %v1033_v27  ;;  %v1741_v50 = vrot.slane %v1739_v38, 5  ;;  %v1747_v51 = vrot.slane %v1745_v39, 5  ;;  %v3833_v17 = vld [vmem:[%s4402_s19 + $0x48] sm:$0xf]  ;;  %v3834_v26 = vld [vmem:[%s4402_s19 + $0x4c] sm:$0xf] }
  0xbf   : > { %2250 = vst.msk [vmem:[#allocation2 + $0x8] sm:$0xff] %vm2248_vm11, %v2203_v36  ;;  %1161 = vrot.lane.b32.xlu0 %v3758_v29, %s4351_s21  ;;  %v3759_v53 = vcombine.low %v1031_v34, %v1034_v49  ;;  %v1751_v21 = vrot.slane %v1749_v42, 4  ;;  %v1757_v37 = vrot.slane %v1755_v45, 5  ;;  %v1544_v54 = vshrl.u32 %v3830_v28, 16  ;;  %v3835_v30 = vld [vmem:[%s4402_s19 + $0x50] sm:$0x1] }
  0xc0   : > { %v1742_v11 = vor.u32 %v1741_v50, %v1738_v41  ;;  %v1547_v57 = vshll.u32 %v3830_v28, 16  ;;  %v1553_v46 = vshll.u32 %v3831_v33, 16  ;;  %v1557_v56 = vshrl.u32 %v3831_v33, 16  ;;  %2438 = vst.msk [vmem:[#allocation2 + $0x40] sm:$0xff] %vm2429_vm12, %v2398_v47  ;;  %v3918_v31 = vld [vmem:[%s4402_s19 + $0x9c] sm:$0xe] }
  0xc1   : > { %1179 = vrot.lane.b32.xlu1 %v3767_v48, %s4351_s21  ;;  %v1752_v20 = vor.u32 %v1751_v21, %v1747_v51  ;;  %v1546_v59 = vrot.slane %v1544_v54, 4  ;;  %v1563_v44 = vshll.u32 %v3832_v52, 16  ;;  %v1760_v7 = vshrl.u32 %v3857_v43, 16  ;;  %v4298_v32 = vld [vmem:[%s4402_s19 + $0x48] sm:$0xff]   ;;  %v3919_v38 = vld [vmem:[%s4402_s19 + $0xa0] sm:$0xf] }
  0xc2   : > { %v2382_v58 = vpop.permute.xlu0 %2381  ;;  %v2400_v60 = vpop.permute.xlu1 %2399  ;;  %v1743_v61 = vrot.slane %v1742_v11, 4  ;;  %v1549_v63 = vrot.slane %v1547_v57, 5  ;;  %v1555_v1 = vrot.slane %v1553_v46, 5  ;;  %v1559_v2 = vrot.slane %v1557_v56, 4  ;;  %v3920_v39 = vld [vmem:[%s4402_s19 + $0xa4] sm:$0x1] }
  0xc3   : > { %2430 = vst.msk [vmem:[#allocation2] sm:$0xff] %vm2429_vm12, %v2382_v58  ;;  %2439 = vst.msk [vmem:[#allocation2 + $0x48] sm:$0xff] %vm2429_vm12, %v2400_v60  ;;  %1163 = vrot.lane.b32.xlu0 %v3759_v53, %s4351_s21  ;;  %v1753_v4 = vrot.slane %v1752_v20, 4  ;;  %v1565_v6 = vrot.slane %v1563_v44, 5  ;;  %v1763_v8 = vshll.u32 %v3857_v43, 16  ;;  %v1769_v16 = vshll.u32 %v3858_v13, 16 }
  0xc4   : > { %v1748_v10 = vsel %vm4454_vm5, %v1743_v61, %v1747_v51  ;;  %v1550_v12 = vor.u32 %v1549_v63, %v1546_v59  ;;  %v1560_v14 = vor.u32 %v1559_v2, %v1555_v1  ;;  %v1762_v23 = vrot.slane %v1760_v7, 4  ;;  %v3894_v47 = vld [vmem:[%s4402_s19 + $0x3c] sm:$0xe]  ;;  %v3895_v48 = vld [vmem:[%s4402_s19 + $0x40] sm:$0xf] }
  0xc5   : > { %1358 = vrot.lane.b32.xlu1 %v4295_v55, %s4350_s20  ;;  %v1758_v19 = vsel %vm4454_vm5, %v1753_v4, %v1757_v37  ;;  %v1765_v24 = vrot.slane %v1763_v8, 5  ;;  %v1773_v25 = vshrl.u32 %v3858_v13, 16  ;;  %v1771_v29 = vrot.slane %v1769_v16, 5  ;;  %v3896_v13 = vld [vmem:[%s4402_s19 + $0x44] sm:$0x1] }
  0xc6   : > { %v2384_v18 = vpop.permute.xlu0 %2383  ;;  %v5019_v62 = vpop.permute.xlu1 %2942  ;;  %v3878_v22 = vcombine.low %v1748_v10, %v1758_v19  ;;  %v1551_v27 = vrot.slane %v1550_v12, 4  ;;  %v1561_v28 = vrot.slane %v1560_v14, 4  ;;  %v1779_v35 = vshll.u32 %v3859_v15, 16  ;;  %v3921_v2 = vld [vmem:[%s4402_s19 + $0xa8] sm:$0xe] }
  0xc7   : > { %2431 = vst.msk [vmem:[#allocation2 + $0x8] sm:$0xff] %vm2429_vm12, %v2384_v18  ;;  %1342 = vrot.lane.b32.xlu0 %v4296_v3, %s4350_s20  ;;  %v1766_v33 = vor.u32 %v1765_v24, %v1762_v23  ;;  %v1775_v34 = vrot.slane %v1773_v25, 4  ;;  %v1568_v36 = vshrl.u32 %v3833_v17, 16  ;;  %v1571_v42 = vshll.u32 %v3833_v17, 16  ;;  %v3922_v8 = vld [vmem:[%s4402_s19 + $0xac] sm:$0xf] }
  0xc8   : > { %v1556_v40 = vsel %vm4454_vm5, %v1551_v27, %v1555_v1  ;;  %v1566_v41 = vsel %vm4454_vm5, %v1561_v28, %v1565_v6  ;;  %v1577_v45 = vshll.u32 %v3834_v26, 16  ;;  %v1781_v53 = vrot.slane %v1779_v35, 5  ;;  %v3897_v17 = vld [vmem:[%s4402_s19 + $0x48] sm:$0xe]  ;;  %v3898_v25 = vld [vmem:[%s4402_s19 + $0x4c] sm:$0xf] }
  0xc9   : > { %1360 = vrot.lane.b32.xlu1 %v4297_v9, %s4350_s20  ;;  %v3870_v50 = vcombine.low %v1556_v40, %v1566_v41  ;;  %v1767_v51 = vrot.slane %v1766_v33, 4  ;;  %v1776_v52 = vor.u32 %v1775_v34, %v1771_v29  ;;  %v1570_v37 = vrot.slane %v1568_v36, 4  ;;  %v3923_v9 = vld [vmem:[%s4402_s19 + $0xb0] sm:$0x1]  ;;  %2983 = vst.msk [vmem:[#allocation2 + $0x40] sm:$0xff] %vm2974_vm13, %v5019_v62 }
  0xca   : > { %v2927_v49 = vpop.permute.xlu0 %2926  ;;  %v1573_v54 = vrot.slane %v1571_v42, 5  ;;  %v1579_v55 = vrot.slane %v1577_v45, 5  ;;  %v1581_v11 = vshrl.u32 %v3834_v26, 16  ;;  %v1587_v56 = vshll.u32 %v3835_v30, 16  ;;  %v4046_v30 = vld [vmem:[%s4402_s19 + $0xa8] sm:$0xf] }
  0xcb   : > { %v2945_v21 = vpop.permute.xlu1 %2944  ;;  %1344 = vrot.lane.b32.xlu0 %v4298_v32, %s4350_s20  ;;  %v1772_v57 = vsel %vm4454_vm5, %v1767_v51, %v1771_v29  ;;  %v1777_v46 = vrot.slane %v1776_v52, 4  ;;  %v3942_v58 = vrot.slane %v3918_v31, 9  ;;  %v2126_v59 = vrot.slane %v3919_v38, 5  ;;  %2975 = vst.msk [vmem:[#allocation2] sm:$0xff] %vm2974_vm13, %v2927_v49  ;;  %v3899_v29 = vld [vmem:[%s4402_s19 + $0x50] sm:$0x1] }
  0xcc   : > { %v1574_v43 = vor.u32 %v1573_v54, %v1570_v37  ;;  %v1583_v20 = vrot.slane %v1581_v11, 4  ;;  %v2129_v44 = vrot.slane %v3920_v39, 5  ;;  %v1589_v61 = vrot.slane %v1587_v56, 5  ;;  %2984 = vst.msk [vmem:[#allocation2 + $0x48] sm:$0xff] %vm2974_vm13, %v2945_v21  ;;  %v4047_v35 = vld [vmem:[%s4402_s19 + $0xac] sm:$0xf] }
  0xcd   : > { %1903 = vrot.lane.b32.xlu1 %v3878_v22, %s4353_s23  ;;  %v1782_v60 = vsel %vm4454_vm5, %v1777_v46, %v1781_v53  ;;  %v3934_v63 = vrot.slane %v3894_v47, 9  ;;  %v2070_v1 = vrot.slane %v3895_v48, 5  ;;  %v2127_v7 = vsel %vm4404_vm2, %v3942_v58, %v2126_v59  ;;  %v4048_v41 = vld [vmem:[%s4402_s19 + $0xb0] sm:$0x1]  ;;  %v4022_v48 = vld [vmem:[%s4402_s19 + $0x48] sm:$0xf] }
  0xce   : > { %v3879_v3 = vcombine.low %v1772_v57, %v1782_v60  ;;  %v1575_v4 = vrot.slane %v1574_v43, 4  ;;  %v1584_v6 = vor.u32 %v1583_v20, %v1579_v55  ;;  %v2128_v12 = vrot.slane %v2126_v59, 4  ;;  %v4023_v11 = vld [vmem:[%s4402_s19 + $0x4c] sm:$0xf]  ;;  %v4024_v58 = vld [vmem:[%s4402_s19 + $0x50] sm:$0x1] }
  0xcf   : > { %v2929_v10 = vpop.permute.xlu0 %2928  ;;  %1887 = vrot.lane.b32.xlu0 %v3870_v50, %s4353_s23  ;;  %v5049_v14 = vsel %vm4404_vm2, %v3934_v63, %v2070_v1  ;;  %v2072_v15 = vrot.slane %v2070_v1, 4  ;;  %v2073_v16 = vrot.slane %v3896_v13, 5  ;;  %v3264_v18 = vpop.permute.xlu1 %3263  ;;  %v3943_v24 = vrot.slane %v3921_v2, 9  ;;  %v4299_v59 = vld [vmem:[%s4402_s19 + $0xa8] sm:$0xff]   ;;  %v4049_v63 = vld [vmem:[%s4402_s19 + $0xb4] sm:$0xf] }
  0xd0   : > { %v1580_v19 = vsel %vm4454_vm5, %v1575_v4, %v1579_v55  ;;  %v1585_v23 = vrot.slane %v1584_v6, 4  ;;  %v2130_v26 = vsel %vm4404_vm2, %v2128_v12, %v2129_v44  ;;  %v2133_v27 = vrot.slane %v3922_v8, 5  ;;  %2976 = vst.msk [vmem:[#allocation2 + $0x8] sm:$0xff] %vm2974_vm13, %v2929_v10  ;;  %v4050_v12 = vld [vmem:[%s4402_s19 + $0xb8] sm:$0xf] }
  0xd1   : > { %1905 = vrot.lane.b32.xlu1 %v3879_v3, %s4353_s23  ;;  %v2074_v22 = vsel %vm4404_vm2, %v2072_v15, %v2073_v16  ;;  %v2136_v28 = vrot.slane %v3923_v9, 5  ;;  %v3958_v32 = vcombine.low %v2127_v7, %v2130_v26  ;;  %v3935_v34 = vrot.slane %v3897_v17, 9  ;;  %3304 = vst.msk [vmem:[#allocation2 + $0x40] sm:$0xff] %vm3295_vm14, %v3264_v18  ;;  %v4051_v16 = vld [vmem:[%s4402_s19 + $0xbc] sm:$0x1]  ;;  %v4301_v18 = vld [vmem:[%s4402_s19 + $0xb4] sm:$0xff]  }
  0xd2   : > { %v1590_v31 = vsel %vm4454_vm5, %v1585_v23, %v1589_v61  ;;  %v3950_v33 = vcombine.low %v5049_v14, %v2074_v22  ;;  %v2134_v38 = vsel %vm4404_vm2, %v3943_v24, %v2133_v27  ;;  %v2135_v39 = vrot.slane %v2133_v27, 4 }
  0xd3   : > { %v3248_v62 = vpop.permute.xlu0 %3247  ;;  %v3871_v36 = vcombine.low %v1580_v19, %v1590_v31  ;;  %v2077_v40 = vrot.slane %v3898_v25, 5  ;;  %v2080_v42 = vrot.slane %v3899_v29, 5  ;;  %v2783_v45 = vshrl.u32 %v4046_v30, 16 }
  0xd4   : > { %v2786_v47 = vshll.u32 %v4046_v30, 16  ;;  %v2137_v49 = vsel %vm4404_vm2, %v2135_v39, %v2136_v28  ;;  %3296 = vst.msk [vmem:[#allocation2] sm:$0xff] %vm3295_vm14, %v3248_v62  ;;  %v2792_v53 = vshll.u32 %v4047_v35, 16  ;;  %v2796_v55 = vshrl.u32 %v4047_v35, 16  ;;  %v4300_v28 = vld [vmem:[%s4402_s19 + $0x48] sm:$0xff]  }
  0xd5   : > { %2224 = vrot.lane.b32.xlu1 %v3958_v32, %s4354_s24  ;;  %1889 = vrot.lane.b32.xlu0 %v3871_v36, %s4353_s23  ;;  %v2078_v50 = vsel %vm4404_vm2, %v3935_v34, %v2077_v40  ;;  %v2079_v51 = vrot.slane %v2077_v40, 4  ;;  %v3959_v21 = vcombine.low %v2134_v38, %v2137_v49  ;;  %v2785_v37 = vrot.slane %v2783_v45, 4  ;;  %v4026_v38 = vld [vmem:[%s4402_s19 + $0x58] sm:$0xf]  ;;  %v4027_v45 = vld [vmem:[%s4402_s19 + $0x5c] sm:$0x1] }
  0xd6   : > { %v850_v52 = vpop.permute.xlu1 %849  ;;  %v2788_v54 = vrot.slane %v2786_v47, 5  ;;  %v2794_v46 = vrot.slane %v2792_v53, 5  ;;  %v2802_v56 = vshll.u32 %v4048_v41, 16  ;;  %v2591_v43 = vshrl.u32 %v4022_v48, 16 }
  0xd7   : > { %888 = vst.msk [vmem:[#allocation2 + $0x50] sm:$0xff] %vm877_vm7, %v850_v52  ;;  %v2081_v57 = vsel %vm4404_vm2, %v2079_v51, %v2080_v42  ;;  %v2798_v60 = vrot.slane %v2796_v55, 4  ;;  %v2594_v61 = vshll.u32 %v4022_v48, 16  ;;  %v2600_v3 = vshll.u32 %v4023_v11, 16  ;;  %v4302_v52 = vld [vmem:[%s4402_s19 + $0x54] sm:$0xff]  }
  0xd8   : > { %v3951_v20 = vcombine.low %v2078_v50, %v2081_v57  ;;  %v2789_v13 = vor.u32 %v2788_v54, %v2785_v37  ;;  %v2804_v1 = vrot.slane %v2802_v56, 5  ;;  %v2593_v2 = vrot.slane %v2591_v43, 4  ;;  %v3320_v27 = vld [vmem:[#allocation2 + $0x40] sm:$0xff]  ;;  %v4309_v51 = vld [vmem:[%s5618_s1 + $0x10] ss:$0 sps:$4 sm:$0x33]  }
  0xd9   : > { %2226 = vrot.lane.b32.xlu1 %v3959_v21, %s4354_s24  ;;  %2208 = vrot.lane.b32.xlu0 %v3950_v33, %s4354_s24  ;;  %v2604_v4 = vshrl.u32 %v4023_v11, 16  ;;  %v2799_v8 = vor.u32 %v2798_v60, %v2794_v46  ;;  %v2596_v9 = vrot.slane %v2594_v61, 5  ;;  %v2610_v10 = vshll.u32 %v4024_v58, 16  ;;  %v4025_v33 = vld [vmem:[%s4402_s19 + $0x54] sm:$0xf] }
  0xda   : > { %v834_v44 = vpop.permute.xlu0 %833  ;;  %v3266_v6 = vpop.permute.xlu1 %3265  ;;  %v2790_v7 = vrot.slane %v2789_v13, 4  ;;  %v2602_v14 = vrot.slane %v2600_v3, 5  ;;  %v2807_v17 = vshrl.u32 %v4049_v63, 16  ;;  %v2810_v31 = vshll.u32 %v4049_v63, 16  ;;  %4218 = vmatprep.mubr.msk.bf16.mxu1 %vm3355_vm15, %v3320_v27  ;;  %v4110_v55 = vld [vmem:[%s4402_s19 + $0xa8] sm:$0xe]  ;;  %4240 = vmatprep.subr.msk.bf16.mxu0 %vm3404_vm0, %v4309_v51 }
  0xdb   : > { %880 = vst.msk [vmem:[#allocation2 + $0x10] sm:$0xff] %vm877_vm7, %v834_v44  ;;  %v2606_v15 = vrot.slane %v2604_v4, 4  ;;  %v2800_v23 = vrot.slane %v2799_v8, 4  ;;  %v2597_v24 = vor.u32 %v2596_v9, %v2593_v2  ;;  %v2612_v25 = vrot.slane %v2610_v10, 5  ;;  %v3312_v22 = vld [vmem:[#allocation2] sm:$0xff]  ;;  %4241 = vmatprep.subr.msk.bf16.mxu1 %vm3404_vm0, %v4309_v51 }
  0xdc   : > { %3305 = vst.msk [vmem:[#allocation2 + $0x48] sm:$0xff] %vm3295_vm14, %v3266_v6  ;;  %v2795_v19 = vsel %vm4454_vm5, %v2790_v7, %v2794_v46  ;;  %4202 = vmatprep.mubr.msk.bf16.mxu0 %vm3355_vm15, %v3312_v22  ;;  %v2809_v30 = vrot.slane %v2807_v17, 4  ;;  %v2816_v32 = vshll.u32 %v4050_v12, 16  ;;  %v2820_v35 = vshrl.u32 %v4050_v12, 16  ;;  %v4111_v43 = vld [vmem:[%s4402_s19 + $0xac] sm:$0xf] }
  0xdd   : > { %2405 = vrot.lane.b32.xlu1 %v4299_v59, %s4355_s25  ;;  %2210 = vrot.lane.b32.xlu0 %v3951_v20, %s4354_s24  ;;  %v2607_v29 = vor.u32 %v2606_v15, %v2602_v14  ;;  %v2805_v34 = vsel %vm4454_vm5, %v2800_v23, %v2804_v1  ;;  %v2598_v62 = vrot.slane %v2597_v24, 4  ;;  %v2826_v36 = vshll.u32 %v4051_v16, 16  ;;  %v4112_v20 = vld [vmem:[%s4402_s19 + $0xb0] sm:$0x1]  ;;  %v4086_v61 = vld [vmem:[%s4402_s19 + $0x48] sm:$0xe] }
  0xde   : > { %v3250_v26 = vpop.permute.xlu0 %3249  ;;  %v4070_v39 = vcombine.low %v2795_v19, %v2805_v34  ;;  %v2812_v41 = vrot.slane %v2810_v31, 5  ;;  %v2818_v42 = vrot.slane %v2816_v32, 5  ;;  %v2822_v48 = vrot.slane %v2820_v35, 4  ;;  %v4087_v4 = vld [vmem:[%s4402_s19 + $0x4c] sm:$0xf] }
  0xdf   : > { %3297 = vst.msk [vmem:[#allocation2 + $0x8] sm:$0xff] %vm3295_vm14, %v3250_v26  ;;  %v2608_v40 = vrot.slane %v2607_v29, 4  ;;  %v2603_v47 = vsel %vm4454_vm5, %v2598_v62, %v2602_v14  ;;  %v2828_v49 = vrot.slane %v2826_v36, 5  ;;  %v2615_v50 = vshrl.u32 %v4025_v33, 16  ;;  %v4088_v10 = vld [vmem:[%s4402_s19 + $0x50] sm:$0x1] }
  0xe0   : > { %v2813_v21 = vor.u32 %v2812_v41, %v2809_v30  ;;  %v2618_v37 = vshll.u32 %v4025_v33, 16  ;;  %v2624_v54 = vshll.u32 %v4026_v38, 16  ;;  %v2823_v57 = vor.u32 %v2822_v48, %v2818_v42  ;;  %v389_v19 = vld [vmem:[%s4402_s19 + $0xac] sm:$0xf]  ;;  %v390_v33 = vld [vmem:[%s4402_s19 + $0xb0] sm:$0x1] }
  0xe1   : > { %2407 = vrot.lane.b32.xlu1 %v4301_v18, %s4355_s25  ;;  %2389 = vrot.lane.b32.xlu0 %v4300_v28, %s4355_s25  ;;  %v2613_v53 = vsel %vm4454_vm5, %v2608_v40, %v2612_v25  ;;  %v2617_v46 = vrot.slane %v2615_v50, 4  ;;  %v2628_v56 = vshrl.u32 %v4026_v38, 16  ;;  %v2634_v60 = vshll.u32 %v4027_v45, 16  ;;  %v388_v18 = vld [vmem:[%s4402_s19 + $0xa8] sm:$0xf] }
  0xe2   : > { %v4062_v11 = vcombine.low %v2603_v47, %v2613_v53  ;;  %v2814_v59 = vrot.slane %v2813_v21, 4  ;;  %v2620_v44 = vrot.slane %v2618_v37, 5  ;;  %v2626_v13 = vrot.slane %v2624_v54, 5  ;;  %v364_v34 = vld [vmem:[%s4402_s19 + $0x48] sm:$0xf] }
  0xe3   : > { %v2824_v63 = vrot.slane %v2823_v57, 4  ;;  %v2630_v1 = vrot.slane %v2628_v56, 4  ;;  %v4134_v3 = vrot.slane %v4110_v55, 9  ;;  %v2636_v8 = vrot.slane %v2634_v60, 5  ;;  %v3321_v27 = vld [vmem:[#allocation2 + $0x48] sm:$0xff] }
  0xe4   : > { %v852_v58 = vpop.permute.xlu1 %851  ;;  %v2819_v6 = vsel %vm4454_vm5, %v2814_v59, %v2818_v42  ;;  %v2621_v7 = vor.u32 %v2620_v44, %v2617_v46  ;;  %v3406_v9 = vsel %vm3404_vm0, %v4309_v51, 0  ;;  %v3173_v15 = vrot.slane %v4111_v43, 5  ;;  %v365_v62 = vld [vmem:[%s4402_s19 + $0x4c] sm:$0xf]  ;;  %v366_v40 = vld [vmem:[%s4402_s19 + $0x50] sm:$0x1] }
  0xe5   : > { %889 = vst.msk [vmem:[#allocation2 + $0x58] sm:$0xff] %vm877_vm7, %v852_v58  ;;  %2950 = vrot.lane.b32.xlu1 %v4070_v39, %s4356_s26  ;;  %v836_v2 = vpop.permute.xlu0 %835  ;;  %2391 = vrot.lane.b32.xlu0 %v4302_v52, %s4355_s25  ;;  %v2829_v12 = vsel %vm4454_vm5, %v2824_v63, %v2828_v49  ;;  %v2631_v14 = vor.u32 %v2630_v1, %v2626_v13  ;;  %v3176_v16 = vrot.slane %v4112_v20, 5  ;;  %v4126_v25 = vrot.slane %v4086_v61, 9  ;;  %v4322_v53 = vld [vmem:[%s4402_s19 + $0xa8] sm:$0xff]   ;;  %v4113_v57 = vld [vmem:[%s4402_s19 + $0xb4] sm:$0xe] }
  0xe6   : > { %881 = vst.msk [vmem:[#allocation2 + $0x18] sm:$0xff] %vm877_vm7, %v836_v2  ;;  %4201 = vmatpush3.bf16.msra.mxu0 %v3406_v9  ;;  %v4071_v23 = vcombine.low %v2819_v6, %v2829_v12  ;;  %v2622_v24 = vrot.slane %v2621_v7, 4  ;;  %4239 = vmatpush3.bf16.msra.mxu1 %v3406_v9  ;;  %v3117_v26 = vrot.slane %v4087_v4, 5  ;;  %v3313_v22 = vld [vmem:[#allocation2 + $0x8] sm:$0xff]  ;;  %v3174_v29 = vsel %vm4404_vm2, %v4134_v3, %v3173_v15  ;;  %v4114_v46 = vld [vmem:[%s4402_s19 + $0xb8] sm:$0xf] }
  0xe7   : > { %v2632_v28 = vrot.slane %v2631_v14, 4  ;;  %v3175_v30 = vrot.slane %v3173_v15, 4  ;;  %v3120_v31 = vrot.slane %v4088_v10, 5  ;;  %v734_v39 = vshrl.u32 %v388_v18, 16  ;;  %v4323_v56 = vld [vmem:[%s4402_s19 + $0x48] sm:$0xff]   ;;  %344 = vst.msk [vmem:[#allocation2 + $0x70] sm:$0xff] %vm329_vm6, %v4322_v53 }
  0xe8   : > { %v1174_v17 = vpop.permute.xlu1 %1173  ;;  %v2627_v35 = vsel %vm4454_vm5, %v2622_v24, %v2626_v13  ;;  %v3118_v36 = vsel %vm4404_vm2, %v4126_v25, %v3117_v26  ;;  %v3119_v38 = vrot.slane %v3117_v26, 4  ;;  %v737_v45 = vshll.u32 %v388_v18, 16  ;;  %v4115_v44 = vld [vmem:[%s4402_s19 + $0xbc] sm:$0x1]  ;;  %v4089_v1 = vld [vmem:[%s4402_s19 + $0x54] sm:$0xe] }
  0xe9   : > { %1212 = vst.msk [vmem:[#allocation2 + $0x50] sm:$0xff] %vm1201_vm8, %v1174_v17  ;;  %v1158_v32 = vpop.permute.xlu0 %1157  ;;  %2934 = vrot.lane.b32.xlu0 %v4062_v11, %s4356_s26  ;;  %2952 = vrot.lane.b32.xlu1 %v4071_v23, %s4356_s26  ;;  %v2637_v41 = vsel %vm4454_vm5, %v2632_v28, %v2636_v8  ;;  %v3177_v42 = vsel %vm4404_vm2, %v3175_v30, %v3176_v16  ;;  %v743_v47 = vshll.u32 %v389_v19, 16  ;;  %v736_v52 = vrot.slane %v734_v39, 4  ;;  %v4090_v8 = vld [vmem:[%s4402_s19 + $0x58] sm:$0xf] }
  0xea   : > { %1204 = vst.msk [vmem:[#allocation2 + $0x10] sm:$0xff] %vm1201_vm8, %v1158_v32  ;;  %4203 = vmatmul.mubr.msk.bf16.vlgmr.msra.gmra.mrb[0].mxu0 %vm3355_vm15, %v3313_v22  ;;  %4219 = vmatmul.mubr.msk.bf16.vlgmr.msra.gmra.mrb[0].mxu1 %vm3355_vm15, %v3321_v27  ;;  %v4063_v49 = vcombine.low %v2627_v35, %v2637_v41  ;;  %v4150_v50 = vcombine.low %v3174_v29, %v3177_v42  ;;  %v739_v37 = vrot.slane %v737_v45, 5  ;;  %v747_v55 = vshrl.u32 %v389_v19, 16  ;;  %v4091_v15 = vld [vmem:[%s4402_s19 + $0x5c] sm:$0x1]  ;;  %v4324_v39 = vld [vmem:[%s4402_s19 + $0xb4] sm:$0xff]  }
  0xeb   : > { %v3121_v51 = vsel %vm4404_vm2, %v3119_v38, %v3120_v31  ;;  %v745_v54 = vrot.slane %v743_v47, 5  ;;  %v753_v58 = vshll.u32 %v390_v33, 16  ;;  %v542_v43 = vshrl.u32 %v364_v34, 16  ;;  %336 = vst.msk [vmem:[#allocation2 + $0x30] sm:$0xff] %vm329_vm6, %v4323_v56  ;;  %v391_v24 = vld [vmem:[%s4402_s19 + $0xb4] sm:$0xf] }
  0xec   : > { %v1176_v48 = vpop.permute.xlu1 %1175  ;;  %v4142_v21 = vcombine.low %v3118_v36, %v3121_v51  ;;  %v545_v20 = vshll.u32 %v364_v34, 16  ;;  %v551_v59 = vshll.u32 %v365_v62, 16  ;;  %v740_v13 = vor.u32 %v739_v37, %v736_v52  ;;  %v392_v35 = vld [vmem:[%s4402_s19 + $0xb8] sm:$0xf]  ;;  %v393_v47 = vld [vmem:[%s4402_s19 + $0xbc] sm:$0x1] }
  0xed   : > { %1213 = vst.msk [vmem:[#allocation2 + $0x58] sm:$0xff] %vm1201_vm8, %v1176_v48  ;;  %v1160_v11 = vpop.permute.xlu0 %1159  ;;  %2936 = vrot.lane.b32.xlu0 %v4063_v49, %s4356_s26  ;;  %3271 = vrot.lane.b32.xlu1 %v4150_v50, %s4357_s27  ;;  %v749_v60 = vrot.slane %v747_v55, 4  ;;  %v555_v61 = vshrl.u32 %v365_v62, 16  ;;  %v561_v63 = vshll.u32 %v366_v40, 16  ;;  %v755_v3 = vrot.slane %v753_v58, 5 }
  0xee   : > { %1205 = vst.msk [vmem:[#allocation2 + $0x18] sm:$0xff] %vm1201_vm8, %v1160_v11  ;;  %v544_v4 = vrot.slane %v542_v43, 4  ;;  %v547_v6 = vrot.slane %v545_v20, 5  ;;  %v553_v7 = vrot.slane %v551_v59, 5  ;;  %v741_v9 = vrot.slane %v740_v13, 4 }
  0xef   : > { %v750_v10 = vor.u32 %v749_v60, %v745_v54  ;;  %v557_v12 = vrot.slane %v555_v61, 4  ;;  %v563_v14 = vrot.slane %v561_v63, 5  ;;  %v4135_v18 = vrot.slane %v4113_v57, 9  ;;  %v367_v48 = vld [vmem:[%s4402_s19 + $0x54] sm:$0xf]  ;;  %345 = vst.msk [vmem:[#allocation2 + $0x78] sm:$0xff] %vm329_vm6, %v4324_v39 }
  0xf0   : > { %v1355_v2 = vpop.permute.xlu1 %1354  ;;  %v548_v17 = vor.u32 %v547_v6, %v544_v4  ;;  %v3180_v19 = vrot.slane %v4114_v46, 5  ;;  %v3183_v23 = vrot.slane %v4115_v44, 5  ;;  %v746_v25 = vsel %vm4454_vm5, %v741_v9, %v745_v54  ;;  %v368_v53 = vld [vmem:[%s4402_s19 + $0x58] sm:$0xf]  ;;  %v369_v57 = vld [vmem:[%s4402_s19 + $0x5c] sm:$0x1] }
  0xf1   : > { %1393 = vst.msk [vmem:[#allocation2 + $0x50] sm:$0xff] %vm1382_vm9, %v1355_v2  ;;  %v1339_v16 = vpop.permute.xlu0 %1338  ;;  %3255 = vrot.lane.b32.xlu0 %v4142_v21, %s4357_s27  ;;  %v751_v26 = vrot.slane %v750_v10, 4  ;;  %v558_v22 = vor.u32 %v557_v12, %v553_v7  ;;  %v4127_v27 = vrot.slane %v4089_v1, 9  ;;  %v3124_v32 = vrot.slane %v4090_v8, 5  ;;  %v4325_v46 = vld [vmem:[%s4402_s19 + $0x54] sm:$0xff]  }
  0xf2   : > { %1385 = vst.msk [vmem:[#allocation2 + $0x10] sm:$0xff] %vm1382_vm9, %v1339_v16  ;;  %v549_v29 = vrot.slane %v548_v17, 4  ;;  %v3181_v30 = vsel %vm4404_vm2, %v4135_v18, %v3180_v19  ;;  %v3182_v31 = vrot.slane %v3180_v19, 4  ;;  %v3127_v62 = vrot.slane %v4091_v15, 5  ;;  %v936_v59 = vld [vmem:[%s4402_s19 + $0xa8] sm:$0xe] }
  0xf3   : > { %v756_v33 = vsel %vm4454_vm5, %v751_v26, %v755_v3  ;;  %v559_v34 = vrot.slane %v558_v22, 4  ;;  %v758_v36 = vshrl.u32 %v391_v24, 16  ;;  %v3125_v45 = vsel %vm4404_vm2, %v4127_v27, %v3124_v32  ;;  %v937_v1 = vld [vmem:[%s4402_s19 + $0xac] sm:$0xf]  ;;  %337 = vst.msk [vmem:[#allocation2 + $0x38] sm:$0xff] %vm329_vm6, %v4325_v46 }
  0xf4   : > { %v1357_v28 = vpop.permute.xlu1 %1356  ;;  %v3736_v40 = vcombine.low %v746_v25, %v756_v33  ;;  %v554_v41 = vsel %vm4454_vm5, %v549_v29, %v553_v7  ;;  %v3184_v42 = vsel %vm4404_vm2, %v3182_v31, %v3183_v23  ;;  %v3126_v51 = vrot.slane %v3124_v32, 4  ;;  %v938_v7 = vld [vmem:[%s4402_s19 + $0xb0] sm:$0x1]  ;;  %v912_v15 = vld [vmem:[%s4402_s19 + $0x48] sm:$0xe] }
  0xf5   : > { %1394 = vst.msk [vmem:[#allocation2 + $0x58] sm:$0xff] %vm1382_vm9, %v1357_v28  ;;  %v1341_v38 = vpop.permute.xlu0 %1340  ;;  %v564_v49 = vsel %vm4454_vm5, %v559_v34, %v563_v14  ;;  %v4151_v50 = vcombine.low %v3181_v30, %v3184_v42  ;;  %v760_v52 = vrot.slane %v758_v36, 4  ;;  %v761_v54 = vshll.u32 %v391_v24, 16  ;;  %v913_v16 = vld [vmem:[%s4402_s19 + $0x4c] sm:$0xf] }
  0xf6   : > { %1386 = vst.msk [vmem:[#allocation2 + $0x18] sm:$0xff] %vm1382_vm9, %v1341_v38  ;;  %857 = vrot.lane.b32.xlu1 %v3736_v40, %s4352_s22  ;;  %v3728_v37 = vcombine.low %v554_v41, %v564_v49  ;;  %v767_v55 = vshll.u32 %v392_v35, 16  ;;  %v771_v11 = vshrl.u32 %v392_v35, 16  ;;  %v3128_v56 = vsel %vm4404_vm2, %v3126_v51, %v3127_v62  ;;  %v914_v24 = vld [vmem:[%s4402_s19 + $0x50] sm:$0x1] }
  0xf7   : > { %v777_v58 = vshll.u32 %v393_v47, 16  ;;  %v566_v43 = vshrl.u32 %v367_v48, 16  ;;  %v569_v20 = vshll.u32 %v367_v48, 16  ;;  %v4143_v13 = vcombine.low %v3125_v45, %v3128_v56  ;;  %v939_v25 = vld [vmem:[%s4402_s19 + $0xb4] sm:$0xe] }
  0xf8   : > { %v1900_v21 = vpop.permute.xlu1 %1899  ;;  %841 = vrot.lane.b32.xlu0 %v3728_v37, %s4352_s22  ;;  %v763_v60 = vrot.slane %v761_v54, 5  ;;  %v769_v61 = vrot.slane %v767_v55, 5  ;;  %v773_v63 = vrot.slane %v771_v11, 4  ;;  %v575_v6 = vshll.u32 %v368_v53, 16  ;;  %v940_v29 = vld [vmem:[%s4402_s19 + $0xb8] sm:$0xf] }
  0xf9   : > { %1938 = vst.msk [vmem:[#allocation2 + $0x50] sm:$0xff] %vm1927_vm10, %v1900_v21  ;;  %v1884_v44 = vpop.permute.xlu0 %1883  ;;  %v779_v2 = vrot.slane %v777_v58, 5  ;;  %v568_v3 = vrot.slane %v566_v43, 4  ;;  %v571_v4 = vrot.slane %v569_v20, 5  ;;  %v579_v12 = vshrl.u32 %v368_v53, 16 }
  0xfa   : > { %1930 = vst.msk [vmem:[#allocation2 + $0x10] sm:$0xff] %vm1927_vm10, %v1884_v44  ;;  %3273 = vrot.lane.b32.xlu1 %v4151_v50, %s4357_s27  ;;  %v764_v9 = vor.u32 %v763_v60, %v760_v52  ;;  %v774_v10 = vor.u32 %v773_v63, %v769_v61  ;;  %v585_v14 = vshll.u32 %v369_v57, 16  ;;  %v577_v18 = vrot.slane %v575_v6, 5  ;;  %v941_v30 = vld [vmem:[%s4402_s19 + $0xbc] sm:$0x1] }
  0xfb   : > { %v572_v17 = vor.u32 %v571_v4, %v568_v3  ;;  %v3752_v19 = vrot.slane %v936_v59, 9  ;;  %v1093_v23 = vrot.slane %v937_v1, 5  ;;  %v581_v27 = vrot.slane %v579_v12, 4  ;;  %v915_v62 = vld [vmem:[%s4402_s19 + $0x54] sm:$0xe] }
  0xfc   : > { %v1902_v8 = vpop.permute.xlu1 %1901  ;;  %3257 = vrot.lane.b32.xlu0 %v4143_v13, %s4357_s27  ;;  %v765_v26 = vrot.slane %v764_v9, 4  ;;  %v775_v22 = vrot.slane %v774_v10, 4  ;;  %v587_v28 = vrot.slane %v585_v14, 5  ;;  %v1096_v34 = vrot.slane %v938_v7, 5  ;;  %v916_v35 = vld [vmem:[%s4402_s19 + $0x58] sm:$0xf] }
  0xfd   : > { %1939 = vst.msk [vmem:[#allocation2 + $0x58] sm:$0xff] %vm1927_vm10, %v1902_v8  ;;  %v573_v31 = vrot.slane %v572_v17, 4  ;;  %v1094_v32 = vsel %vm4404_vm2, %v3752_v19, %v1093_v23  ;;  %v1095_v33 = vrot.slane %v1093_v23, 4  ;;  %v582_v41 = vor.u32 %v581_v27, %v577_v18  ;;  %v917_v45 = vld [vmem:[%s4402_s19 + $0x5c] sm:$0x1] }
  0xfe   : > { %v770_v39 = vsel %vm4454_vm5, %v765_v26, %v769_v61  ;;  %v780_v40 = vsel %vm4454_vm5, %v775_v22, %v779_v2  ;;  %v3744_v42 = vrot.slane %v912_v15, 9  ;;  %v1037_v50 = vrot.slane %v913_v16, 5  ;;  %v3860_v51 = vld [vmem:[%s4402_s19 + $0xb4] sm:$0xf]  ;;  %v3861_v54 = vld [vmem:[%s4402_s19 + $0xb8] sm:$0xf] }
  0xff   : > { %v1886_v36 = vpop.permute.xlu0 %1885  ;;  %v3737_v47 = vcombine.low %v770_v39, %v780_v40  ;;  %v578_v48 = vsel %vm4454_vm5, %v573_v31, %v577_v18  ;;  %v1097_v49 = vsel %vm4404_vm2, %v1095_v33, %v1096_v34  ;;  %v583_v52 = vrot.slane %v582_v41, 4  ;;  %v3862_v43 = vld [vmem:[%s4402_s19 + $0xbc] sm:$0x1]  ;;  %v3836_v2 = vld [vmem:[%s4402_s19 + $0x54] sm:$0xf] }
 0x100   : > { %v2221_v38 = vpop.permute.xlu1 %2220  ;;  %1931 = vst.msk [vmem:[#allocation2 + $0x18] sm:$0xff] %vm1927_vm10, %v1886_v36  ;;  %v3768_v53 = vcombine.low %v1094_v32, %v1097_v49  ;;  %v1040_v21 = vrot.slane %v914_v24, 5  ;;  %v3753_v37 = vrot.slane %v939_v25, 9  ;;  %v1038_v55 = vsel %vm4404_vm2, %v3744_v42, %v1037_v50  ;;  %v3837_v3 = vld [vmem:[%s4402_s19 + $0x58] sm:$0xf] }
 0x101   : > { %2259 = vst.msk [vmem:[#allocation2 + $0x50] sm:$0xff] %vm2248_vm11, %v2221_v38  ;;  %859 = vrot.lane.b32.xlu1 %v3737_v47, %s4352_s22  ;;  %v1039_v11 = vrot.slane %v1037_v50, 4  ;;  %v1100_v57 = vrot.slane %v940_v29, 5  ;;  %v1103_v46 = vrot.slane %v941_v30, 5  ;;  %v588_v20 = vsel %vm4454_vm5, %v583_v52, %v587_v28  ;;  %v3838_v24 = vld [vmem:[%s4402_s19 + $0x5c] sm:$0x1] }
 0x102   : > { %v3745_v59 = vrot.slane %v915_v62, 9  ;;  %v1044_v44 = vrot.slane %v916_v35, 5  ;;  %v1047_v13 = vrot.slane %v917_v45, 5  ;;  %v3729_v60 = vcombine.low %v578_v48, %v588_v20  ;;  %v3863_v28 = vld [vmem:[%s4402_s19 + $0xc0] sm:$0xf]  ;;  %v4310_v33 = vld [vmem:[%s4402_s19 + $0xb4] sm:$0xff]  }
 0x103   : > { %v2205_v56 = vpop.permute.xlu0 %2204  ;;  %v1041_v61 = vsel %vm4404_vm2, %v1039_v11, %v1040_v21  ;;  %v1101_v63 = vsel %vm4404_vm2, %v3753_v37, %v1100_v57  ;;  %v1102_v1 = vrot.slane %v1100_v57, 4  ;;  %v1784_v8 = vshrl.u32 %v3860_v51, 16  ;;  %v3864_v39 = vld [vmem:[%s4402_s19 + $0xc4] sm:$0xf]  ;;  %v3865_v52 = vld [vmem:[%s4402_s19 + $0xc8] sm:$0x1] }
 0x104   : > { %v2223_v58 = vpop.permute.xlu1 %2222  ;;  %2251 = vst.msk [vmem:[#allocation2 + $0x10] sm:$0xff] %vm2248_vm11, %v2205_v56  ;;  %v3760_v4 = vcombine.low %v1038_v55, %v1041_v61  ;;  %v1045_v6 = vsel %vm4404_vm2, %v3745_v59, %v1044_v44  ;;  %v1046_v7 = vrot.slane %v1044_v44, 4  ;;  %843 = vrot.lane.b32.xlu0 %v3729_v60, %s4352_s22  ;;  %v1787_v12 = vshll.u32 %v3860_v51, 16  ;;  %v3839_v11 = vld [vmem:[%s4402_s19 + $0x60] sm:$0xf] }
 0x105   : > { %2260 = vst.msk [vmem:[#allocation2 + $0x58] sm:$0xff] %vm2248_vm11, %v2223_v58  ;;  %1181 = vrot.lane.b32.xlu1 %v3768_v53, %s4351_s21  ;;  %v1104_v9 = vsel %vm4404_vm2, %v1102_v1, %v1103_v46  ;;  %v1793_v14 = vshll.u32 %v3861_v54, 16  ;;  %v1797_v15 = vshrl.u32 %v3861_v54, 16  ;;  %v1786_v19 = vrot.slane %v1784_v8, 4  ;;  %v4311_v53 = vld [vmem:[%s4402_s19 + $0x54] sm:$0xff]   ;;  %v4312_v57 = vld [vmem:[%s4402_s19 + $0xc0] sm:$0xff]  }
 0x106   : > { %v3769_v17 = vcombine.low %v1101_v63, %v1104_v9  ;;  %v1048_v18 = vsel %vm4404_vm2, %v1046_v7, %v1047_v13  ;;  %v1803_v23 = vshll.u32 %v3862_v43, 16  ;;  %v1789_v26 = vrot.slane %v1787_v12, 5  ;;  %v3840_v20 = vld [vmem:[%s4402_s19 + $0x64] sm:$0xf]  ;;  %v3841_v1 = vld [vmem:[%s4402_s19 + $0x68] sm:$0x1] }
 0x107   : > { %v2207_v10 = vpop.permute.xlu0 %2206  ;;  %v3761_v25 = vcombine.low %v1045_v6, %v1048_v18  ;;  %v1795_v22 = vrot.slane %v1793_v14, 5  ;;  %v1799_v27 = vrot.slane %v1797_v15, 4  ;;  %v1592_v30 = vshrl.u32 %v3836_v2, 16  ;;  %v3925_v9 = vld [vmem:[%s4402_s19 + $0xb8] sm:$0xf] }
 0x108   : > { %v2402_v16 = vpop.permute.xlu1 %2401  ;;  %2252 = vst.msk [vmem:[#allocation2 + $0x18] sm:$0xff] %vm2248_vm11, %v2207_v10  ;;  %v1805_v29 = vrot.slane %v1803_v23, 5  ;;  %v1595_v31 = vshll.u32 %v3836_v2, 16  ;;  %v1601_v32 = vshll.u32 %v3837_v3, 16  ;;  %1165 = vrot.lane.b32.xlu0 %v3760_v4, %s4351_s21  ;;  %v1790_v34 = vor.u32 %v1789_v26, %v1786_v19  ;;  %v3924_v2 = vld [vmem:[%s4402_s19 + $0xb4] sm:$0xe] }
 0x109   : > { %2440 = vst.msk [vmem:[#allocation2 + $0x50] sm:$0xff] %vm2429_vm12, %v2402_v16  ;;  %1183 = vrot.lane.b32.xlu1 %v3769_v17, %s4351_s21  ;;  %v1800_v62 = vor.u32 %v1799_v27, %v1795_v22  ;;  %v1605_v35 = vshrl.u32 %v3837_v3, 16  ;;  %v1611_v36 = vshll.u32 %v3838_v24, 16  ;;  %v1594_v41 = vrot.slane %v1592_v30, 4  ;;  %v4313_v3 = vld [vmem:[%s4402_s19 + $0x60] sm:$0xff]  }
 0x10a   : > { %v1597_v42 = vrot.slane %v1595_v31, 5  ;;  %v1603_v45 = vrot.slane %v1601_v32, 5  ;;  %v1808_v47 = vshrl.u32 %v3863_v28, 16  ;;  %v1791_v48 = vrot.slane %v1790_v34, 4  ;;  %v3926_v10 = vld [vmem:[%s4402_s19 + $0xbc] sm:$0x1] }
 0x10b   : > { %v2386_v38 = vpop.permute.xlu0 %2385  ;;  %v1801_v49 = vrot.slane %v1800_v62, 4  ;;  %v1607_v50 = vrot.slane %v1605_v35, 4  ;;  %v1613_v51 = vrot.slane %v1611_v36, 5  ;;  %v1811_v54 = vshll.u32 %v3863_v28, 16  ;;  %v3900_v17 = vld [vmem:[%s4402_s19 + $0x54] sm:$0xe] }
 0x10c   : > { %v2404_v40 = vpop.permute.xlu1 %2403  ;;  %2432 = vst.msk [vmem:[#allocation2 + $0x10] sm:$0xff] %vm2429_vm12, %v2386_v38  ;;  %v1598_v21 = vor.u32 %v1597_v42, %v1594_v41  ;;  %v1810_v37 = vrot.slane %v1808_v47, 4  ;;  %v1817_v55 = vshll.u32 %v3864_v39, 16  ;;  %1167 = vrot.lane.b32.xlu0 %v3761_v25, %s4351_s21  ;;  %v1796_v46 = vsel %vm4454_vm5, %v1791_v48, %v1795_v22  ;;  %v3901_v30 = vld [vmem:[%s4402_s19 + $0x58] sm:$0xf] }
 0x10d   : > { %2441 = vst.msk [vmem:[#allocation2 + $0x58] sm:$0xff] %vm2429_vm12, %v2404_v40  ;;  %1362 = vrot.lane.b32.xlu1 %v4310_v33, %s4350_s20  ;;  %v1806_v56 = vsel %vm4454_vm5, %v1801_v49, %v1805_v29  ;;  %v1608_v58 = vor.u32 %v1607_v50, %v1603_v45  ;;  %v1821_v43 = vshrl.u32 %v3864_v39, 16  ;;  %v1813_v61 = vrot.slane %v1811_v54, 5  ;;  %v3902_v62 = vld [vmem:[%s4402_s19 + $0x5c] sm:$0x1] }
 0x10e   : > { %v3880_v13 = vcombine.low %v1796_v46, %v1806_v56  ;;  %v1599_v60 = vrot.slane %v1598_v21, 4  ;;  %v1819_v63 = vrot.slane %v1817_v55, 5  ;;  %v1827_v7 = vshll.u32 %v3865_v52, 16  ;;  %v3927_v40 = vld [vmem:[%s4402_s19 + $0xc0] sm:$0xe] }
 0x10f   : > { %v2388_v59 = vpop.permute.xlu0 %2387  ;;  %v1609_v4 = vrot.slane %v1608_v58, 4  ;;  %v1823_v6 = vrot.slane %v1821_v43, 4  ;;  %v1616_v8 = vshrl.u32 %v3839_v11, 16  ;;  %v1814_v14 = vor.u32 %v1813_v61, %v1810_v37  ;;  %v3928_v41 = vld [vmem:[%s4402_s19 + $0xc4] sm:$0xf] }
 0x110   : > { %v2947_v44 = vpop.permute.xlu1 %2946  ;;  %2433 = vst.msk [vmem:[#allocation2 + $0x18] sm:$0xff] %vm2429_vm12, %v2388_v59  ;;  %v1604_v12 = vsel %vm4454_vm5, %v1599_v60, %v1603_v45  ;;  %v1619_v15 = vshll.u32 %v3839_v11, 16  ;;  %v1625_v16 = vshll.u32 %v3840_v20, 16  ;;  %1346 = vrot.lane.b32.xlu0 %v4311_v53, %s4350_s20  ;;  %v1829_v23 = vrot.slane %v1827_v7, 5  ;;  %v3929_v49 = vld [vmem:[%s4402_s19 + $0xc8] sm:$0x1] }
 0x111   : > { %2985 = vst.msk [vmem:[#allocation2 + $0x50] sm:$0xff] %vm2974_vm13, %v2947_v44  ;;  %1364 = vrot.lane.b32.xlu1 %v4312_v57, %s4350_s20  ;;  %v1614_v18 = vsel %vm4454_vm5, %v1609_v4, %v1613_v51  ;;  %v1824_v19 = vor.u32 %v1823_v6, %v1819_v63  ;;  %v1618_v24 = vrot.slane %v1616_v8, 4  ;;  %v1815_v27 = vrot.slane %v1814_v14, 4  ;;  %v3903_v54 = vld [vmem:[%s4402_s19 + $0x60] sm:$0xe] }
 0x112   : > { %v3872_v22 = vcombine.low %v1604_v12, %v1614_v18  ;;  %v1621_v28 = vrot.slane %v1619_v15, 5  ;;  %v5293_v29 = vrot.slane %v1625_v16, 5  ;;  %v1629_v32 = vshrl.u32 %v3840_v20, 16  ;;  %v3904_v56 = vld [vmem:[%s4402_s19 + $0x64] sm:$0xf] }
 0x113   : > { %v2931_v25 = vpop.permute.xlu0 %2930  ;;  %v1825_v31 = vrot.slane %v1824_v19, 4  ;;  %v1635_v33 = vshll.u32 %v3841_v1, 16  ;;  %v3944_v34 = vrot.slane %v3924_v2, 9  ;;  %v1820_v35 = vsel %vm4454_vm5, %v1815_v27, %v1819_v63  ;;  %v3905_v44 = vld [vmem:[%s4402_s19 + $0x68] sm:$0x1] }
 0x114   : > { %v2949_v26 = vpop.permute.xlu1 %2948  ;;  %2977 = vst.msk [vmem:[#allocation2 + $0x10] sm:$0xff] %vm2974_vm13, %v2931_v25  ;;  %v1622_v36 = vor.u32 %v1621_v28, %v1618_v24  ;;  %v2140_v38 = vrot.slane %v3925_v9, 5  ;;  %v2143_v39 = vrot.slane %v3926_v10, 5  ;;  %1348 = vrot.lane.b32.xlu0 %v4313_v3, %s4350_s20  ;;  %v1631_v45 = vrot.slane %v1629_v32, 4  ;;  %v4053_v3 = vld [vmem:[%s4402_s19 + $0xc4] sm:$0xf] }
 0x115   : > { %2986 = vst.msk [vmem:[#allocation2 + $0x58] sm:$0xff] %vm2974_vm13, %v2949_v26  ;;  %1907 = vrot.lane.b32.xlu1 %v3880_v13, %s4353_s23  ;;  %v1830_v42 = vsel %vm4454_vm5, %v1825_v31, %v1829_v23  ;;  %v1637_v47 = vrot.slane %v1635_v33, 5  ;;  %v3936_v48 = vrot.slane %v3900_v17, 9  ;;  %v2084_v11 = vrot.slane %v3901_v30, 5  ;;  %v4052_v13 = vld [vmem:[%s4402_s19 + $0xc0] sm:$0xf] }
 0x116   : > { %v3881_v52 = vcombine.low %v1820_v35, %v1830_v42  ;;  %v1623_v53 = vrot.slane %v1622_v36, 4  ;;  %v2141_v21 = vsel %vm4404_vm2, %v3944_v34, %v2140_v38  ;;  %v2142_v37 = vrot.slane %v2140_v38, 4  ;;  %v4054_v4 = vld [vmem:[%s4402_s19 + $0xc8] sm:$0x1]  ;;  %v4028_v6 = vld [vmem:[%s4402_s19 + $0x60] sm:$0xf] }
 0x117   : > { %v2933_v50 = vpop.permute.xlu0 %2932  ;;  %v1632_v55 = vor.u32 %v1631_v45, %v5293_v29  ;;  %v2087_v57 = vrot.slane %v3902_v62, 5  ;;  %v3945_v46 = vrot.slane %v3927_v40, 9  ;;  %v2147_v20 = vrot.slane %v3928_v41, 5  ;;  %v4029_v12 = vld [vmem:[%s4402_s19 + $0x64] sm:$0xf] }
 0x118   : > { %v3268_v51 = vpop.permute.xlu1 %3267  ;;  %2978 = vst.msk [vmem:[#allocation2 + $0x18] sm:$0xff] %vm2974_vm13, %v2933_v50  ;;  %v1628_v58 = vsel %vm4454_vm5, %v1623_v53, %v5293_v29  ;;  %v2144_v43 = vsel %vm4404_vm2, %v2142_v37, %v2143_v39  ;;  %v2150_v59 = vrot.slane %v3929_v49, 5  ;;  %1891 = vrot.lane.b32.xlu0 %v3872_v22, %s4353_s23  ;;  %v2085_v63 = vsel %vm4404_vm2, %v3936_v48, %v2084_v11  ;;  %v4030_v29 = vld [vmem:[%s4402_s19 + $0x68] sm:$0x1]  ;;  %v4055_v40 = vld [vmem:[%s4402_s19 + $0xcc] sm:$0xf] }
 0x119   : > { %3306 = vst.msk [vmem:[#allocation2 + $0x50] sm:$0xff] %vm3295_vm14, %v3268_v51  ;;  %1909 = vrot.lane.b32.xlu1 %v3881_v52, %s4353_s23  ;;  %v1633_v60 = vrot.slane %v1632_v55, 4  ;;  %v3960_v61 = vcombine.low %v2141_v21, %v2144_v43  ;;  %v2086_v1 = vrot.slane %v2084_v11, 4  ;;  %v2148_v7 = vsel %vm4404_vm2, %v3945_v46, %v2147_v20  ;;  %v4056_v48 = vld [vmem:[%s4402_s19 + $0xd0] sm:$0xf]  ;;  %v4314_v49 = vld [vmem:[%s4402_s19 + $0xc0] sm:$0xff]  }
 0x11a   : > { %v2149_v8 = vrot.slane %v2147_v20, 4  ;;  %v3937_v9 = vrot.slane %v3903_v54, 9  ;;  %v2091_v10 = vrot.slane %v3904_v56, 5  ;;  %v2094_v16 = vrot.slane %v3905_v44, 5  ;;  %v4057_v43 = vld [vmem:[%s4402_s19 + $0xd4] sm:$0x1] }
 0x11b   : > { %v3252_v2 = vpop.permute.xlu0 %3251  ;;  %v1638_v14 = vsel %vm4454_vm5, %v1633_v60, %v1637_v47  ;;  %v2088_v15 = vsel %vm4404_vm2, %v2086_v1, %v2087_v57  ;;  %v2831_v17 = vshrl.u32 %v4052_v13, 16  ;;  %v2834_v28 = vshll.u32 %v4052_v13, 16  ;;  %v4316_v1 = vld [vmem:[%s4402_s19 + $0xcc] sm:$0xff]  }
 0x11c   : > { %3298 = vst.msk [vmem:[#allocation2 + $0x10] sm:$0xff] %vm3295_vm14, %v3252_v2  ;;  %v3873_v18 = vcombine.low %v1628_v58, %v1638_v14  ;;  %v3952_v19 = vcombine.low %v2085_v63, %v2088_v15  ;;  %v2151_v23 = vsel %vm4404_vm2, %v2149_v8, %v2150_v59  ;;  %v2092_v24 = vsel %vm4404_vm2, %v3937_v9, %v2091_v10  ;;  %v4031_v63 = vld [vmem:[%s4402_s19 + $0x6c] sm:$0xf]  ;;  %v4032_v14 = vld [vmem:[%s4402_s19 + $0x70] sm:$0xf] }
 0x11d   : > { %2228 = vrot.lane.b32.xlu1 %v3960_v61, %s4354_s24  ;;  %v3961_v25 = vcombine.low %v2148_v7, %v2151_v23  ;;  %v2093_v26 = vrot.slane %v2091_v10, 4  ;;  %v2833_v27 = vrot.slane %v2831_v17, 4  ;;  %v2840_v31 = vshll.u32 %v4053_v3, 16  ;;  %v4315_v7 = vld [vmem:[%s4402_s19 + $0x60] sm:$0xff]  }
 0x11e   : > { %1893 = vrot.lane.b32.xlu0 %v3873_v18, %s4353_s23  ;;  %v2844_v32 = vshrl.u32 %v4053_v3, 16  ;;  %v2850_v33 = vshll.u32 %v4054_v4, 16  ;;  %v2639_v34 = vshrl.u32 %v4028_v6, 16  ;;  %v2836_v36 = vrot.slane %v2834_v28, 5  ;;  %v4033_v18 = vld [vmem:[%s4402_s19 + $0x74] sm:$0x1] }
 0x11f   : > { %v854_v22 = vpop.permute.xlu1 %853  ;;  %v2095_v62 = vsel %vm4404_vm2, %v2093_v26, %v2094_v16  ;;  %v2642_v38 = vshll.u32 %v4028_v6, 16  ;;  %v2648_v39 = vshll.u32 %v4029_v12, 16  ;;  %v2842_v42 = vrot.slane %v2840_v31, 5  ;;  %v4116_v23 = vld [vmem:[%s4402_s19 + $0xc0] sm:$0xe] }
 0x120   : > { %v3322_v30 = vld [vmem:[#allocation2 + $0x50] sm:$0xff]  ;;  %890 = vst.msk [vmem:[#allocation2 + $0x60] sm:$0xff] %vm877_vm7, %v854_v22  ;;  %v3953_v41 = vcombine.low %v2092_v24, %v2095_v62  ;;  %v2846_v45 = vrot.slane %v2844_v32, 4  ;;  %v2852_v47 = vrot.slane %v2850_v33, 5  ;;  %v2837_v50 = vor.u32 %v2836_v36, %v2833_v27  ;;  %v4117_v27 = vld [vmem:[%s4402_s19 + $0xc4] sm:$0xf] }
 0x121   : > { %4222 = vmatprep.mubr.msk.bf16.mxu1 %vm3355_vm15, %v3322_v30  ;;  %v838_v35 = vpop.permute.xlu0 %837  ;;  %2230 = vrot.lane.b32.xlu1 %v3961_v25, %s4354_s24  ;;  %v2641_v51 = vrot.slane %v2639_v34, 4  ;;  %v2644_v52 = vrot.slane %v2642_v38, 5  ;;  %v5353_v53 = vrot.slane %v2648_v39, 5  ;;  %v2652_v55 = vshrl.u32 %v4029_v12, 16  ;;  %v4118_v28 = vld [vmem:[%s4402_s19 + $0xc8] sm:$0x1] }
 0x122   : > { %882 = vst.msk [vmem:[#allocation2 + $0x20] sm:$0xff] %vm877_vm7, %v838_v35  ;;  %2212 = vrot.lane.b32.xlu0 %v3952_v19, %s4354_s24  ;;  %v2847_v54 = vor.u32 %v2846_v45, %v2842_v42  ;;  %v2658_v11 = vshll.u32 %v4030_v29, 16  ;;  %v2855_v57 = vshrl.u32 %v4055_v40, 16  ;;  %v2838_v46 = vrot.slane %v2837_v50, 4  ;;  %v4317_v29 = vld [vmem:[%s4402_s19 + $0x6c] sm:$0xff]  }
 0x123   : > { %v3270_v21 = vpop.permute.xlu1 %3269  ;;  %v3314_v37 = vld [vmem:[#allocation2 + $0x10] sm:$0xff]  ;;  %v2645_v56 = vor.u32 %v2644_v52, %v2641_v51  ;;  %v2858_v20 = vshll.u32 %v4055_v40, 16  ;;  %v2864_v59 = vshll.u32 %v4056_v48, 16  ;;  %v2654_v13 = vrot.slane %v2652_v55, 4  ;;  %v4092_v40 = vld [vmem:[%s4402_s19 + $0x60] sm:$0xe] }
 0x124   : > { %3307 = vst.msk [vmem:[#allocation2 + $0x58] sm:$0xff] %vm3295_vm14, %v3270_v21  ;;  %4206 = vmatprep.mubr.msk.bf16.mxu0 %vm3355_vm15, %v3314_v37  ;;  %v2848_v44 = vrot.slane %v2847_v54, 4  ;;  %v2660_v60 = vrot.slane %v2658_v11, 5  ;;  %v2857_v61 = vrot.slane %v2855_v57, 4  ;;  %v2843_v2 = vsel %vm4454_vm5, %v2838_v46, %v2842_v42  ;;  %v4119_v54 = vld [vmem:[%s4402_s19 + $0xcc] sm:$0xe] }
 0x125   : > { %v3254_v58 = vpop.permute.xlu0 %3253  ;;  %2409 = vrot.lane.b32.xlu1 %v4314_v49, %s4355_s25  ;;  %v2646_v3 = vrot.slane %v2645_v56, 4  ;;  %v2860_v4 = vrot.slane %v2858_v20, 5  ;;  %v5365_v6 = vrot.slane %v2864_v59, 5  ;;  %v2655_v9 = vor.u32 %v2654_v13, %v5353_v53  ;;  %v4094_v49 = vld [vmem:[%s4402_s19 + $0x68] sm:$0x1] }
 0x126   : > { %3299 = vst.msk [vmem:[#allocation2 + $0x18] sm:$0xff] %vm3295_vm14, %v3254_v58  ;;  %2214 = vrot.lane.b32.xlu0 %v3953_v41, %s4354_s24  ;;  %v2853_v8 = vsel %vm4454_vm5, %v2848_v44, %v2852_v47  ;;  %v2868_v10 = vshrl.u32 %v4056_v48, 16  ;;  %v2874_v12 = vshll.u32 %v4057_v43, 16  ;;  %v2663_v19 = vshrl.u32 %v4031_v63, 16  ;;  %v4093_v41 = vld [vmem:[%s4402_s19 + $0x64] sm:$0xf] }
 0x127   : > { %v4072_v15 = vcombine.low %v2843_v2, %v2853_v8  ;;  %v2651_v16 = vsel %vm4454_vm5, %v2646_v3, %v5353_v53  ;;  %v2861_v17 = vor.u32 %v2860_v4, %v2857_v61  ;;  %v2656_v24 = vrot.slane %v2655_v9, 4  ;;  %v4120_v58 = vld [vmem:[%s4402_s19 + $0xd0] sm:$0xf]  ;;  %v4121_v13 = vld [vmem:[%s4402_s19 + $0xd4] sm:$0x1] }
 0x128   : > { %v2870_v25 = vrot.slane %v2868_v10, 4  ;;  %v2876_v26 = vrot.slane %v2874_v12, 5  ;;  %v2666_v22 = vshll.u32 %v4031_v63, 16  ;;  %v2665_v31 = vrot.slane %v2663_v19, 4  ;;  %v4096_v8 = vld [vmem:[%s4402_s19 + $0x70] sm:$0xf] }
 0x129   : > { %2411 = vrot.lane.b32.xlu1 %v4316_v1, %s4355_s25  ;;  %v2862_v30 = vrot.slane %v2861_v17, 4  ;;  %v2672_v32 = vshll.u32 %v4032_v14, 16  ;;  %v2676_v33 = vshrl.u32 %v4032_v14, 16  ;;  %v2661_v35 = vsel %vm4454_vm5, %v2656_v24, %v2660_v60 }
 0x12a   : > { %2393 = vrot.lane.b32.xlu0 %v4315_v7, %s4355_s25  ;;  %v2871_v36 = vor.u32 %v2870_v25, %v5365_v6  ;;  %v2668_v38 = vrot.slane %v2666_v22, 5  ;;  %v2682_v39 = vshll.u32 %v4033_v18, 16  ;;  %v4064_v42 = vcombine.low %v2651_v16, %v2661_v35  ;;  %v4095_v7 = vld [vmem:[%s4402_s19 + $0x6c] sm:$0xe] }
 0x12b   : > { %v856_v34 = vpop.permute.xlu1 %855  ;;  %v3323_v62 = vld [vmem:[#allocation2 + $0x58] sm:$0xff]  ;;  %v2867_v45 = vsel %vm4454_vm5, %v2862_v30, %v5365_v6  ;;  %v2674_v47 = vrot.slane %v2672_v32, 5  ;;  %v2678_v48 = vrot.slane %v2676_v33, 4  ;;  %v4136_v37 = vrot.slane %v4116_v23, 9 }
 0x12c   : > { %891 = vst.msk [vmem:[#allocation2 + $0x68] sm:$0xff] %vm877_vm7, %v856_v34  ;;  %4223 = vmatmul.mubr.msk.bf16.gmra.mrb[4].mxu1 %vm3355_vm15, %v3323_v62  ;;  %v2872_v51 = vrot.slane %v2871_v36, 4  ;;  %v2669_v52 = vor.u32 %v2668_v38, %v2665_v31  ;;  %v2684_v53 = vrot.slane %v2682_v39, 5  ;;  %v3187_v11 = vrot.slane %v4117_v27, 5 }
 0x12d   : > { %v3315_v50 = vld [vmem:[#allocation2 + $0x18] sm:$0xff]  ;;  %v840_v21 = vpop.permute.xlu0 %839  ;;  %2954 = vrot.lane.b32.xlu1 %v4072_v15, %s4356_s26  ;;  %v2679_v55 = vor.u32 %v2678_v48, %v2674_v47  ;;  %v3190_v57 = vrot.slane %v4118_v28, 5  ;;  %v4128_v46 = vrot.slane %v4092_v40, 9  ;;  %v3131_v59 = vrot.slane %v4093_v41, 5  ;;  %v4097_v15 = vld [vmem:[%s4402_s19 + $0x74] sm:$0x1] }
 0x12e   : > { %4207 = vmatmul.mubr.msk.bf16.gmra.mrb[4].mxu0 %vm3355_vm15, %v3315_v50  ;;  %883 = vst.msk [vmem:[#allocation2 + $0x28] sm:$0xff] %vm877_vm7, %v840_v21  ;;  %2395 = vrot.lane.b32.xlu0 %v4317_v29, %s4355_s25  ;;  %v2877_v43 = vsel %vm4454_vm5, %v2872_v51, %v2876_v26  ;;  %v2670_v20 = vrot.slane %v2669_v52, 4  ;;  %v3134_v44 = vrot.slane %v4094_v49, 5  ;;  %v3188_v63 = vsel %vm4404_vm2, %v4136_v37, %v3187_v11 }
 0x12f   : > { %v1178_v56 = vpop.permute.xlu1 %1177  ;;  %v4073_v60 = vcombine.low %v2867_v45, %v2877_v43  ;;  %v2680_v61 = vrot.slane %v2679_v55, 4  ;;  %v3189_v1 = vrot.slane %v3187_v11, 4  ;;  %v3133_v3 = vrot.slane %v3131_v59, 4 }
 0x130   : > { %1214 = vst.msk [vmem:[#allocation2 + $0x60] sm:$0xff] %vm1201_vm8, %v1178_v56  ;;  %v2675_v2 = vsel %vm4454_vm5, %v2670_v20, %v2674_v47  ;;  %v4137_v6 = vrot.slane %v4119_v54, 9  ;;  %v3194_v12 = vrot.slane %v4120_v58, 5  ;;  %v3197_v14 = vrot.slane %v4121_v13, 5 }
 0x131   : > { %v1162_v4 = vpop.permute.xlu0 %1161  ;;  %2956 = vrot.lane.b32.xlu1 %v4073_v60, %s4356_s26  ;;  %v2685_v9 = vsel %vm4454_vm5, %v2680_v61, %v2684_v53  ;;  %v3191_v10 = vsel %vm4404_vm2, %v3189_v1, %v3190_v57  ;;  %v3132_v19 = vsel %vm4404_vm2, %v4128_v46, %v3131_v59  ;;  %v3135_v5 = vsel %vm4404_vm2, %v3133_v3, %v3134_v44 }
 0x132   : > { %1206 = vst.msk [vmem:[#allocation2 + $0x20] sm:$0xff] %vm1201_vm8, %v1162_v4  ;;  %2938 = vrot.lane.b32.xlu0 %v4064_v42, %s4356_s26  ;;  %v4065_v17 = vcombine.low %v2675_v2, %v2685_v9  ;;  %v4152_v18 = vcombine.low %v3188_v63, %v3191_v10  ;;  %v3195_v23 = vsel %vm4404_vm2, %v4137_v6, %v3194_v12  ;;  %v3196_v24 = vrot.slane %v3194_v12, 4 }
 0x133   : > { %v1180_v16 = vpop.permute.xlu1 %1179  ;;  %v4129_v25 = vrot.slane %v4095_v7, 9  ;;  %v3138_v26 = vrot.slane %v4096_v8, 5  ;;  %v3141_v22 = vrot.slane %v4097_v15, 5  ;;  %v4144_v31 = vcombine.low %v3132_v19, %v3135_v5 }
 0x134   : > { %1215 = vst.msk [vmem:[#allocation2 + $0x68] sm:$0xff] %vm1201_vm8, %v1180_v16  ;;  %v3198_v28 = vsel %vm4404_vm2, %v3196_v24, %v3197_v14 }
 0x135   : > { %v1164_v27 = vpop.permute.xlu0 %1163  ;;  %3275 = vrot.lane.b32.xlu1 %v4152_v18, %s4357_s27  ;;  %v3140_v29 = vrot.slane %v3138_v26, 4  ;;  %v4153_v32 = vcombine.low %v3195_v23, %v3198_v28  ;;  %v3139_v33 = vsel %vm4404_vm2, %v4129_v25, %v3138_v26 }
 0x136   : > { %1207 = vst.msk [vmem:[#allocation2 + $0x28] sm:$0xff] %vm1201_vm8, %v1164_v27  ;;  %2940 = vrot.lane.b32.xlu0 %v4065_v17, %s4356_s26 }
 0x137   : > { %v1359_v30 = vpop.permute.xlu1 %1358  ;;  %v3142_v34 = vsel %vm4404_vm2, %v3140_v29, %v3141_v22 }
 0x138   : > { %1395 = vst.msk [vmem:[#allocation2 + $0x60] sm:$0xff] %vm1382_vm9, %v1359_v30  ;;  %v4145_v36 = vcombine.low %v3139_v33, %v3142_v34 }
 0x139   : > { %v1343_v62 = vpop.permute.xlu0 %1342  ;;  %3277 = vrot.lane.b32.xlu1 %v4153_v32, %s4357_s27 }
 0x13a   : > { %1387 = vst.msk [vmem:[#allocation2 + $0x20] sm:$0xff] %vm1382_vm9, %v1343_v62  ;;  %3259 = vrot.lane.b32.xlu0 %v4144_v31, %s4357_s27  ;;  %v5505_v62 = vld [vmem:[%s5619_s2] ss:$0 sm:$0xff] }
 0x13b   : > { %v1361_v35 = vpop.permute.xlu1 %1360 }
 0x13c   : > { %1396 = vst.msk [vmem:[#allocation2 + $0x68] sm:$0xff] %vm1382_vm9, %v1361_v35 }
 0x13d   : > { %v1345_v38 = vpop.permute.xlu0 %1344 }
 0x13e   : > { %1388 = vst.msk [vmem:[#allocation2 + $0x28] sm:$0xff] %vm1382_vm9, %v1345_v38  ;;  %3261 = vrot.lane.b32.xlu0 %v4145_v36, %s4357_s27 }
 0x13f   : > { %v1904_v39 = vpop.permute.xlu1 %1903 }
 0x140   : > { %1940 = vst.msk [vmem:[#allocation2 + $0x60] sm:$0xff] %vm1927_vm10, %v1904_v39 }
 0x141   : > { %v1888_v0 = vpop.permute.xlu0 %1887 }
 0x142   : > { %1932 = vst.msk [vmem:[#allocation2 + $0x20] sm:$0xff] %vm1927_vm10, %v1888_v0 }
 0x143   : > { %v1906_v40 = vpop.permute.xlu1 %1905 }
 0x144   : > { %1941 = vst.msk [vmem:[#allocation2 + $0x68] sm:$0xff] %vm1927_vm10, %v1906_v40 }
 0x147   : > { %v2225_v41 = vpop.permute.xlu1 %2224  ;;  %v1890_v42 = vpop.permute.xlu0 %1889 }
 0x148   : > { %2261 = vst.msk [vmem:[#allocation2 + $0x60] sm:$0xff] %vm2248_vm11, %v2225_v41 }
 0x149   : > { %1933 = vst.msk [vmem:[#allocation2 + $0x28] sm:$0xff] %vm1927_vm10, %v1890_v42 }
 0x14b   : > { %v2227_v45 = vpop.permute.xlu1 %2226  ;;  %v2209_v47 = vpop.permute.xlu0 %2208 }
 0x14c   : > { %2262 = vst.msk [vmem:[#allocation2 + $0x68] sm:$0xff] %vm2248_vm11, %v2227_v45  ;;  %2253 = vst.msk [vmem:[#allocation2 + $0x20] sm:$0xff] %vm2248_vm11, %v2209_v47 }
 0x14f   : > { %v2406_v48 = vpop.permute.xlu1 %2405  ;;  %v2211_v49 = vpop.permute.xlu0 %2210 }
 0x150   : > { %2442 = vst.msk [vmem:[#allocation2 + $0x60] sm:$0xff] %vm2429_vm12, %v2406_v48 }
 0x151   : > { %2254 = vst.msk [vmem:[#allocation2 + $0x28] sm:$0xff] %vm2248_vm11, %v2211_v49 }
 0x153   : > { %v2408_v50 = vpop.permute.xlu1 %2407  ;;  %v2390_v51 = vpop.permute.xlu0 %2389 }
 0x154   : > { %2443 = vst.msk [vmem:[#allocation2 + $0x68] sm:$0xff] %vm2429_vm12, %v2408_v50  ;;  %2434 = vst.msk [vmem:[#allocation2 + $0x20] sm:$0xff] %vm2429_vm12, %v2390_v51 }
 0x157   : > { %v2951_v52 = vpop.permute.xlu1 %2950  ;;  %v2392_v53 = vpop.permute.xlu0 %2391 }
 0x158   : > { %2987 = vst.msk [vmem:[#allocation2 + $0x60] sm:$0xff] %vm2974_vm13, %v2951_v52 }
 0x159   : > { %2435 = vst.msk [vmem:[#allocation2 + $0x28] sm:$0xff] %vm2429_vm12, %v2392_v53 }
 0x15b   : > { %v2935_v21 = vpop.permute.xlu0 %2934  ;;  %v2953_v37 = vpop.permute.xlu1 %2952 }
 0x15c   : > { %2979 = vst.msk [vmem:[#allocation2 + $0x20] sm:$0xff] %vm2974_vm13, %v2935_v21  ;;  %2988 = vst.msk [vmem:[#allocation2 + $0x68] sm:$0xff] %vm2974_vm13, %v2953_v37 }
 0x15f   : > { %v2937_v54 = vpop.permute.xlu0 %2936  ;;  %v3272_v55 = vpop.permute.xlu1 %3271 }
 0x160   : > { %2980 = vst.msk [vmem:[#allocation2 + $0x28] sm:$0xff] %vm2974_vm13, %v2937_v54 }
 0x161   : > { %3308 = vst.msk [vmem:[#allocation2 + $0x60] sm:$0xff] %vm3295_vm14, %v3272_v55 }
 0x163   : > { %v3256_v11 = vpop.permute.xlu0 %3255 }
 0x164   : > { %3300 = vst.msk [vmem:[#allocation2 + $0x20] sm:$0xff] %vm3295_vm14, %v3256_v11 }
 0x168   : > { %v3324_v57 = vld [vmem:[#allocation2 + $0x60] sm:$0xff]  ;;  %v858_v46 = vpop.permute.xlu1 %857 }
 0x169   : > { %4226 = vmatprep.mubr.msk.bf16.mxu1 %vm3355_vm15, %v3324_v57  ;;  %892 = vst.msk [vmem:[#allocation2 + $0x70] sm:$0xff] %vm877_vm7, %v858_v46 }
 0x16a   : > { %v842_v56 = vpop.permute.xlu0 %841 }
 0x16b   : > { %v3316_v58 = vld [vmem:[#allocation2 + $0x20] sm:$0xff]  ;;  %884 = vst.msk [vmem:[#allocation2 + $0x30] sm:$0xff] %vm877_vm7, %v842_v56 }
 0x16c   : > { %4210 = vmatprep.mubr.msk.bf16.mxu0 %vm3355_vm15, %v3316_v58  ;;  %v3274_v43 = vpop.permute.xlu1 %3273 }
 0x16d   : > { %3309 = vst.msk [vmem:[#allocation2 + $0x68] sm:$0xff] %vm3295_vm14, %v3274_v43 }
 0x16e   : > { %v3258_v20 = vpop.permute.xlu0 %3257 }
 0x16f   : > { %3301 = vst.msk [vmem:[#allocation2 + $0x28] sm:$0xff] %vm3295_vm14, %v3258_v20 }
 0x173   : > { %v860_v59 = vpop.permute.xlu1 %859 }
 0x174   : > { %893 = vst.msk [vmem:[#allocation2 + $0x78] sm:$0xff] %vm877_vm7, %v860_v59  ;;  %v3325_v44 = vld [vmem:[#allocation2 + $0x68] sm:$0xff] }
 0x175   : > { %4227 = vmatmul.mubr.msk.bf16.gmra.mrb[8].mxu1 %vm3355_vm15, %v3325_v44 }
 0x176   : > { %v3317_v13 = vld [vmem:[#allocation2 + $0x28] sm:$0xff]  ;;  %v844_v60 = vpop.permute.xlu0 %843 }
 0x177   : > { %v1182_v61 = vpop.permute.xlu1 %1181  ;;  %4211 = vmatmul.mubr.msk.bf16.gmra.mrb[8].mxu0 %vm3355_vm15, %v3317_v13  ;;  %885 = vst.msk [vmem:[#allocation2 + $0x38] sm:$0xff] %vm877_vm7, %v844_v60 }
 0x178   : > { %1216 = vst.msk [vmem:[#allocation2 + $0x70] sm:$0xff] %vm1201_vm8, %v1182_v61 }
 0x17a   : > { %v1166_v63 = vpop.permute.xlu0 %1165 }
 0x17b   : > { %v1184_v1 = vpop.permute.xlu1 %1183  ;;  %1208 = vst.msk [vmem:[#allocation2 + $0x30] sm:$0xff] %vm1201_vm8, %v1166_v63 }
 0x17c   : > { %1217 = vst.msk [vmem:[#allocation2 + $0x78] sm:$0xff] %vm1201_vm8, %v1184_v1 }
 0x17e   : > { %v1168_v2 = vpop.permute.xlu0 %1167 }
 0x17f   : > { %v1363_v3 = vpop.permute.xlu1 %1362  ;;  %1209 = vst.msk [vmem:[#allocation2 + $0x38] sm:$0xff] %vm1201_vm8, %v1168_v2 }
 0x180   : > { %1397 = vst.msk [vmem:[#allocation2 + $0x70] sm:$0xff] %vm1382_vm9, %v1363_v3 }
 0x182   : > { %v1347_v4 = vpop.permute.xlu0 %1346 }
 0x183   : > { %v1365_v6 = vpop.permute.xlu1 %1364  ;;  %1389 = vst.msk [vmem:[#allocation2 + $0x30] sm:$0xff] %vm1382_vm9, %v1347_v4 }
 0x184   : > { %1398 = vst.msk [vmem:[#allocation2 + $0x78] sm:$0xff] %vm1382_vm9, %v1365_v6 }
 0x186   : > { %v1349_v7 = vpop.permute.xlu0 %1348 }
 0x187   : > { %v1908_v8 = vpop.permute.xlu1 %1907  ;;  %1390 = vst.msk [vmem:[#allocation2 + $0x38] sm:$0xff] %vm1382_vm9, %v1349_v7 }
 0x188   : > { %1942 = vst.msk [vmem:[#allocation2 + $0x70] sm:$0xff] %vm1927_vm10, %v1908_v8 }
 0x18a   : > { %v1892_v9 = vpop.permute.xlu0 %1891 }
 0x18b   : > { %v1910_v10 = vpop.permute.xlu1 %1909  ;;  %1934 = vst.msk [vmem:[#allocation2 + $0x30] sm:$0xff] %vm1927_vm10, %v1892_v9 }
 0x18c   : > { %1943 = vst.msk [vmem:[#allocation2 + $0x78] sm:$0xff] %vm1927_vm10, %v1910_v10 }
 0x18f   : > { %v2229_v12 = vpop.permute.xlu1 %2228 }
 0x190   : > { %v1894_v14 = vpop.permute.xlu0 %1893  ;;  %2263 = vst.msk [vmem:[#allocation2 + $0x70] sm:$0xff] %vm2248_vm11, %v2229_v12 }
 0x191   : > { %1935 = vst.msk [vmem:[#allocation2 + $0x38] sm:$0xff] %vm1927_vm10, %v1894_v14 }
 0x193   : > { %v2231_v15 = vpop.permute.xlu1 %2230 }
 0x194   : > { %v2213_v16 = vpop.permute.xlu0 %2212  ;;  %2264 = vst.msk [vmem:[#allocation2 + $0x78] sm:$0xff] %vm2248_vm11, %v2231_v15 }
 0x195   : > { %2255 = vst.msk [vmem:[#allocation2 + $0x30] sm:$0xff] %vm2248_vm11, %v2213_v16 }
 0x197   : > { %v2410_v17 = vpop.permute.xlu1 %2409 }
 0x198   : > { %v2215_v18 = vpop.permute.xlu0 %2214  ;;  %2444 = vst.msk [vmem:[#allocation2 + $0x70] sm:$0xff] %vm2429_vm12, %v2410_v17 }
 0x199   : > { %2256 = vst.msk [vmem:[#allocation2 + $0x38] sm:$0xff] %vm2248_vm11, %v2215_v18 }
 0x19b   : > { %v2412_v19 = vpop.permute.xlu1 %2411 }
 0x19c   : > { %v2394_v5 = vpop.permute.xlu0 %2393  ;;  %2445 = vst.msk [vmem:[#allocation2 + $0x78] sm:$0xff] %vm2429_vm12, %v2412_v19 }
 0x19d   : > { %2436 = vst.msk [vmem:[#allocation2 + $0x30] sm:$0xff] %vm2429_vm12, %v2394_v5 }
 0x19f   : > { %v2955_v23 = vpop.permute.xlu1 %2954 }
 0x1a0   : > { %v2396_v24 = vpop.permute.xlu0 %2395  ;;  %2989 = vst.msk [vmem:[#allocation2 + $0x70] sm:$0xff] %vm2974_vm13, %v2955_v23 }
 0x1a1   : > { %2437 = vst.msk [vmem:[#allocation2 + $0x38] sm:$0xff] %vm2429_vm12, %v2396_v24 }
 0x1a3   : > { %v2957_v25 = vpop.permute.xlu1 %2956 }
 0x1a4   : > { %v2939_v26 = vpop.permute.xlu0 %2938  ;;  %2990 = vst.msk [vmem:[#allocation2 + $0x78] sm:$0xff] %vm2974_vm13, %v2957_v25 }
 0x1a5   : > { %2981 = vst.msk [vmem:[#allocation2 + $0x30] sm:$0xff] %vm2974_vm13, %v2939_v26 }
 0x1a7   : > { %v3276_v22 = vpop.permute.xlu1 %3275 }
 0x1a8   : > { %v2941_v27 = vpop.permute.xlu0 %2940  ;;  %3310 = vst.msk [vmem:[#allocation2 + $0x70] sm:$0xff] %vm3295_vm14, %v3276_v22 }
 0x1a9   : > { %2982 = vst.msk [vmem:[#allocation2 + $0x38] sm:$0xff] %vm2974_vm13, %v2941_v27 }
 0x1ab   : > { %v3278_v28 = vpop.permute.xlu1 %3277 }
 0x1ac   : > { %v3260_v29 = vpop.permute.xlu0 %3259  ;;  %3311 = vst.msk [vmem:[#allocation2 + $0x78] sm:$0xff] %vm3295_vm14, %v3278_v28 }
 0x1ad   : > { %3302 = vst.msk [vmem:[#allocation2 + $0x30] sm:$0xff] %vm3295_vm14, %v3260_v29 }
 0x1af   : > { %v3326_v30 = vld [vmem:[#allocation2 + $0x70] sm:$0xff] }
 0x1b0   : > { %v3262_v31 = vpop.permute.xlu0 %3261  ;;  %4230 = vmatprep.mubr.msk.bf16.mxu1 %vm3355_vm15, %v3326_v30 }
 0x1b1   : > { %3303 = vst.msk [vmem:[#allocation2 + $0x38] sm:$0xff] %vm3295_vm14, %v3262_v31 }
 0x1b3   : > { %v3327_v32 = vld [vmem:[#allocation2 + $0x78] sm:$0xff] }
 0x1b4   : > { %v3318_v33 = vld [vmem:[#allocation2 + $0x30] sm:$0xff]  ;;  %4231 = vmatmul.mubr.msk.bf16.gmra.mrb[12].mxu1 %vm3355_vm15, %v3327_v32 }
 0x1b5   : > { %4214 = vmatprep.mubr.msk.bf16.mxu0 %vm3355_vm15, %v3318_v33 }
 0x1b8   : > { %v3319_v34 = vld [vmem:[#allocation2 + $0x38] sm:$0xff] }
 0x1b9   : > { %4215 = vmatmul.mubr.msk.bf16.gmra.mrb[12].mxu0 %vm3355_vm15, %v3319_v34 }
 0x1bd   : > { %v4204_v35 = vpop.f32.mrb[0].mxu0  ;;  %v4220_v36 = vpop.f32.mrb[0].mxu1 }
 0x1be   : > { %v3451_v38 = vadd.f32 %v4204_v35, %v5505_v62  ;;  %v3515_v39 = vadd.f32 %v4220_v36, %v5505_v62  ;;  %v3442_v0 = vpop.f32.mrb[1].mxu0  ;;  %v3506_v40 = vpop.f32.mrb[1].mxu1 }
 0x1bf   : > { %v3443_v41 = vadd.f32 %v5505_v62, %v3442_v0  ;;  %v3507_v42 = vadd.f32 %v5505_v62, %v3506_v40  ;;  %v4205_v45 = vpop.f32.mrb[2].mxu0  ;;  %v4221_v47 = vpop.f32.mrb[2].mxu1 }
 0x1c0   : > { %3571 = vst.msk [vmem:[%s5510_s16 + $0x10] sm:$0xff] %vm329_vm6, %v3451_v38  ;;  %3587 = vst.msk [vmem:[%s5510_s16 + $0x90] sm:$0xff] %vm329_vm6, %v3515_v39  ;;  %v3454_v48 = vadd.f32 %v4205_v45, %v5505_v62  ;;  %v3518_v49 = vadd.f32 %v4221_v47, %v5505_v62  ;;  %v3445_v50 = vpop.f32.mrb[3].mxu0  ;;  %v3509_v51 = vpop.f32.mrb[3].mxu1 }
 0x1c1   : > { %3569 = vst.msk [vmem:[%s5510_s16] sm:$0xff] %vm329_vm6, %v3443_v41  ;;  %3585 = vst.msk [vmem:[%s5510_s16 + $0x80] sm:$0xff] %vm329_vm6, %v3507_v42  ;;  %v3446_v52 = vadd.f32 %v5505_v62, %v3445_v50  ;;  %v3510_v53 = vadd.f32 %v5505_v62, %v3509_v51 }
 0x1c2   : > { %3572 = vst.msk [vmem:[%s5510_s16 + $0x18] sm:$0xff] %vm329_vm6, %v3454_v48  ;;  %3588 = vst.msk [vmem:[%s5510_s16 + $0x98] sm:$0xff] %vm329_vm6, %v3518_v49 }
 0x1c3   : > { %3570 = vst.msk [vmem:[%s5510_s16 + $0x8] sm:$0xff] %vm329_vm6, %v3446_v52  ;;  %3586 = vst.msk [vmem:[%s5510_s16 + $0x88] sm:$0xff] %vm329_vm6, %v3510_v53 }
 0x1ff   : > { %v4224_v21 = vpop.f32.mrb[4].mxu1 }
 0x200   : > { %v3531_v37 = vadd.f32 %v4224_v21, %v5505_v62  ;;  %v3522_v54 = vpop.f32.mrb[5].mxu1 }
 0x201   : > { %v4208_v55 = vpop.f32.mrb[4].mxu0  ;;  %v3523_v11 = vadd.f32 %v5505_v62, %v3522_v54  ;;  %v4225_v57 = vpop.f32.mrb[6].mxu1 }
 0x202   : > { %v3467_v46 = vadd.f32 %v4208_v55, %v5505_v62  ;;  %3591 = vst.msk [vmem:[%s5510_s16 + $0xb0] sm:$0xff] %vm329_vm6, %v3531_v37  ;;  %v3458_v56 = vpop.f32.mrb[5].mxu0  ;;  %v3534_v58 = vadd.f32 %v4225_v57, %v5505_v62  ;;  %v3525_v43 = vpop.f32.mrb[7].mxu1 }
 0x203   : > { %v3459_v20 = vadd.f32 %v5505_v62, %v3458_v56  ;;  %3589 = vst.msk [vmem:[%s5510_s16 + $0xa0] sm:$0xff] %vm329_vm6, %v3523_v11  ;;  %v4209_v59 = vpop.f32.mrb[6].mxu0  ;;  %v3526_v44 = vadd.f32 %v5505_v62, %v3525_v43 }
 0x204   : > { %3575 = vst.msk [vmem:[%s5510_s16 + $0x30] sm:$0xff] %vm329_vm6, %v3467_v46  ;;  %v3470_v13 = vadd.f32 %v4209_v59, %v5505_v62  ;;  %3592 = vst.msk [vmem:[%s5510_s16 + $0xb8] sm:$0xff] %vm329_vm6, %v3534_v58  ;;  %v3461_v60 = vpop.f32.mrb[7].mxu0 }
 0x205   : > { %3573 = vst.msk [vmem:[%s5510_s16 + $0x20] sm:$0xff] %vm329_vm6, %v3459_v20  ;;  %v3462_v61 = vadd.f32 %v5505_v62, %v3461_v60  ;;  %3590 = vst.msk [vmem:[%s5510_s16 + $0xa8] sm:$0xff] %vm329_vm6, %v3526_v44 }
 0x206   : > { %3576 = vst.msk [vmem:[%s5510_s16 + $0x38] sm:$0xff] %vm329_vm6, %v3470_v13 }
 0x207   : > { %3574 = vst.msk [vmem:[%s5510_s16 + $0x28] sm:$0xff] %vm329_vm6, %v3462_v61 }
 0x248   : > { %v4228_v63 = vpop.f32.mrb[8].mxu1 }
 0x249   : > { %v3547_v1 = vadd.f32 %v4228_v63, %v5505_v62  ;;  %v3538_v2 = vpop.f32.mrb[9].mxu1 }
 0x24a   : > { %v4212_v3 = vpop.f32.mrb[8].mxu0  ;;  %v3539_v4 = vadd.f32 %v5505_v62, %v3538_v2  ;;  %v4229_v6 = vpop.f32.mrb[10].mxu1 }
 0x24b   : > { %v3483_v7 = vadd.f32 %v4212_v3, %v5505_v62  ;;  %3595 = vst.msk [vmem:[%s5510_s16 + $0xd0] sm:$0xff] %vm329_vm6, %v3547_v1  ;;  %v3474_v8 = vpop.f32.mrb[9].mxu0  ;;  %v3550_v9 = vadd.f32 %v4229_v6, %v5505_v62  ;;  %v3541_v10 = vpop.f32.mrb[11].mxu1 }
 0x24c   : > { %v3475_v12 = vadd.f32 %v5505_v62, %v3474_v8  ;;  %3593 = vst.msk [vmem:[%s5510_s16 + $0xc0] sm:$0xff] %vm329_vm6, %v3539_v4  ;;  %v4213_v14 = vpop.f32.mrb[10].mxu0  ;;  %v3542_v15 = vadd.f32 %v5505_v62, %v3541_v10 }
 0x24d   : > { %3579 = vst.msk [vmem:[%s5510_s16 + $0x50] sm:$0xff] %vm329_vm6, %v3483_v7  ;;  %v3486_v16 = vadd.f32 %v4213_v14, %v5505_v62  ;;  %3596 = vst.msk [vmem:[%s5510_s16 + $0xd8] sm:$0xff] %vm329_vm6, %v3550_v9  ;;  %v3477_v17 = vpop.f32.mrb[11].mxu0 }
 0x24e   : > { %3577 = vst.msk [vmem:[%s5510_s16 + $0x40] sm:$0xff] %vm329_vm6, %v3475_v12  ;;  %v3478_v18 = vadd.f32 %v5505_v62, %v3477_v17  ;;  %3594 = vst.msk [vmem:[%s5510_s16 + $0xc8] sm:$0xff] %vm329_vm6, %v3542_v15 }
 0x24f   : > { %3580 = vst.msk [vmem:[%s5510_s16 + $0x58] sm:$0xff] %vm329_vm6, %v3486_v16 }
 0x250   : > { %3578 = vst.msk [vmem:[%s5510_s16 + $0x48] sm:$0xff] %vm329_vm6, %v3478_v18 }
 0x287   : > { %v4232_v19 = vpop.f32.mrb[12].mxu1 }
 0x288   : > { %v3563_v5 = vadd.f32 %v4232_v19, %v5505_v62  ;;  %v3554_v23 = vpop.f32.mrb[13].mxu1 }
 0x289   : > { %v3555_v24 = vadd.f32 %v5505_v62, %v3554_v23  ;;  %v4233_v25 = vpop.f32.mrb[14].mxu1 }
 0x28a   : > { %3599 = vst.msk [vmem:[%s5510_s16 + $0xf0] sm:$0xff] %vm329_vm6, %v3563_v5  ;;  %v3566_v26 = vadd.f32 %v4233_v25, %v5505_v62  ;;  %v3557_v22 = vpop.f32.mrb[15].mxu1 }
 0x28b   : > { %3597 = vst.msk [vmem:[%s5510_s16 + $0xe0] sm:$0xff] %vm329_vm6, %v3555_v24  ;;  %v3558_v27 = vadd.f32 %v5505_v62, %v3557_v22 }
 0x28c   : > { %v4216_v28 = vpop.f32.mrb[12].mxu0  ;;  %3600 = vst.msk [vmem:[%s5510_s16 + $0xf8] sm:$0xff] %vm329_vm6, %v3566_v26 }
 0x28d   : > { %v3499_v29 = vadd.f32 %v4216_v28, %v5505_v62  ;;  %v3490_v30 = vpop.f32.mrb[13].mxu0  ;;  %3598 = vst.msk [vmem:[%s5510_s16 + $0xe8] sm:$0xff] %vm329_vm6, %v3558_v27 }
 0x28e   : > { %v3491_v31 = vadd.f32 %v5505_v62, %v3490_v30  ;;  %v4217_v32 = vpop.f32.mrb[14].mxu0 }
 0x28f   : > { %3583 = vst.msk [vmem:[%s5510_s16 + $0x70] sm:$0xff] %vm329_vm6, %v3499_v29  ;;  %v3502_v33 = vadd.f32 %v4217_v32, %v5505_v62  ;;  %v3493_v34 = vpop.f32.mrb[15].mxu0 }
 0x290   : > { %3581 = vst.msk [vmem:[%s5510_s16 + $0x60] sm:$0xff] %vm329_vm6, %v3491_v31  ;;  %v3494_v35 = vadd.f32 %v5505_v62, %v3493_v34 }
 0x291   : > { %3584 = vst.msk [vmem:[%s5510_s16 + $0x78] sm:$0xff] %vm329_vm6, %v3502_v33 }
 0x292   : > { %3582 = vst.msk [vmem:[%s5510_s16 + $0x68] sm:$0xff] %vm329_vm6, %v3494_v35 }
 0x293 PF: > { %s13_s14 = sadd.s32 1, %s4348_s14   ;;  %s5625_s12 = smov %s4344_s13 }
 0x294   : > { %p10_p5 = scmp.ge.s32.totalorder %s13_s14, 4   ;;  %s5626_s13 = smov %s5628_s15 }
 0x296   :  { %12 = sbr.rel (!%p10_p5) target bundleno = 2 (0x2), region = 65 }

</bundles_post_ra>
